<compile_context>
chip_gen: v5e
topology: v5e:2x2
jax: 0.10.0
libtpu: 0.0.40
codegen_flags: <defaults>
</compile_context>

<pallas_src>
import math
from functools import partial

import jax
import jax.numpy as jnp
from jax import lax
from jax.experimental import pallas as pl
from jax.experimental.pallas import tpu as pltpu

_BN_EPS = 1e-5
_LRELU_SLOPE = 0.2


# ------------------------------ in-kernel helpers ---------------------------- #

def _shifted_taps(a, H, W, r, w_idx):
    """Spatial taps of a channels-first activation with implicit zero padding.

    a:     (C, H*W) activation on the valid region (flattened as h*W + w).
    r:     conv radius (kernel = (2r+1) x (2r+1), padding = r).
    w_idx: (1, H*W) int32 lane iota % W.

    Returns a list of (2r+1)^2 arrays of shape (C, H*W), ordered (kh, kw), where
    tap[kh*(2r+1)+kw][c, l] == a[c, (h+kh-r)*W + (w+kw-r)] (zero outside the image).
    Row out-of-range always lands in the zero lane padding or is column-masked.
    """
    C, HW = a.shape
    pad = r * W + r
    zeros = jnp.zeros((C, pad), a.dtype)
    buf = jnp.concatenate([zeros, a, zeros], axis=1)          # (C, HW + 2*pad)
    taps = []
    for kh in range(2 * r + 1):
        for kw in range(2 * r + 1):
            di, dj = kh - r, kw - r
            off = di * W + dj
            tap = buf[:, pad + off: pad + off + HW]
            if dj != 0:
                cm = ((w_idx + dj >= 0) & (w_idx + dj < W)).astype(a.dtype)
                tap = tap * cm                                  # kill column wrap
            taps.append(tap)
    return taps


def _leaky(x):
    return jnp.maximum(x, _LRELU_SLOPE * x)


# ------------------------------ fused kernel -------------------------------- #

def _inception_a_kernel(x_ref, wg_ref, bg_ref, w2_ref, b2_ref, w3_ref, b3_ref,
                        o_ref, *, H, W, Cin, bf):
    """One full InceptionA block for a single image, fully resident in VMEM.

    Layout: channels-first.  x_ref: (1, Cin, H*W); o_ref: (1, 4*bf, H*W) with
    rows = NCHW output channels (branch*bf + c), i.e. torch.cat(dim=1) order.
    """
    HW = H * W
    x = x_ref[0].astype(jnp.bfloat16)                          # (Cin, HW)
    w_idx = lax.broadcasted_iota(jnp.int32, (1, HW), 1) % W    # lane -> w coordinate

    # Grouped 1x1 for all four branches: (4*bf, Cin) @ (Cin, HW) -> (4*bf, HW).
    # Rows [3*bf:4*bf] are branch4's 1x1 with the 1/9 avg-pool scale folded in
    # (bias applied post-pool).
    g = jnp.dot(wg_ref[...], x, preferred_element_type=jnp.float32)

    # Branches 1/2/3 first stage: bias (+folded BN) then LeakyReLU.
    g123 = _leaky(g[0:3 * bf, :] + bg_ref[0:3 * bf, :])

    # Branch 1: 1x1 -> BN -> LReLU (done).
    b1 = g123[0:bf, :]

    # Branch 2: (1x1 -> BN -> LReLU) -> 3x3 pad=1 -> BN -> LReLU.  Single im2col dot.
    a2 = g123[bf:2 * bf, :].astype(jnp.bfloat16)
    cols2 = jnp.concatenate(_shifted_taps(a2, H, W, 1, w_idx), axis=0)   # (9*bf, HW)
    b2 = _leaky(jnp.dot(w2_ref[...], cols2, preferred_element_type=jnp.float32)
                + b2_ref[...])

    # Branch 3: (1x1 -> LReLU) -> 5x5 pad=2 -> LReLU (no BatchNorm).  Single im2col dot.
    a3 = g123[2 * bf:3 * bf, :].astype(jnp.bfloat16)
    cols3 = jnp.concatenate(_shifted_taps(a3, H, W, 2, w_idx), axis=0)   # (25*bf, HW)
    b3 = _leaky(jnp.dot(w3_ref[...], cols3, preferred_element_type=jnp.float32)
                + b3_ref[...])

    # Branch 4: avgpool(3x3, pad=1, count_include_pad) -> 1x1 -> BN -> LReLU.
    # The 1x1 (scaled by 1/9) already ran in the grouped matmul; pooling reduces to
    # summing the 9 zero-padded taps of its output, then bias + LReLU.
    u4 = g[3 * bf:4 * bf, :]
    taps4 = _shifted_taps(u4, H, W, 1, w_idx)
    y4 = taps4[0]
    for t in taps4[1:]:
        y4 = y4 + t
    b4 = _leaky(y4 + bg_ref[3 * bf:4 * bf, :])

    # torch.cat([b1, b2, b3, b4], dim=1): one lane-dense (4*bf, HW) store.
    o_ref[0] = jnp.concatenate([b1, b2, b3, b4], axis=0).astype(o_ref.dtype)


# --------------------------------- wrapper ----------------------------------- #

@jax.jit
def inception_a_forward(x_nchw, kp):
    """InceptionA forward.  Input/output are NCHW to match the PyTorch module."""
    N, Cin, H, W = x_nchw.shape
    bf = kp["w2"].shape[0]
    HW = H * W

    x2 = x_nchw.reshape(N, Cin, HW)          # free reshape, stays NCHW in HBM

    flops = 2 * N * HW * (Cin * 4 * bf + 9 * bf * bf + 25 * bf * bf)
    weight_bytes = sum(int(v.size) * v.dtype.itemsize for v in kp.values())
    bytes_accessed = int(x2.size) * 4 + weight_bytes + N * 4 * bf * HW * 4

    out = pl.pallas_call(
        partial(_inception_a_kernel, H=H, W=W, Cin=Cin, bf=bf),
        out_shape=jax.ShapeDtypeStruct((N, 4 * bf, HW), jnp.float32),
        grid=(N,),
        in_specs=[
            pl.BlockSpec((1, Cin, HW), lambda n: (n, 0, 0)),     # input image (f32)
            pl.BlockSpec((4 * bf, Cin), lambda n: (0, 0)),       # grouped 1x1 weight^T
            pl.BlockSpec((4 * bf, 1), lambda n: (0, 0)),         # grouped biases
            pl.BlockSpec((bf, 9 * bf), lambda n: (0, 0)),        # 3x3 weight^T
            pl.BlockSpec((bf, 1), lambda n: (0, 0)),             # 3x3 bias
            pl.BlockSpec((bf, 25 * bf), lambda n: (0, 0)),       # 5x5 weight^T
            pl.BlockSpec((bf, 1), lambda n: (0, 0)),             # 5x5 bias
        ],
        out_specs=pl.BlockSpec((1, 4 * bf, HW), lambda n: (n, 0, 0)),
        compiler_params=pltpu.CompilerParams(dimension_semantics=("parallel",)),
        cost_estimate=pl.CostEstimate(flops=flops, transcendentals=0,
                                      bytes_accessed=bytes_accessed),
    )(x2, kp["wg"], kp["bg"], kp["w2"], kp["b2"], kp["w3"], kp["b3"])

    return out.reshape(N, 4 * bf, H, W)      # free reshape back to NCHW


# ------------------------------- parameters ---------------------------------- #

def _kaiming_conv(key, kh, kw, cin, cout):
    # torch kaiming_normal_ (fan_in, a=0) then *= 0.1; bias zero-initialized.
    std = math.sqrt(2.0 / (kh * kw * cin))
    w = jax.random.normal(key, (kh, kw, cin, cout), jnp.float32) * std * 0.1
    b = jnp.zeros((cout,), jnp.float32)
    return w, b


def _bn_init(c):
    return {"gamma": jnp.ones((c,), jnp.float32), "beta": jnp.zeros((c,), jnp.float32),
            "mean": jnp.zeros((c,), jnp.float32), "var": jnp.ones((c,), jnp.float32)}


def make_params(key, in_channels=64):
    bf = in_channels // 4
    ks = jax.random.split(key, 6)
    p = {}
    p["b1_w"], p["b1_b"] = _kaiming_conv(ks[0], 1, 1, in_channels, bf)
    p["b2a_w"], p["b2a_b"] = _kaiming_conv(ks[1], 1, 1, in_channels, bf)
    p["b2b_w"], p["b2b_b"] = _kaiming_conv(ks[2], 3, 3, bf, bf)
    p["b3a_w"], p["b3a_b"] = _kaiming_conv(ks[3], 1, 1, in_channels, bf)
    p["b3b_w"], p["b3b_b"] = _kaiming_conv(ks[4], 5, 5, bf, bf)
    p["b4_w"], p["b4_b"] = _kaiming_conv(ks[5], 1, 1, in_channels, bf)
    p["bn1"], p["bn2a"], p["bn2b"], p["bn4"] = (_bn_init(bf) for _ in range(4))
    return p


def fold_params(p):
    """Fold eval-mode BatchNorm (and the 1/9 pool scale) into conv weights/biases and
    pack in the channels-first layout the kernel consumes."""
    def fold(w, b, bn):
        s = bn["gamma"] / jnp.sqrt(bn["var"] + _BN_EPS)
        return w * s, (b - bn["mean"]) * s + bn["beta"]

    w1, b1 = fold(p["b1_w"], p["b1_b"], p["bn1"])
    w2a, b2a = fold(p["b2a_w"], p["b2a_b"], p["bn2a"])
    w2b, b2b = fold(p["b2b_w"], p["b2b_b"], p["bn2b"])
    w3a, b3a = p["b3a_w"], p["b3a_b"]                 # branch3 has no BatchNorm
    w3b, b3b = p["b3b_w"], p["b3b_b"]
    w4, b4 = fold(p["b4_w"], p["b4_b"], p["bn4"])

    cin, bf = w1.shape[2], w1.shape[3]
    # Grouped 1x1 weight, transposed to (4*bf, Cin).  Branch4 columns carry the 1/9
    # avg-pool scale (pool/conv commute); its bias is applied post-pool in the kernel.
    wg = jnp.concatenate([w1.reshape(cin, bf), w2a.reshape(cin, bf),
                          w3a.reshape(cin, bf), (w4 / 9.0).reshape(cin, bf)],
                         axis=-1).T
    bg = jnp.concatenate([b1, b2a, b3a, b4]).reshape(4 * bf, 1)
    return {
        "wg": wg.astype(jnp.bfloat16),
        "bg": bg.astype(jnp.float32),
        "w2": w2b.reshape(9 * bf, bf).T.astype(jnp.bfloat16),    # (bf, 9*bf)
        "b2": b2b.reshape(bf, 1).astype(jnp.float32),
        "w3": w3b.reshape(25 * bf, bf).T.astype(jnp.bfloat16),   # (bf, 25*bf)
        "b3": b3b.reshape(bf, 1).astype(jnp.float32),
    }


# ------------------------- pure-JAX reference (f32) -------------------------- #

def reference_forward(x_nchw, p):
    x = jnp.transpose(x_nchw, (0, 2, 3, 1))

    def conv(v, w, b, pad):
        y = lax.conv_general_dilated(v, w, (1, 1), [(pad, pad), (pad, pad)],
                                     dimension_numbers=("NHWC", "HWIO", "NHWC"))
        return y + b

    def bn(v, q):
        return (v - q["mean"]) / jnp.sqrt(q["var"] + _BN_EPS) * q["gamma"] + q["beta"]

    def lr(v):
        return jnp.maximum(v, _LRELU_SLOPE * v)

    b1 = lr(bn(conv(x, p["b1_w"], p["b1_b"], 0), p["bn1"]))
    t = lr(bn(conv(x, p["b2a_w"], p["b2a_b"], 0), p["bn2a"]))
    b2 = lr(bn(conv(t, p["b2b_w"], p["b2b_b"], 1), p["bn2b"]))
    t = lr(conv(x, p["b3a_w"], p["b3a_b"], 0))
    b3 = lr(conv(t, p["b3b_w"], p["b3b_b"], 2))
    pool = lax.reduce_window(x, 0.0, lax.add, (1, 3, 3, 1), (1, 1, 1, 1),
                             [(0, 0), (1, 1), (1, 1), (0, 0)]) / 9.0
    b4 = lr(bn(conv(pool, p["b4_w"], p["b4_b"], 0), p["bn4"]))
    out = jnp.concatenate([b1, b2, b3, b4], axis=-1)
    return jnp.transpose(out, (0, 3, 1, 2))


# ----------------------------------- main ------------------------------------ #

if __name__ == "__main__":
    key = jax.random.PRNGKey(0)
    kx, kparam = jax.random.split(key)
    # PyTorch-style NCHW input, default in_channels=64, small spatial size.
    x = jax.random.normal(kx, (2, 64, 16, 16), jnp.float32)

    params = make_params(kparam, in_channels=64)
    kernel_params = fold_params(params)

    out = inception_a_forward(x, kernel_params)
    out = jax.block_until_ready(out)

    assert out.shape == (2, 64, 16, 16), out.shape
    assert bool(jnp.all(jnp.isfinite(out)))

    ref = reference_forward(x, params)
    err = float(jnp.max(jnp.abs(out - ref)))
    assert err < 5e-2, f"max abs err vs reference: {err}"
    print("KERNEL_OK")
</pallas_src>

<mosaic_0001>
module attributes {stable_mosaic.version = 11 : i64} {
  func.func @_inception_a_kernel(%arg0: i32, %arg1: memref<1x64x256xf32, #tpu.memory_space<vmem>>, %arg2: memref<64x64xbf16, #tpu.memory_space<vmem>>, %arg3: memref<64x1xf32, #tpu.memory_space<vmem>>, %arg4: memref<16x144xbf16, #tpu.memory_space<vmem>>, %arg5: memref<16x1xf32, #tpu.memory_space<vmem>>, %arg6: memref<16x400xbf16, #tpu.memory_space<vmem>>, %arg7: memref<16x1xf32, #tpu.memory_space<vmem>>, %arg8: memref<1x64x256xf32, #tpu.memory_space<vmem>>) attributes {dimension_semantics = [#tpu.dimension_semantics<parallel>], iteration_bounds = array<i64: 2>, scalar_prefetch = 0 : i64, scratch_operands = 0 : i64, tpu.core_type = #tpu.core_type<tc>, window_params = [{transform_indices = @transform_0, window_bounds = array<i64: 1, 64, 256>}, {pipeline_mode = #tpu.pipeline_mode<synchronous>, transform_indices = @transform_1, window_bounds = array<i64: 64, 64>}, {pipeline_mode = #tpu.pipeline_mode<synchronous>, transform_indices = @transform_2, window_bounds = array<i64: 64, 1>}, {pipeline_mode = #tpu.pipeline_mode<synchronous>, transform_indices = @transform_3, window_bounds = array<i64: 16, 144>}, {pipeline_mode = #tpu.pipeline_mode<synchronous>, transform_indices = @transform_4, window_bounds = array<i64: 16, 1>}, {pipeline_mode = #tpu.pipeline_mode<synchronous>, transform_indices = @transform_5, window_bounds = array<i64: 16, 400>}, {pipeline_mode = #tpu.pipeline_mode<synchronous>, transform_indices = @transform_6, window_bounds = array<i64: 16, 1>}, {transform_indices = @transform_7, window_bounds = array<i64: 1, 64, 256>}]} {
    %c0 = arith.constant 0 : index
    %c0_0 = arith.constant 0 : index
    %c0_1 = arith.constant 0 : index
    %0 = vector.load %arg1[%c0, %c0_0, %c0_1] : memref<1x64x256xf32, #tpu.memory_space<vmem>>, vector<1x64x256xf32>
    %1 = vector.shape_cast %0 : vector<1x64x256xf32> to vector<64x256xf32>
    %2 = arith.truncf %1 : vector<64x256xf32> to vector<64x256xbf16>
    %3 = tpu.iota {dimensions = array<i32: 1>} : vector<1x256xi32>
    %c16_i32 = arith.constant 16 : i32
    %c0_i32 = arith.constant 0 : i32
    %4 = arith.cmpi eq, %c16_i32, %c0_i32 : i32
    %c1_i32 = arith.constant 1 : i32
    %5 = arith.select %4, %c1_i32, %c16_i32 : i32
    %6 = vector.broadcast %5 : i32 to vector<1x256xi32>
    %7 = arith.remsi %3, %6 : vector<1x256xi32>
    %c0_i32_2 = arith.constant 0 : i32
    %8 = vector.broadcast %c0_i32_2 : i32 to vector<1x256xi32>
    %9 = arith.cmpi ne, %7, %8 : vector<1x256xi32>
    %c0_i32_3 = arith.constant 0 : i32
    %10 = vector.broadcast %c0_i32_3 : i32 to vector<1x256xi32>
    %11 = arith.cmpi slt, %7, %10 : vector<1x256xi32>
    %c0_i32_4 = arith.constant 0 : i32
    %12 = arith.cmpi slt, %5, %c0_i32_4 : i32
    %13 = vector.broadcast %12 : i1 to vector<1x256xi1>
    %14 = vector.broadcast %13 : vector<1x256xi1> to vector<1x256xi1>
    %15 = arith.xori %11, %14 : vector<1x256xi1>
    %16 = arith.andi %15, %9 : vector<1x256xi1>
    %17 = vector.broadcast %5 : i32 to vector<1x256xi32>
    %18 = arith.addi %7, %17 : vector<1x256xi32>
    %19 = arith.select %16, %18, %7 : vector<1x256xi1>, vector<1x256xi32>
    %c0_5 = arith.constant 0 : index
    %c0_6 = arith.constant 0 : index
    %20 = vector.load %arg2[%c0_5, %c0_6] : memref<64x64xbf16, #tpu.memory_space<vmem>>, vector<64x64xbf16>
    %cst = arith.constant dense<0.000000e+00> : vector<64x256xf32>
    %21 = tpu.matmul %20, %2, %cst {dimension_numbers = #tpu.dot_dimension_numbers<[1], [0], [0], [1], [0, 0, 1, 1], [], []>} : vector<64x64xbf16>, vector<64x256xbf16>, vector<64x256xf32> -> vector<64x256xf32>
    %22 = vector.extract_strided_slice %21 {offsets = [0, 0], sizes = [48, 256], strides = [1, 1]} : vector<64x256xf32> to vector<48x256xf32>
    %c0_7 = arith.constant 0 : index
    %c0_8 = arith.constant 0 : index
    %23 = vector.load %arg3[%c0_7, %c0_8] : memref<64x1xf32, #tpu.memory_space<vmem>>, vector<48x1xf32>
    %24 = vector.broadcast %23 : vector<48x1xf32> to vector<48x256xf32>
    %25 = arith.addf %22, %24 : vector<48x256xf32>
    %cst_9 = arith.constant 2.000000e-01 : f32
    %26 = vector.broadcast %cst_9 : f32 to vector<48x256xf32>
    %27 = arith.mulf %26, %25 : vector<48x256xf32>
    %28 = arith.maximumf %25, %27 : vector<48x256xf32>
    %29 = vector.extract_strided_slice %28 {offsets = [0, 0], sizes = [16, 256], strides = [1, 1]} : vector<48x256xf32> to vector<16x256xf32>
    %30 = vector.extract_strided_slice %28 {offsets = [16, 0], sizes = [16, 256], strides = [1, 1]} : vector<48x256xf32> to vector<16x256xf32>
    %31 = arith.truncf %30 : vector<16x256xf32> to vector<16x256xbf16>
    %cst_10 = arith.constant 0.000000e+00 : bf16
    %32 = vector.broadcast %cst_10 : bf16 to vector<16x17xbf16>
    %33 = tpu.concatenate %32, %31, %32 in 1 : vector<16x17xbf16>, vector<16x256xbf16>, vector<16x17xbf16> -> vector<16x290xbf16>
    %34 = vector.extract_strided_slice %33 {offsets = [0, 0], sizes = [16, 256], strides = [1, 1]} : vector<16x290xbf16> to vector<16x256xbf16>
    %c-1_i32 = arith.constant -1 : i32
    %35 = vector.broadcast %c-1_i32 : i32 to vector<1x256xi32>
    %36 = arith.addi %19, %35 : vector<1x256xi32>
    %c0_i32_11 = arith.constant 0 : i32
    %37 = vector.broadcast %c0_i32_11 : i32 to vector<1x256xi32>
    %38 = arith.cmpi sge, %36, %37 : vector<1x256xi32>
    %c-1_i32_12 = arith.constant -1 : i32
    %39 = vector.broadcast %c-1_i32_12 : i32 to vector<1x256xi32>
    %40 = arith.addi %19, %39 : vector<1x256xi32>
    %c16_i32_13 = arith.constant 16 : i32
    %41 = vector.broadcast %c16_i32_13 : i32 to vector<1x256xi32>
    %42 = arith.cmpi slt, %40, %41 : vector<1x256xi32>
    %43 = arith.andi %38, %42 : vector<1x256xi1>
    %44 = arith.extui %43 : vector<1x256xi1> to vector<1x256xi32>
    %45 = arith.sitofp %44 : vector<1x256xi32> to vector<1x256xf32>
    %46 = arith.truncf %45 : vector<1x256xf32> to vector<1x256xbf16>
    %47 = vector.broadcast %46 : vector<1x256xbf16> to vector<16x256xbf16>
    %48 = arith.mulf %34, %47 : vector<16x256xbf16>
    %49 = vector.extract_strided_slice %33 {offsets = [0, 1], sizes = [16, 256], strides = [1, 1]} : vector<16x290xbf16> to vector<16x256xbf16>
    %50 = vector.extract_strided_slice %33 {offsets = [0, 2], sizes = [16, 256], strides = [1, 1]} : vector<16x290xbf16> to vector<16x256xbf16>
    %c1_i32_14 = arith.constant 1 : i32
    %51 = vector.broadcast %c1_i32_14 : i32 to vector<1x256xi32>
    %52 = arith.addi %19, %51 : vector<1x256xi32>
    %c0_i32_15 = arith.constant 0 : i32
    %53 = vector.broadcast %c0_i32_15 : i32 to vector<1x256xi32>
    %54 = arith.cmpi sge, %52, %53 : vector<1x256xi32>
    %c1_i32_16 = arith.constant 1 : i32
    %55 = vector.broadcast %c1_i32_16 : i32 to vector<1x256xi32>
    %56 = arith.addi %19, %55 : vector<1x256xi32>
    %c16_i32_17 = arith.constant 16 : i32
    %57 = vector.broadcast %c16_i32_17 : i32 to vector<1x256xi32>
    %58 = arith.cmpi slt, %56, %57 : vector<1x256xi32>
    %59 = arith.andi %54, %58 : vector<1x256xi1>
    %60 = arith.extui %59 : vector<1x256xi1> to vector<1x256xi32>
    %61 = arith.sitofp %60 : vector<1x256xi32> to vector<1x256xf32>
    %62 = arith.truncf %61 : vector<1x256xf32> to vector<1x256xbf16>
    %63 = vector.broadcast %62 : vector<1x256xbf16> to vector<16x256xbf16>
    %64 = arith.mulf %50, %63 : vector<16x256xbf16>
    %65 = vector.extract_strided_slice %33 {offsets = [0, 16], sizes = [16, 256], strides = [1, 1]} : vector<16x290xbf16> to vector<16x256xbf16>
    %c-1_i32_18 = arith.constant -1 : i32
    %66 = vector.broadcast %c-1_i32_18 : i32 to vector<1x256xi32>
    %67 = arith.addi %19, %66 : vector<1x256xi32>
    %c0_i32_19 = arith.constant 0 : i32
    %68 = vector.broadcast %c0_i32_19 : i32 to vector<1x256xi32>
    %69 = arith.cmpi sge, %67, %68 : vector<1x256xi32>
    %c-1_i32_20 = arith.constant -1 : i32
    %70 = vector.broadcast %c-1_i32_20 : i32 to vector<1x256xi32>
    %71 = arith.addi %19, %70 : vector<1x256xi32>
    %c16_i32_21 = arith.constant 16 : i32
    %72 = vector.broadcast %c16_i32_21 : i32 to vector<1x256xi32>
    %73 = arith.cmpi slt, %71, %72 : vector<1x256xi32>
    %74 = arith.andi %69, %73 : vector<1x256xi1>
    %75 = arith.extui %74 : vector<1x256xi1> to vector<1x256xi32>
    %76 = arith.sitofp %75 : vector<1x256xi32> to vector<1x256xf32>
    %77 = arith.truncf %76 : vector<1x256xf32> to vector<1x256xbf16>
    %78 = vector.broadcast %77 : vector<1x256xbf16> to vector<16x256xbf16>
    %79 = arith.mulf %65, %78 : vector<16x256xbf16>
    %80 = vector.extract_strided_slice %33 {offsets = [0, 17], sizes = [16, 256], strides = [1, 1]} : vector<16x290xbf16> to vector<16x256xbf16>
    %81 = vector.extract_strided_slice %33 {offsets = [0, 18], sizes = [16, 256], strides = [1, 1]} : vector<16x290xbf16> to vector<16x256xbf16>
    %c1_i32_22 = arith.constant 1 : i32
    %82 = vector.broadcast %c1_i32_22 : i32 to vector<1x256xi32>
    %83 = arith.addi %19, %82 : vector<1x256xi32>
    %c0_i32_23 = arith.constant 0 : i32
    %84 = vector.broadcast %c0_i32_23 : i32 to vector<1x256xi32>
    %85 = arith.cmpi sge, %83, %84 : vector<1x256xi32>
    %c1_i32_24 = arith.constant 1 : i32
    %86 = vector.broadcast %c1_i32_24 : i32 to vector<1x256xi32>
    %87 = arith.addi %19, %86 : vector<1x256xi32>
    %c16_i32_25 = arith.constant 16 : i32
    %88 = vector.broadcast %c16_i32_25 : i32 to vector<1x256xi32>
    %89 = arith.cmpi slt, %87, %88 : vector<1x256xi32>
    %90 = arith.andi %85, %89 : vector<1x256xi1>
    %91 = arith.extui %90 : vector<1x256xi1> to vector<1x256xi32>
    %92 = arith.sitofp %91 : vector<1x256xi32> to vector<1x256xf32>
    %93 = arith.truncf %92 : vector<1x256xf32> to vector<1x256xbf16>
    %94 = vector.broadcast %93 : vector<1x256xbf16> to vector<16x256xbf16>
    %95 = arith.mulf %81, %94 : vector<16x256xbf16>
    %96 = vector.extract_strided_slice %33 {offsets = [0, 32], sizes = [16, 256], strides = [1, 1]} : vector<16x290xbf16> to vector<16x256xbf16>
    %c-1_i32_26 = arith.constant -1 : i32
    %97 = vector.broadcast %c-1_i32_26 : i32 to vector<1x256xi32>
    %98 = arith.addi %19, %97 : vector<1x256xi32>
    %c0_i32_27 = arith.constant 0 : i32
    %99 = vector.broadcast %c0_i32_27 : i32 to vector<1x256xi32>
    %100 = arith.cmpi sge, %98, %99 : vector<1x256xi32>
    %c-1_i32_28 = arith.constant -1 : i32
    %101 = vector.broadcast %c-1_i32_28 : i32 to vector<1x256xi32>
    %102 = arith.addi %19, %101 : vector<1x256xi32>
    %c16_i32_29 = arith.constant 16 : i32
    %103 = vector.broadcast %c16_i32_29 : i32 to vector<1x256xi32>
    %104 = arith.cmpi slt, %102, %103 : vector<1x256xi32>
    %105 = arith.andi %100, %104 : vector<1x256xi1>
    %106 = arith.extui %105 : vector<1x256xi1> to vector<1x256xi32>
    %107 = arith.sitofp %106 : vector<1x256xi32> to vector<1x256xf32>
    %108 = arith.truncf %107 : vector<1x256xf32> to vector<1x256xbf16>
    %109 = vector.broadcast %108 : vector<1x256xbf16> to vector<16x256xbf16>
    %110 = arith.mulf %96, %109 : vector<16x256xbf16>
    %111 = vector.extract_strided_slice %33 {offsets = [0, 33], sizes = [16, 256], strides = [1, 1]} : vector<16x290xbf16> to vector<16x256xbf16>
    %112 = vector.extract_strided_slice %33 {offsets = [0, 34], sizes = [16, 256], strides = [1, 1]} : vector<16x290xbf16> to vector<16x256xbf16>
    %c1_i32_30 = arith.constant 1 : i32
    %113 = vector.broadcast %c1_i32_30 : i32 to vector<1x256xi32>
    %114 = arith.addi %19, %113 : vector<1x256xi32>
    %c0_i32_31 = arith.constant 0 : i32
    %115 = vector.broadcast %c0_i32_31 : i32 to vector<1x256xi32>
    %116 = arith.cmpi sge, %114, %115 : vector<1x256xi32>
    %c1_i32_32 = arith.constant 1 : i32
    %117 = vector.broadcast %c1_i32_32 : i32 to vector<1x256xi32>
    %118 = arith.addi %19, %117 : vector<1x256xi32>
    %c16_i32_33 = arith.constant 16 : i32
    %119 = vector.broadcast %c16_i32_33 : i32 to vector<1x256xi32>
    %120 = arith.cmpi slt, %118, %119 : vector<1x256xi32>
    %121 = arith.andi %116, %120 : vector<1x256xi1>
    %122 = arith.extui %121 : vector<1x256xi1> to vector<1x256xi32>
    %123 = arith.sitofp %122 : vector<1x256xi32> to vector<1x256xf32>
    %124 = arith.truncf %123 : vector<1x256xf32> to vector<1x256xbf16>
    %125 = vector.broadcast %124 : vector<1x256xbf16> to vector<16x256xbf16>
    %126 = arith.mulf %112, %125 : vector<16x256xbf16>
    %127 = tpu.concatenate %48, %49, %64, %79, %80, %95, %110, %111, %126 in 0 : vector<16x256xbf16>, vector<16x256xbf16>, vector<16x256xbf16>, vector<16x256xbf16>, vector<16x256xbf16>, vector<16x256xbf16>, vector<16x256xbf16>, vector<16x256xbf16>, vector<16x256xbf16> -> vector<144x256xbf16>
    %c0_34 = arith.constant 0 : index
    %c0_35 = arith.constant 0 : index
    %128 = vector.load %arg4[%c0_34, %c0_35] : memref<16x144xbf16, #tpu.memory_space<vmem>>, vector<16x144xbf16>
    %cst_36 = arith.constant dense<0.000000e+00> : vector<16x256xf32>
    %129 = tpu.matmul %128, %127, %cst_36 {dimension_numbers = #tpu.dot_dimension_numbers<[1], [0], [0], [1], [0, 0, 1, 1], [], []>} : vector<16x144xbf16>, vector<144x256xbf16>, vector<16x256xf32> -> vector<16x256xf32>
    %c0_37 = arith.constant 0 : index
    %c0_38 = arith.constant 0 : index
    %130 = vector.load %arg5[%c0_37, %c0_38] : memref<16x1xf32, #tpu.memory_space<vmem>>, vector<16x1xf32>
    %131 = vector.broadcast %130 : vector<16x1xf32> to vector<16x256xf32>
    %132 = arith.addf %129, %131 : vector<16x256xf32>
    %cst_39 = arith.constant 2.000000e-01 : f32
    %133 = vector.broadcast %cst_39 : f32 to vector<16x256xf32>
    %134 = arith.mulf %133, %132 : vector<16x256xf32>
    %135 = arith.maximumf %132, %134 : vector<16x256xf32>
    %136 = vector.extract_strided_slice %28 {offsets = [32, 0], sizes = [16, 256], strides = [1, 1]} : vector<48x256xf32> to vector<16x256xf32>
    %137 = arith.truncf %136 : vector<16x256xf32> to vector<16x256xbf16>
    %cst_40 = arith.constant 0.000000e+00 : bf16
    %138 = vector.broadcast %cst_40 : bf16 to vector<16x34xbf16>
    %139 = tpu.concatenate %138, %137, %138 in 1 : vector<16x34xbf16>, vector<16x256xbf16>, vector<16x34xbf16> -> vector<16x324xbf16>
    %140 = vector.extract_strided_slice %139 {offsets = [0, 0], sizes = [16, 256], strides = [1, 1]} : vector<16x324xbf16> to vector<16x256xbf16>
    %c-2_i32 = arith.constant -2 : i32
    %141 = vector.broadcast %c-2_i32 : i32 to vector<1x256xi32>
    %142 = arith.addi %19, %141 : vector<1x256xi32>
    %c0_i32_41 = arith.constant 0 : i32
    %143 = vector.broadcast %c0_i32_41 : i32 to vector<1x256xi32>
    %144 = arith.cmpi sge, %142, %143 : vector<1x256xi32>
    %c-2_i32_42 = arith.constant -2 : i32
    %145 = vector.broadcast %c-2_i32_42 : i32 to vector<1x256xi32>
    %146 = arith.addi %19, %145 : vector<1x256xi32>
    %c16_i32_43 = arith.constant 16 : i32
    %147 = vector.broadcast %c16_i32_43 : i32 to vector<1x256xi32>
    %148 = arith.cmpi slt, %146, %147 : vector<1x256xi32>
    %149 = arith.andi %144, %148 : vector<1x256xi1>
    %150 = arith.extui %149 : vector<1x256xi1> to vector<1x256xi32>
    %151 = arith.sitofp %150 : vector<1x256xi32> to vector<1x256xf32>
    %152 = arith.truncf %151 : vector<1x256xf32> to vector<1x256xbf16>
    %153 = vector.broadcast %152 : vector<1x256xbf16> to vector<16x256xbf16>
    %154 = arith.mulf %140, %153 : vector<16x256xbf16>
    %155 = vector.extract_strided_slice %139 {offsets = [0, 1], sizes = [16, 256], strides = [1, 1]} : vector<16x324xbf16> to vector<16x256xbf16>
    %c-1_i32_44 = arith.constant -1 : i32
    %156 = vector.broadcast %c-1_i32_44 : i32 to vector<1x256xi32>
    %157 = arith.addi %19, %156 : vector<1x256xi32>
    %c0_i32_45 = arith.constant 0 : i32
    %158 = vector.broadcast %c0_i32_45 : i32 to vector<1x256xi32>
    %159 = arith.cmpi sge, %157, %158 : vector<1x256xi32>
    %c-1_i32_46 = arith.constant -1 : i32
    %160 = vector.broadcast %c-1_i32_46 : i32 to vector<1x256xi32>
    %161 = arith.addi %19, %160 : vector<1x256xi32>
    %c16_i32_47 = arith.constant 16 : i32
    %162 = vector.broadcast %c16_i32_47 : i32 to vector<1x256xi32>
    %163 = arith.cmpi slt, %161, %162 : vector<1x256xi32>
    %164 = arith.andi %159, %163 : vector<1x256xi1>
    %165 = arith.extui %164 : vector<1x256xi1> to vector<1x256xi32>
    %166 = arith.sitofp %165 : vector<1x256xi32> to vector<1x256xf32>
    %167 = arith.truncf %166 : vector<1x256xf32> to vector<1x256xbf16>
    %168 = vector.broadcast %167 : vector<1x256xbf16> to vector<16x256xbf16>
    %169 = arith.mulf %155, %168 : vector<16x256xbf16>
    %170 = vector.extract_strided_slice %139 {offsets = [0, 2], sizes = [16, 256], strides = [1, 1]} : vector<16x324xbf16> to vector<16x256xbf16>
    %171 = vector.extract_strided_slice %139 {offsets = [0, 3], sizes = [16, 256], strides = [1, 1]} : vector<16x324xbf16> to vector<16x256xbf16>
    %c1_i32_48 = arith.constant 1 : i32
    %172 = vector.broadcast %c1_i32_48 : i32 to vector<1x256xi32>
    %173 = arith.addi %19, %172 : vector<1x256xi32>
    %c0_i32_49 = arith.constant 0 : i32
    %174 = vector.broadcast %c0_i32_49 : i32 to vector<1x256xi32>
    %175 = arith.cmpi sge, %173, %174 : vector<1x256xi32>
    %c1_i32_50 = arith.constant 1 : i32
    %176 = vector.broadcast %c1_i32_50 : i32 to vector<1x256xi32>
    %177 = arith.addi %19, %176 : vector<1x256xi32>
    %c16_i32_51 = arith.constant 16 : i32
    %178 = vector.broadcast %c16_i32_51 : i32 to vector<1x256xi32>
    %179 = arith.cmpi slt, %177, %178 : vector<1x256xi32>
    %180 = arith.andi %175, %179 : vector<1x256xi1>
    %181 = arith.extui %180 : vector<1x256xi1> to vector<1x256xi32>
    %182 = arith.sitofp %181 : vector<1x256xi32> to vector<1x256xf32>
    %183 = arith.truncf %182 : vector<1x256xf32> to vector<1x256xbf16>
    %184 = vector.broadcast %183 : vector<1x256xbf16> to vector<16x256xbf16>
    %185 = arith.mulf %171, %184 : vector<16x256xbf16>
    %186 = vector.extract_strided_slice %139 {offsets = [0, 4], sizes = [16, 256], strides = [1, 1]} : vector<16x324xbf16> to vector<16x256xbf16>
    %c2_i32 = arith.constant 2 : i32
    %187 = vector.broadcast %c2_i32 : i32 to vector<1x256xi32>
    %188 = arith.addi %19, %187 : vector<1x256xi32>
    %c0_i32_52 = arith.constant 0 : i32
    %189 = vector.broadcast %c0_i32_52 : i32 to vector<1x256xi32>
    %190 = arith.cmpi sge, %188, %189 : vector<1x256xi32>
    %c2_i32_53 = arith.constant 2 : i32
    %191 = vector.broadcast %c2_i32_53 : i32 to vector<1x256xi32>
    %192 = arith.addi %19, %191 : vector<1x256xi32>
    %c16_i32_54 = arith.constant 16 : i32
    %193 = vector.broadcast %c16_i32_54 : i32 to vector<1x256xi32>
    %194 = arith.cmpi slt, %192, %193 : vector<1x256xi32>
    %195 = arith.andi %190, %194 : vector<1x256xi1>
    %196 = arith.extui %195 : vector<1x256xi1> to vector<1x256xi32>
    %197 = arith.sitofp %196 : vector<1x256xi32> to vector<1x256xf32>
    %198 = arith.truncf %197 : vector<1x256xf32> to vector<1x256xbf16>
    %199 = vector.broadcast %198 : vector<1x256xbf16> to vector<16x256xbf16>
    %200 = arith.mulf %186, %199 : vector<16x256xbf16>
    %201 = vector.extract_strided_slice %139 {offsets = [0, 16], sizes = [16, 256], strides = [1, 1]} : vector<16x324xbf16> to vector<16x256xbf16>
    %c-2_i32_55 = arith.constant -2 : i32
    %202 = vector.broadcast %c-2_i32_55 : i32 to vector<1x256xi32>
    %203 = arith.addi %19, %202 : vector<1x256xi32>
    %c0_i32_56 = arith.constant 0 : i32
    %204 = vector.broadcast %c0_i32_56 : i32 to vector<1x256xi32>
    %205 = arith.cmpi sge, %203, %204 : vector<1x256xi32>
    %c-2_i32_57 = arith.constant -2 : i32
    %206 = vector.broadcast %c-2_i32_57 : i32 to vector<1x256xi32>
    %207 = arith.addi %19, %206 : vector<1x256xi32>
    %c16_i32_58 = arith.constant 16 : i32
    %208 = vector.broadcast %c16_i32_58 : i32 to vector<1x256xi32>
    %209 = arith.cmpi slt, %207, %208 : vector<1x256xi32>
    %210 = arith.andi %205, %209 : vector<1x256xi1>
    %211 = arith.extui %210 : vector<1x256xi1> to vector<1x256xi32>
    %212 = arith.sitofp %211 : vector<1x256xi32> to vector<1x256xf32>
    %213 = arith.truncf %212 : vector<1x256xf32> to vector<1x256xbf16>
    %214 = vector.broadcast %213 : vector<1x256xbf16> to vector<16x256xbf16>
    %215 = arith.mulf %201, %214 : vector<16x256xbf16>
    %216 = vector.extract_strided_slice %139 {offsets = [0, 17], sizes = [16, 256], strides = [1, 1]} : vector<16x324xbf16> to vector<16x256xbf16>
    %c-1_i32_59 = arith.constant -1 : i32
    %217 = vector.broadcast %c-1_i32_59 : i32 to vector<1x256xi32>
    %218 = arith.addi %19, %217 : vector<1x256xi32>
    %c0_i32_60 = arith.constant 0 : i32
    %219 = vector.broadcast %c0_i32_60 : i32 to vector<1x256xi32>
    %220 = arith.cmpi sge, %218, %219 : vector<1x256xi32>
    %c-1_i32_61 = arith.constant -1 : i32
    %221 = vector.broadcast %c-1_i32_61 : i32 to vector<1x256xi32>
    %222 = arith.addi %19, %221 : vector<1x256xi32>
    %c16_i32_62 = arith.constant 16 : i32
    %223 = vector.broadcast %c16_i32_62 : i32 to vector<1x256xi32>
    %224 = arith.cmpi slt, %222, %223 : vector<1x256xi32>
    %225 = arith.andi %220, %224 : vector<1x256xi1>
    %226 = arith.extui %225 : vector<1x256xi1> to vector<1x256xi32>
    %227 = arith.sitofp %226 : vector<1x256xi32> to vector<1x256xf32>
    %228 = arith.truncf %227 : vector<1x256xf32> to vector<1x256xbf16>
    %229 = vector.broadcast %228 : vector<1x256xbf16> to vector<16x256xbf16>
    %230 = arith.mulf %216, %229 : vector<16x256xbf16>
    %231 = vector.extract_strided_slice %139 {offsets = [0, 18], sizes = [16, 256], strides = [1, 1]} : vector<16x324xbf16> to vector<16x256xbf16>
    %232 = vector.extract_strided_slice %139 {offsets = [0, 19], sizes = [16, 256], strides = [1, 1]} : vector<16x324xbf16> to vector<16x256xbf16>
    %c1_i32_63 = arith.constant 1 : i32
    %233 = vector.broadcast %c1_i32_63 : i32 to vector<1x256xi32>
    %234 = arith.addi %19, %233 : vector<1x256xi32>
    %c0_i32_64 = arith.constant 0 : i32
    %235 = vector.broadcast %c0_i32_64 : i32 to vector<1x256xi32>
    %236 = arith.cmpi sge, %234, %235 : vector<1x256xi32>
    %c1_i32_65 = arith.constant 1 : i32
    %237 = vector.broadcast %c1_i32_65 : i32 to vector<1x256xi32>
    %238 = arith.addi %19, %237 : vector<1x256xi32>
    %c16_i32_66 = arith.constant 16 : i32
    %239 = vector.broadcast %c16_i32_66 : i32 to vector<1x256xi32>
    %240 = arith.cmpi slt, %238, %239 : vector<1x256xi32>
    %241 = arith.andi %236, %240 : vector<1x256xi1>
    %242 = arith.extui %241 : vector<1x256xi1> to vector<1x256xi32>
    %243 = arith.sitofp %242 : vector<1x256xi32> to vector<1x256xf32>
    %244 = arith.truncf %243 : vector<1x256xf32> to vector<1x256xbf16>
    %245 = vector.broadcast %244 : vector<1x256xbf16> to vector<16x256xbf16>
    %246 = arith.mulf %232, %245 : vector<16x256xbf16>
    %247 = vector.extract_strided_slice %139 {offsets = [0, 20], sizes = [16, 256], strides = [1, 1]} : vector<16x324xbf16> to vector<16x256xbf16>
    %c2_i32_67 = arith.constant 2 : i32
    %248 = vector.broadcast %c2_i32_67 : i32 to vector<1x256xi32>
    %249 = arith.addi %19, %248 : vector<1x256xi32>
    %c0_i32_68 = arith.constant 0 : i32
    %250 = vector.broadcast %c0_i32_68 : i32 to vector<1x256xi32>
    %251 = arith.cmpi sge, %249, %250 : vector<1x256xi32>
    %c2_i32_69 = arith.constant 2 : i32
    %252 = vector.broadcast %c2_i32_69 : i32 to vector<1x256xi32>
    %253 = arith.addi %19, %252 : vector<1x256xi32>
    %c16_i32_70 = arith.constant 16 : i32
    %254 = vector.broadcast %c16_i32_70 : i32 to vector<1x256xi32>
    %255 = arith.cmpi slt, %253, %254 : vector<1x256xi32>
    %256 = arith.andi %251, %255 : vector<1x256xi1>
    %257 = arith.extui %256 : vector<1x256xi1> to vector<1x256xi32>
    %258 = arith.sitofp %257 : vector<1x256xi32> to vector<1x256xf32>
    %259 = arith.truncf %258 : vector<1x256xf32> to vector<1x256xbf16>
    %260 = vector.broadcast %259 : vector<1x256xbf16> to vector<16x256xbf16>
    %261 = arith.mulf %247, %260 : vector<16x256xbf16>
    %262 = vector.extract_strided_slice %139 {offsets = [0, 32], sizes = [16, 256], strides = [1, 1]} : vector<16x324xbf16> to vector<16x256xbf16>
    %c-2_i32_71 = arith.constant -2 : i32
    %263 = vector.broadcast %c-2_i32_71 : i32 to vector<1x256xi32>
    %264 = arith.addi %19, %263 : vector<1x256xi32>
    %c0_i32_72 = arith.constant 0 : i32
    %265 = vector.broadcast %c0_i32_72 : i32 to vector<1x256xi32>
    %266 = arith.cmpi sge, %264, %265 : vector<1x256xi32>
    %c-2_i32_73 = arith.constant -2 : i32
    %267 = vector.broadcast %c-2_i32_73 : i32 to vector<1x256xi32>
    %268 = arith.addi %19, %267 : vector<1x256xi32>
    %c16_i32_74 = arith.constant 16 : i32
    %269 = vector.broadcast %c16_i32_74 : i32 to vector<1x256xi32>
    %270 = arith.cmpi slt, %268, %269 : vector<1x256xi32>
    %271 = arith.andi %266, %270 : vector<1x256xi1>
    %272 = arith.extui %271 : vector<1x256xi1> to vector<1x256xi32>
    %273 = arith.sitofp %272 : vector<1x256xi32> to vector<1x256xf32>
    %274 = arith.truncf %273 : vector<1x256xf32> to vector<1x256xbf16>
    %275 = vector.broadcast %274 : vector<1x256xbf16> to vector<16x256xbf16>
    %276 = arith.mulf %262, %275 : vector<16x256xbf16>
    %277 = vector.extract_strided_slice %139 {offsets = [0, 33], sizes = [16, 256], strides = [1, 1]} : vector<16x324xbf16> to vector<16x256xbf16>
    %c-1_i32_75 = arith.constant -1 : i32
    %278 = vector.broadcast %c-1_i32_75 : i32 to vector<1x256xi32>
    %279 = arith.addi %19, %278 : vector<1x256xi32>
    %c0_i32_76 = arith.constant 0 : i32
    %280 = vector.broadcast %c0_i32_76 : i32 to vector<1x256xi32>
    %281 = arith.cmpi sge, %279, %280 : vector<1x256xi32>
    %c-1_i32_77 = arith.constant -1 : i32
    %282 = vector.broadcast %c-1_i32_77 : i32 to vector<1x256xi32>
    %283 = arith.addi %19, %282 : vector<1x256xi32>
    %c16_i32_78 = arith.constant 16 : i32
    %284 = vector.broadcast %c16_i32_78 : i32 to vector<1x256xi32>
    %285 = arith.cmpi slt, %283, %284 : vector<1x256xi32>
    %286 = arith.andi %281, %285 : vector<1x256xi1>
    %287 = arith.extui %286 : vector<1x256xi1> to vector<1x256xi32>
    %288 = arith.sitofp %287 : vector<1x256xi32> to vector<1x256xf32>
    %289 = arith.truncf %288 : vector<1x256xf32> to vector<1x256xbf16>
    %290 = vector.broadcast %289 : vector<1x256xbf16> to vector<16x256xbf16>
    %291 = arith.mulf %277, %290 : vector<16x256xbf16>
    %292 = vector.extract_strided_slice %139 {offsets = [0, 34], sizes = [16, 256], strides = [1, 1]} : vector<16x324xbf16> to vector<16x256xbf16>
    %293 = vector.extract_strided_slice %139 {offsets = [0, 35], sizes = [16, 256], strides = [1, 1]} : vector<16x324xbf16> to vector<16x256xbf16>
    %c1_i32_79 = arith.constant 1 : i32
    %294 = vector.broadcast %c1_i32_79 : i32 to vector<1x256xi32>
    %295 = arith.addi %19, %294 : vector<1x256xi32>
    %c0_i32_80 = arith.constant 0 : i32
    %296 = vector.broadcast %c0_i32_80 : i32 to vector<1x256xi32>
    %297 = arith.cmpi sge, %295, %296 : vector<1x256xi32>
    %c1_i32_81 = arith.constant 1 : i32
    %298 = vector.broadcast %c1_i32_81 : i32 to vector<1x256xi32>
    %299 = arith.addi %19, %298 : vector<1x256xi32>
    %c16_i32_82 = arith.constant 16 : i32
    %300 = vector.broadcast %c16_i32_82 : i32 to vector<1x256xi32>
    %301 = arith.cmpi slt, %299, %300 : vector<1x256xi32>
    %302 = arith.andi %297, %301 : vector<1x256xi1>
    %303 = arith.extui %302 : vector<1x256xi1> to vector<1x256xi32>
    %304 = arith.sitofp %303 : vector<1x256xi32> to vector<1x256xf32>
    %305 = arith.truncf %304 : vector<1x256xf32> to vector<1x256xbf16>
    %306 = vector.broadcast %305 : vector<1x256xbf16> to vector<16x256xbf16>
    %307 = arith.mulf %293, %306 : vector<16x256xbf16>
    %308 = vector.extract_strided_slice %139 {offsets = [0, 36], sizes = [16, 256], strides = [1, 1]} : vector<16x324xbf16> to vector<16x256xbf16>
    %c2_i32_83 = arith.constant 2 : i32
    %309 = vector.broadcast %c2_i32_83 : i32 to vector<1x256xi32>
    %310 = arith.addi %19, %309 : vector<1x256xi32>
    %c0_i32_84 = arith.constant 0 : i32
    %311 = vector.broadcast %c0_i32_84 : i32 to vector<1x256xi32>
    %312 = arith.cmpi sge, %310, %311 : vector<1x256xi32>
    %c2_i32_85 = arith.constant 2 : i32
    %313 = vector.broadcast %c2_i32_85 : i32 to vector<1x256xi32>
    %314 = arith.addi %19, %313 : vector<1x256xi32>
    %c16_i32_86 = arith.constant 16 : i32
    %315 = vector.broadcast %c16_i32_86 : i32 to vector<1x256xi32>
    %316 = arith.cmpi slt, %314, %315 : vector<1x256xi32>
    %317 = arith.andi %312, %316 : vector<1x256xi1>
    %318 = arith.extui %317 : vector<1x256xi1> to vector<1x256xi32>
    %319 = arith.sitofp %318 : vector<1x256xi32> to vector<1x256xf32>
    %320 = arith.truncf %319 : vector<1x256xf32> to vector<1x256xbf16>
    %321 = vector.broadcast %320 : vector<1x256xbf16> to vector<16x256xbf16>
    %322 = arith.mulf %308, %321 : vector<16x256xbf16>
    %323 = vector.extract_strided_slice %139 {offsets = [0, 48], sizes = [16, 256], strides = [1, 1]} : vector<16x324xbf16> to vector<16x256xbf16>
    %c-2_i32_87 = arith.constant -2 : i32
    %324 = vector.broadcast %c-2_i32_87 : i32 to vector<1x256xi32>
    %325 = arith.addi %19, %324 : vector<1x256xi32>
    %c0_i32_88 = arith.constant 0 : i32
    %326 = vector.broadcast %c0_i32_88 : i32 to vector<1x256xi32>
    %327 = arith.cmpi sge, %325, %326 : vector<1x256xi32>
    %c-2_i32_89 = arith.constant -2 : i32
    %328 = vector.broadcast %c-2_i32_89 : i32 to vector<1x256xi32>
    %329 = arith.addi %19, %328 : vector<1x256xi32>
    %c16_i32_90 = arith.constant 16 : i32
    %330 = vector.broadcast %c16_i32_90 : i32 to vector<1x256xi32>
    %331 = arith.cmpi slt, %329, %330 : vector<1x256xi32>
    %332 = arith.andi %327, %331 : vector<1x256xi1>
    %333 = arith.extui %332 : vector<1x256xi1> to vector<1x256xi32>
    %334 = arith.sitofp %333 : vector<1x256xi32> to vector<1x256xf32>
    %335 = arith.truncf %334 : vector<1x256xf32> to vector<1x256xbf16>
    %336 = vector.broadcast %335 : vector<1x256xbf16> to vector<16x256xbf16>
    %337 = arith.mulf %323, %336 : vector<16x256xbf16>
    %338 = vector.extract_strided_slice %139 {offsets = [0, 49], sizes = [16, 256], strides = [1, 1]} : vector<16x324xbf16> to vector<16x256xbf16>
    %c-1_i32_91 = arith.constant -1 : i32
    %339 = vector.broadcast %c-1_i32_91 : i32 to vector<1x256xi32>
    %340 = arith.addi %19, %339 : vector<1x256xi32>
    %c0_i32_92 = arith.constant 0 : i32
    %341 = vector.broadcast %c0_i32_92 : i32 to vector<1x256xi32>
    %342 = arith.cmpi sge, %340, %341 : vector<1x256xi32>
    %c-1_i32_93 = arith.constant -1 : i32
    %343 = vector.broadcast %c-1_i32_93 : i32 to vector<1x256xi32>
    %344 = arith.addi %19, %343 : vector<1x256xi32>
    %c16_i32_94 = arith.constant 16 : i32
    %345 = vector.broadcast %c16_i32_94 : i32 to vector<1x256xi32>
    %346 = arith.cmpi slt, %344, %345 : vector<1x256xi32>
    %347 = arith.andi %342, %346 : vector<1x256xi1>
    %348 = arith.extui %347 : vector<1x256xi1> to vector<1x256xi32>
    %349 = arith.sitofp %348 : vector<1x256xi32> to vector<1x256xf32>
    %350 = arith.truncf %349 : vector<1x256xf32> to vector<1x256xbf16>
    %351 = vector.broadcast %350 : vector<1x256xbf16> to vector<16x256xbf16>
    %352 = arith.mulf %338, %351 : vector<16x256xbf16>
    %353 = vector.extract_strided_slice %139 {offsets = [0, 50], sizes = [16, 256], strides = [1, 1]} : vector<16x324xbf16> to vector<16x256xbf16>
    %354 = vector.extract_strided_slice %139 {offsets = [0, 51], sizes = [16, 256], strides = [1, 1]} : vector<16x324xbf16> to vector<16x256xbf16>
    %c1_i32_95 = arith.constant 1 : i32
    %355 = vector.broadcast %c1_i32_95 : i32 to vector<1x256xi32>
    %356 = arith.addi %19, %355 : vector<1x256xi32>
    %c0_i32_96 = arith.constant 0 : i32
    %357 = vector.broadcast %c0_i32_96 : i32 to vector<1x256xi32>
    %358 = arith.cmpi sge, %356, %357 : vector<1x256xi32>
    %c1_i32_97 = arith.constant 1 : i32
    %359 = vector.broadcast %c1_i32_97 : i32 to vector<1x256xi32>
    %360 = arith.addi %19, %359 : vector<1x256xi32>
    %c16_i32_98 = arith.constant 16 : i32
    %361 = vector.broadcast %c16_i32_98 : i32 to vector<1x256xi32>
    %362 = arith.cmpi slt, %360, %361 : vector<1x256xi32>
    %363 = arith.andi %358, %362 : vector<1x256xi1>
    %364 = arith.extui %363 : vector<1x256xi1> to vector<1x256xi32>
    %365 = arith.sitofp %364 : vector<1x256xi32> to vector<1x256xf32>
    %366 = arith.truncf %365 : vector<1x256xf32> to vector<1x256xbf16>
    %367 = vector.broadcast %366 : vector<1x256xbf16> to vector<16x256xbf16>
    %368 = arith.mulf %354, %367 : vector<16x256xbf16>
    %369 = vector.extract_strided_slice %139 {offsets = [0, 52], sizes = [16, 256], strides = [1, 1]} : vector<16x324xbf16> to vector<16x256xbf16>
    %c2_i32_99 = arith.constant 2 : i32
    %370 = vector.broadcast %c2_i32_99 : i32 to vector<1x256xi32>
    %371 = arith.addi %19, %370 : vector<1x256xi32>
    %c0_i32_100 = arith.constant 0 : i32
    %372 = vector.broadcast %c0_i32_100 : i32 to vector<1x256xi32>
    %373 = arith.cmpi sge, %371, %372 : vector<1x256xi32>
    %c2_i32_101 = arith.constant 2 : i32
    %374 = vector.broadcast %c2_i32_101 : i32 to vector<1x256xi32>
    %375 = arith.addi %19, %374 : vector<1x256xi32>
    %c16_i32_102 = arith.constant 16 : i32
    %376 = vector.broadcast %c16_i32_102 : i32 to vector<1x256xi32>
    %377 = arith.cmpi slt, %375, %376 : vector<1x256xi32>
    %378 = arith.andi %373, %377 : vector<1x256xi1>
    %379 = arith.extui %378 : vector<1x256xi1> to vector<1x256xi32>
    %380 = arith.sitofp %379 : vector<1x256xi32> to vector<1x256xf32>
    %381 = arith.truncf %380 : vector<1x256xf32> to vector<1x256xbf16>
    %382 = vector.broadcast %381 : vector<1x256xbf16> to vector<16x256xbf16>
    %383 = arith.mulf %369, %382 : vector<16x256xbf16>
    %384 = vector.extract_strided_slice %139 {offsets = [0, 64], sizes = [16, 256], strides = [1, 1]} : vector<16x324xbf16> to vector<16x256xbf16>
    %c-2_i32_103 = arith.constant -2 : i32
    %385 = vector.broadcast %c-2_i32_103 : i32 to vector<1x256xi32>
    %386 = arith.addi %19, %385 : vector<1x256xi32>
    %c0_i32_104 = arith.constant 0 : i32
    %387 = vector.broadcast %c0_i32_104 : i32 to vector<1x256xi32>
    %388 = arith.cmpi sge, %386, %387 : vector<1x256xi32>
    %c-2_i32_105 = arith.constant -2 : i32
    %389 = vector.broadcast %c-2_i32_105 : i32 to vector<1x256xi32>
    %390 = arith.addi %19, %389 : vector<1x256xi32>
    %c16_i32_106 = arith.constant 16 : i32
    %391 = vector.broadcast %c16_i32_106 : i32 to vector<1x256xi32>
    %392 = arith.cmpi slt, %390, %391 : vector<1x256xi32>
    %393 = arith.andi %388, %392 : vector<1x256xi1>
    %394 = arith.extui %393 : vector<1x256xi1> to vector<1x256xi32>
    %395 = arith.sitofp %394 : vector<1x256xi32> to vector<1x256xf32>
    %396 = arith.truncf %395 : vector<1x256xf32> to vector<1x256xbf16>
    %397 = vector.broadcast %396 : vector<1x256xbf16> to vector<16x256xbf16>
    %398 = arith.mulf %384, %397 : vector<16x256xbf16>
    %399 = vector.extract_strided_slice %139 {offsets = [0, 65], sizes = [16, 256], strides = [1, 1]} : vector<16x324xbf16> to vector<16x256xbf16>
    %c-1_i32_107 = arith.constant -1 : i32
    %400 = vector.broadcast %c-1_i32_107 : i32 to vector<1x256xi32>
    %401 = arith.addi %19, %400 : vector<1x256xi32>
    %c0_i32_108 = arith.constant 0 : i32
    %402 = vector.broadcast %c0_i32_108 : i32 to vector<1x256xi32>
    %403 = arith.cmpi sge, %401, %402 : vector<1x256xi32>
    %c-1_i32_109 = arith.constant -1 : i32
    %404 = vector.broadcast %c-1_i32_109 : i32 to vector<1x256xi32>
    %405 = arith.addi %19, %404 : vector<1x256xi32>
    %c16_i32_110 = arith.constant 16 : i32
    %406 = vector.broadcast %c16_i32_110 : i32 to vector<1x256xi32>
    %407 = arith.cmpi slt, %405, %406 : vector<1x256xi32>
    %408 = arith.andi %403, %407 : vector<1x256xi1>
    %409 = arith.extui %408 : vector<1x256xi1> to vector<1x256xi32>
    %410 = arith.sitofp %409 : vector<1x256xi32> to vector<1x256xf32>
    %411 = arith.truncf %410 : vector<1x256xf32> to vector<1x256xbf16>
    %412 = vector.broadcast %411 : vector<1x256xbf16> to vector<16x256xbf16>
    %413 = arith.mulf %399, %412 : vector<16x256xbf16>
    %414 = vector.extract_strided_slice %139 {offsets = [0, 66], sizes = [16, 256], strides = [1, 1]} : vector<16x324xbf16> to vector<16x256xbf16>
    %415 = vector.extract_strided_slice %139 {offsets = [0, 67], sizes = [16, 256], strides = [1, 1]} : vector<16x324xbf16> to vector<16x256xbf16>
    %c1_i32_111 = arith.constant 1 : i32
    %416 = vector.broadcast %c1_i32_111 : i32 to vector<1x256xi32>
    %417 = arith.addi %19, %416 : vector<1x256xi32>
    %c0_i32_112 = arith.constant 0 : i32
    %418 = vector.broadcast %c0_i32_112 : i32 to vector<1x256xi32>
    %419 = arith.cmpi sge, %417, %418 : vector<1x256xi32>
    %c1_i32_113 = arith.constant 1 : i32
    %420 = vector.broadcast %c1_i32_113 : i32 to vector<1x256xi32>
    %421 = arith.addi %19, %420 : vector<1x256xi32>
    %c16_i32_114 = arith.constant 16 : i32
    %422 = vector.broadcast %c16_i32_114 : i32 to vector<1x256xi32>
    %423 = arith.cmpi slt, %421, %422 : vector<1x256xi32>
    %424 = arith.andi %419, %423 : vector<1x256xi1>
    %425 = arith.extui %424 : vector<1x256xi1> to vector<1x256xi32>
    %426 = arith.sitofp %425 : vector<1x256xi32> to vector<1x256xf32>
    %427 = arith.truncf %426 : vector<1x256xf32> to vector<1x256xbf16>
    %428 = vector.broadcast %427 : vector<1x256xbf16> to vector<16x256xbf16>
    %429 = arith.mulf %415, %428 : vector<16x256xbf16>
    %430 = vector.extract_strided_slice %139 {offsets = [0, 68], sizes = [16, 256], strides = [1, 1]} : vector<16x324xbf16> to vector<16x256xbf16>
    %c2_i32_115 = arith.constant 2 : i32
    %431 = vector.broadcast %c2_i32_115 : i32 to vector<1x256xi32>
    %432 = arith.addi %19, %431 : vector<1x256xi32>
    %c0_i32_116 = arith.constant 0 : i32
    %433 = vector.broadcast %c0_i32_116 : i32 to vector<1x256xi32>
    %434 = arith.cmpi sge, %432, %433 : vector<1x256xi32>
    %c2_i32_117 = arith.constant 2 : i32
    %435 = vector.broadcast %c2_i32_117 : i32 to vector<1x256xi32>
    %436 = arith.addi %19, %435 : vector<1x256xi32>
    %c16_i32_118 = arith.constant 16 : i32
    %437 = vector.broadcast %c16_i32_118 : i32 to vector<1x256xi32>
    %438 = arith.cmpi slt, %436, %437 : vector<1x256xi32>
    %439 = arith.andi %434, %438 : vector<1x256xi1>
    %440 = arith.extui %439 : vector<1x256xi1> to vector<1x256xi32>
    %441 = arith.sitofp %440 : vector<1x256xi32> to vector<1x256xf32>
    %442 = arith.truncf %441 : vector<1x256xf32> to vector<1x256xbf16>
    %443 = vector.broadcast %442 : vector<1x256xbf16> to vector<16x256xbf16>
    %444 = arith.mulf %430, %443 : vector<16x256xbf16>
    %445 = tpu.concatenate %154, %169, %170, %185, %200, %215, %230, %231, %246, %261, %276, %291, %292, %307, %322, %337 in 0 : vector<16x256xbf16>, vector<16x256xbf16>, vector<16x256xbf16>, vector<16x256xbf16>, vector<16x256xbf16>, vector<16x256xbf16>, vector<16x256xbf16>, vector<16x256xbf16>, vector<16x256xbf16>, vector<16x256xbf16>, vector<16x256xbf16>, vector<16x256xbf16>, vector<16x256xbf16>, vector<16x256xbf16>, vector<16x256xbf16>, vector<16x256xbf16> -> vector<256x256xbf16>
    %446 = tpu.concatenate %352, %353, %368, %383, %398, %413, %414, %429, %444 in 0 : vector<16x256xbf16>, vector<16x256xbf16>, vector<16x256xbf16>, vector<16x256xbf16>, vector<16x256xbf16>, vector<16x256xbf16>, vector<16x256xbf16>, vector<16x256xbf16>, vector<16x256xbf16> -> vector<144x256xbf16>
    %447 = tpu.concatenate %445, %446 in 0 : vector<256x256xbf16>, vector<144x256xbf16> -> vector<400x256xbf16>
    %c0_119 = arith.constant 0 : index
    %c0_120 = arith.constant 0 : index
    %448 = vector.load %arg6[%c0_119, %c0_120] : memref<16x400xbf16, #tpu.memory_space<vmem>>, vector<16x400xbf16>
    %cst_121 = arith.constant dense<0.000000e+00> : vector<16x256xf32>
    %449 = tpu.matmul %448, %447, %cst_121 {dimension_numbers = #tpu.dot_dimension_numbers<[1], [0], [0], [1], [0, 0, 1, 1], [], []>} : vector<16x400xbf16>, vector<400x256xbf16>, vector<16x256xf32> -> vector<16x256xf32>
    %c0_122 = arith.constant 0 : index
    %c0_123 = arith.constant 0 : index
    %450 = vector.load %arg7[%c0_122, %c0_123] : memref<16x1xf32, #tpu.memory_space<vmem>>, vector<16x1xf32>
    %451 = vector.broadcast %450 : vector<16x1xf32> to vector<16x256xf32>
    %452 = arith.addf %449, %451 : vector<16x256xf32>
    %cst_124 = arith.constant 2.000000e-01 : f32
    %453 = vector.broadcast %cst_124 : f32 to vector<16x256xf32>
    %454 = arith.mulf %453, %452 : vector<16x256xf32>
    %455 = arith.maximumf %452, %454 : vector<16x256xf32>
    %456 = vector.extract_strided_slice %21 {offsets = [48, 0], sizes = [16, 256], strides = [1, 1]} : vector<64x256xf32> to vector<16x256xf32>
    %cst_125 = arith.constant 0.000000e+00 : f32
    %457 = vector.broadcast %cst_125 : f32 to vector<16x17xf32>
    %458 = tpu.concatenate %457, %456, %457 in 1 : vector<16x17xf32>, vector<16x256xf32>, vector<16x17xf32> -> vector<16x290xf32>
    %459 = vector.extract_strided_slice %458 {offsets = [0, 0], sizes = [16, 256], strides = [1, 1]} : vector<16x290xf32> to vector<16x256xf32>
    %c-1_i32_126 = arith.constant -1 : i32
    %460 = vector.broadcast %c-1_i32_126 : i32 to vector<1x256xi32>
    %461 = arith.addi %19, %460 : vector<1x256xi32>
    %c0_i32_127 = arith.constant 0 : i32
    %462 = vector.broadcast %c0_i32_127 : i32 to vector<1x256xi32>
    %463 = arith.cmpi sge, %461, %462 : vector<1x256xi32>
    %c-1_i32_128 = arith.constant -1 : i32
    %464 = vector.broadcast %c-1_i32_128 : i32 to vector<1x256xi32>
    %465 = arith.addi %19, %464 : vector<1x256xi32>
    %c16_i32_129 = arith.constant 16 : i32
    %466 = vector.broadcast %c16_i32_129 : i32 to vector<1x256xi32>
    %467 = arith.cmpi slt, %465, %466 : vector<1x256xi32>
    %468 = arith.andi %463, %467 : vector<1x256xi1>
    %469 = arith.extui %468 : vector<1x256xi1> to vector<1x256xi32>
    %470 = arith.sitofp %469 : vector<1x256xi32> to vector<1x256xf32>
    %471 = vector.broadcast %470 : vector<1x256xf32> to vector<16x256xf32>
    %472 = arith.mulf %459, %471 : vector<16x256xf32>
    %473 = vector.extract_strided_slice %458 {offsets = [0, 1], sizes = [16, 256], strides = [1, 1]} : vector<16x290xf32> to vector<16x256xf32>
    %474 = vector.extract_strided_slice %458 {offsets = [0, 2], sizes = [16, 256], strides = [1, 1]} : vector<16x290xf32> to vector<16x256xf32>
    %c1_i32_130 = arith.constant 1 : i32
    %475 = vector.broadcast %c1_i32_130 : i32 to vector<1x256xi32>
    %476 = arith.addi %19, %475 : vector<1x256xi32>
    %c0_i32_131 = arith.constant 0 : i32
    %477 = vector.broadcast %c0_i32_131 : i32 to vector<1x256xi32>
    %478 = arith.cmpi sge, %476, %477 : vector<1x256xi32>
    %c1_i32_132 = arith.constant 1 : i32
    %479 = vector.broadcast %c1_i32_132 : i32 to vector<1x256xi32>
    %480 = arith.addi %19, %479 : vector<1x256xi32>
    %c16_i32_133 = arith.constant 16 : i32
    %481 = vector.broadcast %c16_i32_133 : i32 to vector<1x256xi32>
    %482 = arith.cmpi slt, %480, %481 : vector<1x256xi32>
    %483 = arith.andi %478, %482 : vector<1x256xi1>
    %484 = arith.extui %483 : vector<1x256xi1> to vector<1x256xi32>
    %485 = arith.sitofp %484 : vector<1x256xi32> to vector<1x256xf32>
    %486 = vector.broadcast %485 : vector<1x256xf32> to vector<16x256xf32>
    %487 = arith.mulf %474, %486 : vector<16x256xf32>
    %488 = vector.extract_strided_slice %458 {offsets = [0, 16], sizes = [16, 256], strides = [1, 1]} : vector<16x290xf32> to vector<16x256xf32>
    %c-1_i32_134 = arith.constant -1 : i32
    %489 = vector.broadcast %c-1_i32_134 : i32 to vector<1x256xi32>
    %490 = arith.addi %19, %489 : vector<1x256xi32>
    %c0_i32_135 = arith.constant 0 : i32
    %491 = vector.broadcast %c0_i32_135 : i32 to vector<1x256xi32>
    %492 = arith.cmpi sge, %490, %491 : vector<1x256xi32>
    %c-1_i32_136 = arith.constant -1 : i32
    %493 = vector.broadcast %c-1_i32_136 : i32 to vector<1x256xi32>
    %494 = arith.addi %19, %493 : vector<1x256xi32>
    %c16_i32_137 = arith.constant 16 : i32
    %495 = vector.broadcast %c16_i32_137 : i32 to vector<1x256xi32>
    %496 = arith.cmpi slt, %494, %495 : vector<1x256xi32>
    %497 = arith.andi %492, %496 : vector<1x256xi1>
    %498 = arith.extui %497 : vector<1x256xi1> to vector<1x256xi32>
    %499 = arith.sitofp %498 : vector<1x256xi32> to vector<1x256xf32>
    %500 = vector.broadcast %499 : vector<1x256xf32> to vector<16x256xf32>
    %501 = arith.mulf %488, %500 : vector<16x256xf32>
    %502 = vector.extract_strided_slice %458 {offsets = [0, 17], sizes = [16, 256], strides = [1, 1]} : vector<16x290xf32> to vector<16x256xf32>
    %503 = vector.extract_strided_slice %458 {offsets = [0, 18], sizes = [16, 256], strides = [1, 1]} : vector<16x290xf32> to vector<16x256xf32>
    %c1_i32_138 = arith.constant 1 : i32
    %504 = vector.broadcast %c1_i32_138 : i32 to vector<1x256xi32>
    %505 = arith.addi %19, %504 : vector<1x256xi32>
    %c0_i32_139 = arith.constant 0 : i32
    %506 = vector.broadcast %c0_i32_139 : i32 to vector<1x256xi32>
    %507 = arith.cmpi sge, %505, %506 : vector<1x256xi32>
    %c1_i32_140 = arith.constant 1 : i32
    %508 = vector.broadcast %c1_i32_140 : i32 to vector<1x256xi32>
    %509 = arith.addi %19, %508 : vector<1x256xi32>
    %c16_i32_141 = arith.constant 16 : i32
    %510 = vector.broadcast %c16_i32_141 : i32 to vector<1x256xi32>
    %511 = arith.cmpi slt, %509, %510 : vector<1x256xi32>
    %512 = arith.andi %507, %511 : vector<1x256xi1>
    %513 = arith.extui %512 : vector<1x256xi1> to vector<1x256xi32>
    %514 = arith.sitofp %513 : vector<1x256xi32> to vector<1x256xf32>
    %515 = vector.broadcast %514 : vector<1x256xf32> to vector<16x256xf32>
    %516 = arith.mulf %503, %515 : vector<16x256xf32>
    %517 = vector.extract_strided_slice %458 {offsets = [0, 32], sizes = [16, 256], strides = [1, 1]} : vector<16x290xf32> to vector<16x256xf32>
    %c-1_i32_142 = arith.constant -1 : i32
    %518 = vector.broadcast %c-1_i32_142 : i32 to vector<1x256xi32>
    %519 = arith.addi %19, %518 : vector<1x256xi32>
    %c0_i32_143 = arith.constant 0 : i32
    %520 = vector.broadcast %c0_i32_143 : i32 to vector<1x256xi32>
    %521 = arith.cmpi sge, %519, %520 : vector<1x256xi32>
    %c-1_i32_144 = arith.constant -1 : i32
    %522 = vector.broadcast %c-1_i32_144 : i32 to vector<1x256xi32>
    %523 = arith.addi %19, %522 : vector<1x256xi32>
    %c16_i32_145 = arith.constant 16 : i32
    %524 = vector.broadcast %c16_i32_145 : i32 to vector<1x256xi32>
    %525 = arith.cmpi slt, %523, %524 : vector<1x256xi32>
    %526 = arith.andi %521, %525 : vector<1x256xi1>
    %527 = arith.extui %526 : vector<1x256xi1> to vector<1x256xi32>
    %528 = arith.sitofp %527 : vector<1x256xi32> to vector<1x256xf32>
    %529 = vector.broadcast %528 : vector<1x256xf32> to vector<16x256xf32>
    %530 = arith.mulf %517, %529 : vector<16x256xf32>
    %531 = vector.extract_strided_slice %458 {offsets = [0, 33], sizes = [16, 256], strides = [1, 1]} : vector<16x290xf32> to vector<16x256xf32>
    %532 = vector.extract_strided_slice %458 {offsets = [0, 34], sizes = [16, 256], strides = [1, 1]} : vector<16x290xf32> to vector<16x256xf32>
    %c1_i32_146 = arith.constant 1 : i32
    %533 = vector.broadcast %c1_i32_146 : i32 to vector<1x256xi32>
    %534 = arith.addi %19, %533 : vector<1x256xi32>
    %c0_i32_147 = arith.constant 0 : i32
    %535 = vector.broadcast %c0_i32_147 : i32 to vector<1x256xi32>
    %536 = arith.cmpi sge, %534, %535 : vector<1x256xi32>
    %c1_i32_148 = arith.constant 1 : i32
    %537 = vector.broadcast %c1_i32_148 : i32 to vector<1x256xi32>
    %538 = arith.addi %19, %537 : vector<1x256xi32>
    %c16_i32_149 = arith.constant 16 : i32
    %539 = vector.broadcast %c16_i32_149 : i32 to vector<1x256xi32>
    %540 = arith.cmpi slt, %538, %539 : vector<1x256xi32>
    %541 = arith.andi %536, %540 : vector<1x256xi1>
    %542 = arith.extui %541 : vector<1x256xi1> to vector<1x256xi32>
    %543 = arith.sitofp %542 : vector<1x256xi32> to vector<1x256xf32>
    %544 = vector.broadcast %543 : vector<1x256xf32> to vector<16x256xf32>
    %545 = arith.mulf %532, %544 : vector<16x256xf32>
    %546 = arith.addf %472, %473 : vector<16x256xf32>
    %547 = arith.addf %546, %487 : vector<16x256xf32>
    %548 = arith.addf %547, %501 : vector<16x256xf32>
    %549 = arith.addf %548, %502 : vector<16x256xf32>
    %550 = arith.addf %549, %516 : vector<16x256xf32>
    %551 = arith.addf %550, %530 : vector<16x256xf32>
    %552 = arith.addf %551, %531 : vector<16x256xf32>
    %553 = arith.addf %552, %545 : vector<16x256xf32>
    %c48 = arith.constant 48 : index
    %c0_150 = arith.constant 0 : index
    %554 = vector.load %arg3[%c48, %c0_150] : memref<64x1xf32, #tpu.memory_space<vmem>>, vector<16x1xf32>
    %555 = vector.broadcast %554 : vector<16x1xf32> to vector<16x256xf32>
    %556 = arith.addf %553, %555 : vector<16x256xf32>
    %cst_151 = arith.constant 2.000000e-01 : f32
    %557 = vector.broadcast %cst_151 : f32 to vector<16x256xf32>
    %558 = arith.mulf %557, %556 : vector<16x256xf32>
    %559 = arith.maximumf %556, %558 : vector<16x256xf32>
    %560 = tpu.concatenate %29, %135, %455, %559 in 0 : vector<16x256xf32>, vector<16x256xf32>, vector<16x256xf32>, vector<16x256xf32> -> vector<64x256xf32>
    %c0_152 = arith.constant 0 : index
    %c0_153 = arith.constant 0 : index
    %c0_154 = arith.constant 0 : index
    %561 = vector.load %arg8[%c0_152, %c0_153, %c0_154] : memref<1x64x256xf32, #tpu.memory_space<vmem>>, vector<1x64x256xf32>
    %562 = vector.shape_cast %561 : vector<1x64x256xf32> to vector<64x256xf32>
    %563 = vector.shape_cast %560 : vector<64x256xf32> to vector<1x64x256xf32>
    tpu.vector_store %arg8[%c0_152, %c0_153, %c0_154], %563 {strides = array<i32>} : memref<1x64x256xf32, #tpu.memory_space<vmem>>, vector<1x64x256xf32>,
    return
  }
  func.func @transform_0(%arg0: i32) -> (i32, i32, i32) {
    %c0_i32 = arith.constant 0 : i32
    %c0_i32_0 = arith.constant 0 : i32
    %c0_i32_1 = arith.constant 0 : i32
    return %arg0, %c0_i32, %c0_i32_0 : i32, i32, i32
  }
  func.func @transform_1(%arg0: i32) -> (i32, i32) {
    %c0_i32 = arith.constant 0 : i32
    %c0_i32_0 = arith.constant 0 : i32
    %c0_i32_1 = arith.constant 0 : i32
    return %c0_i32, %c0_i32_0 : i32, i32
  }
  func.func @transform_2(%arg0: i32) -> (i32, i32) {
    %c0_i32 = arith.constant 0 : i32
    %c0_i32_0 = arith.constant 0 : i32
    %c0_i32_1 = arith.constant 0 : i32
    return %c0_i32, %c0_i32_0 : i32, i32
  }
  func.func @transform_3(%arg0: i32) -> (i32, i32) {
    %c0_i32 = arith.constant 0 : i32
    %c0_i32_0 = arith.constant 0 : i32
    %c0_i32_1 = arith.constant 0 : i32
    return %c0_i32, %c0_i32_0 : i32, i32
  }
  func.func @transform_4(%arg0: i32) -> (i32, i32) {
    %c0_i32 = arith.constant 0 : i32
    %c0_i32_0 = arith.constant 0 : i32
    %c0_i32_1 = arith.constant 0 : i32
    return %c0_i32, %c0_i32_0 : i32, i32
  }
  func.func @transform_5(%arg0: i32) -> (i32, i32) {
    %c0_i32 = arith.constant 0 : i32
    %c0_i32_0 = arith.constant 0 : i32
    %c0_i32_1 = arith.constant 0 : i32
    return %c0_i32, %c0_i32_0 : i32, i32
  }
  func.func @transform_6(%arg0: i32) -> (i32, i32) {
    %c0_i32 = arith.constant 0 : i32
    %c0_i32_0 = arith.constant 0 : i32
    %c0_i32_1 = arith.constant 0 : i32
    return %c0_i32, %c0_i32_0 : i32, i32
  }
  func.func @transform_7(%arg0: i32) -> (i32, i32, i32) {
    %c0_i32 = arith.constant 0 : i32
    %c0_i32_0 = arith.constant 0 : i32
    %c0_i32_1 = arith.constant 0 : i32
    return %arg0, %c0_i32, %c0_i32_0 : i32, i32, i32
  }
}

</mosaic_0001>

<bundles_post_ra>
// kernel: inception_a_forward.1
= control target key start
LH: loop header
LB: loop body
LE: loop exit
PB: predicated region body
PF: predicated region fallthrough
CT: control target
= control target key end

     0   :  { %s2879_s24 = smov 0   ;;  %s4049_s0 = inlined_call_operand.vmem [shape: f32[2,64,256], index: 0, kind: input, shape index: {}]   ;;  %s4050_s1 = inlined_call_operand.vmem [shape: bf16[64,64], index: 1, kind: input, shape index: {}]   ;;  %s4051_s2 = inlined_call_operand.vmem [shape: f32[64,1], index: 2, kind: input, shape index: {}]   ;;  %s4052_s3 = inlined_call_operand.vmem [shape: bf16[16,144], index: 3, kind: input, shape index: {}]   ;;  %s4053_s4 = inlined_call_operand.vmem [shape: f32[16,1], index: 4, kind: input, shape index: {}]   ;;  %s4054_s5 = inlined_call_operand.vmem [shape: bf16[16,400], index: 5, kind: input, shape index: {}]   ;;  %s4055_s6 = inlined_call_operand.vmem [shape: f32[16,1], index: 6, kind: input, shape index: {}]   ;;  %s4056_s7 = inlined_call_operand.vmem [shape: f32[2,64,256], index: 7, kind: output, shape index: {}]  }
   0x1 LB: > { %s2510_s25 = sadd.s32 4294967295, %s2796_s24   ;;  %p2514_p0 = scmp.ge.s32.totalorder %s2796_s24, 1  ;;  %s2796_s24 = sphi %s2879_s24, %s17_s24  }
   0x2   : > { %p237_p1 = scmp.lt.s32.totalorder %s2796_s24, 3 }
   0x4   : > { %p238_p2 = pnand %p2514_p0, %p237_p1 }
   0x6   : > { %241 = sbr.rel (%p238_p2) target bundleno = 1056 (0x420), region = 48 }
   0xb   : > { %p269_p3 = scmp.lt.s32.totalorder %s2510_s25, 1  ;;  %v432_v0 = vld [vmem:[%s4051_s2 + $0x10] sm:$0xff]  ;;  %v304_v1 = vlaneseq  ;;  %v2798_v2 = vmov 0   ;;  %v430_v3 = vld [vmem:[%s4051_s2] sm:$0xff]  ;;  %v433_v7 = vld [vmem:[%s4051_s2 + $0x18] sm:$0xff]  ;;  %v2799_v28 = vmov 0.0  }
   0xc   : > { %2643 = vset.pattern.permute.xlu1 %v2798_v2  ;;  %2642 = vset.pattern.permute.xlu0 %v2798_v2  ;;  %v431_v27 = vld [vmem:[%s4051_s2 + $0x8] sm:$0xff]  ;;  %s2800_s15 = smov 18   ;;  %v2583_v40 = vld [vmem:[%s4050_s1] sm:$0xff]  ;;  %vm359_vm2 = vcmask 523264   ;;  %s2801_s26 = smov 16   ;;  %v2585_v55 = vld [vmem:[%s4050_s1 + $0x10] sm:$0xff] }
   0xd   : > { %s4102_s25 = smov (!%p269_p3, %s2510_s25), 1  ;;  %448 = vperm.xlu1 %2643, %v432_v0   ;;  %438 = vperm.xlu0 %2642, %v430_v3   ;;  %v305_v4 = vand.u32 127, %v304_v1  ;;  %v835_v41 = vld [vmem:[%s4053_s4] sm:$0xff]  ;;  %v435_v53 = vld [vmem:[%s4051_s2 + $0x28] sm:$0xff]  ;;  %s2802_s27 = smov 4   ;;  %vm516_vm9 = vcmask 138240  }
   0xe   : > { %2644 = vset.pattern.permute.xlu2 %v2798_v2  ;;  %s2581_s30 = sshll.u32 %s4102_s25, 7  ;;  %v434_v42 = vld [vmem:[%s4051_s2 + $0x20] sm:$0xff]  ;;  %v2584_v54 = vld [vmem:[%s4050_s1 + $0x8] sm:$0xff]  ;;  %s2803_s8 = smov 34   ;;  %vm4072_vm10 = vcmask 15360   ;;  %vm596_vm11 = vcmask 130048  }
   0xf   : > { %v306_v5 = vadd.s32 128, %v305_v4  ;;  %v2896_v6 = vand.u32 15, %v305_v4  ;;  %s2903_s10 = scalar_lea.vmem %s4049_s0, %s2581_s30  ;;  %458 = vperm.xlu2 %2644, %v434_v42   ;;  %s2804_s9 = smov 2   ;;  %v836_v56 = vld [vmem:[%s4053_s4 + $0x8] sm:$0xff]  ;;  %vm4071_vm12 = vcmask 146432   ;;  %vm4070_vm13 = vcmask 261120  }
  0x10   : > { %v292_v8 = vld [vmem:[%s2903_s10 + $0x60] sm:$0xff]  ;;  %v294_v9 = vld [vmem:[%s2903_s10 + $0x70] sm:$0xff]  ;;  %v293_v10 = vld [vmem:[%s2903_s10 + $0x68] sm:$0xff]  ;;  %s2806_s11 = smov 32   ;;  %s2807_s17 = smov 19   ;;  %vm4069_vm14 = vcmask 277504  }
  0x11   : > { %v2911_v11 = vand.u32 15, %v306_v5  ;;  %v552_v12 = vadd.s32 1, %v2896_v6  ;;  %v302_v13 = vpack.c.bf16 %v294_v9, %v292_v8  ;;  %v295_v14 = vld [vmem:[%s2903_s10 + $0x78] sm:$0xff]  ;;  %v288_v15 = vld [vmem:[%s2903_s10 + $0x40] sm:$0xff]  ;;  %v290_v16 = vld [vmem:[%s2903_s10 + $0x50] sm:$0xff]  ;;  %v527_v43 = vadd.s32 4294967295, %v2896_v6  ;;  %s3021_s12 = scalar_lea.vmem %s4056_s7, %s2581_s30 }
  0x12   : > { %v303_v17 = vpack.c.bf16 %v295_v14, %v293_v10  ;;  %v289_v18 = vld [vmem:[%s2903_s10 + $0x48] sm:$0xff]  ;;  %v291_v19 = vld [vmem:[%s2903_s10 + $0x58] sm:$0xff]  ;;  %v300_v21 = vpack.c.bf16 %v290_v16, %v288_v15  ;;  %v284_v23 = vld [vmem:[%s2903_s10 + $0x20] sm:$0xff]  ;;  %v1011_v45 = vadd.s32 2, %v2896_v6  ;;  %s2808_s18 = smov 17   ;;  %v946_v57 = vadd.s32 4294967294, %v2896_v6 }
  0x13   : > { %v553_v20 = vadd.s32 1, %v2911_v11  ;;  %376 = vmatpush.bf16.msra.mxu0 %v302_v13  ;;  %vm556_vm0 = vcmp.lt.s32.totalorder %v552_v12, 16  ;;  %v301_v22 = vpack.c.bf16 %v291_v19, %v289_v18  ;;  %v286_v24 = vld [vmem:[%s2903_s10 + $0x30] sm:$0xff]  ;;  %v285_v25 = vld [vmem:[%s2903_s10 + $0x28] sm:$0xff]  ;;  %v287_v26 = vld [vmem:[%s2903_s10 + $0x38] sm:$0xff]  ;;  %v528_v44 = vadd.s32 4294967295, %v2911_v11 }
  0x14   : > { %405 = vmatpush.bf16.msra.mxu1 %v303_v17  ;;  %v2545_v29 = vsel %vm556_vm0, 1.0, %v2799_v28  ;;  %v298_v31 = vpack.c.bf16 %v286_v24, %v284_v23  ;;  %v299_v32 = vpack.c.bf16 %v287_v26, %v285_v25  ;;  %v280_v33 = vld [vmem:[%s2903_s10] sm:$0xff]  ;;  %v282_v34 = vld [vmem:[%s2903_s10 + $0x10] sm:$0xff]  ;;  %v281_v36 = vld [vmem:[%s2903_s10 + $0x8] sm:$0xff]  ;;  %v1012_v46 = vadd.s32 2, %v2911_v11  ;;  %s2809_s19 = smov 33  }
  0x15   : > { %453 = vperm.xlu1 %2643, %v433_v7   ;;  %vm557_vm1 = vcmp.lt.s32.totalorder %v553_v20, 16  ;;  %443 = vperm.xlu0 %2642, %v431_v27   ;;  %v283_v37 = vld [vmem:[%s2903_s10 + $0x18] sm:$0xff]  ;;  %v296_v38 = vpack.c.bf16 %v282_v34, %v280_v33  ;;  %vm529_vm3 = vcmp.ge.s32.totalorder %v527_v43, 0  ;;  %vm530_vm4 = vcmp.ge.s32.totalorder %v528_v44, 0  ;;  %s2805_s10 = smov 3   ;;  %s2810_s20 = smov 48  }
  0x16   : > { %v2546_v30 = vsel %vm557_vm1, 1.0, %v2799_v28  ;;  %v297_v39 = vpack.c.bf16 %v283_v37, %v281_v36  ;;  %v2953_v47 = vsel %vm529_vm3, 1.0, %v2799_v28  ;;  %v2956_v48 = vsel %vm530_vm4, 1.0, %v2799_v28  ;;  %s2811_s21 = smov 36   ;;  %s2812_s22 = smov 52  }
  0x17   : > { %377 = vmatpush.bf16.msra.mxu0 %v300_v21  ;;  %v2931_v35 = vpack.i.bf16 %v2546_v30, %v2545_v29  ;;  %vm1015_vm5 = vcmp.lt.s32.totalorder %v1011_v45, 16  ;;  %vm1016_vm6 = vcmp.lt.s32.totalorder %v1012_v46, 16  ;;  %v2960_v49 = vpack.i.bf16 %v2956_v48, %v2953_v47  ;;  %463 = vperm.xlu2 %2644, %v435_v53   ;;  %s2813_s23 = smov 51   ;;  %s2815_s28 = smov 65  }
  0x18   : > { %406 = vmatpush.bf16.msra.mxu1 %v301_v22  ;;  %v2559_v50 = vsel %vm1015_vm5, 1.0, %v2799_v28  ;;  %v2560_v51 = vsel %vm1016_vm6, 1.0, %v2799_v28  ;;  %v947_v58 = vadd.s32 4294967294, %v2911_v11  ;;  %vm948_vm7 = vcmp.ge.s32.totalorder %v946_v57, 0  ;;  %s2816_s25 = smov 1   ;;  %s2817_s30 = smov 20  }
  0x19   : > { %4073 = vst [vmem:[#allocation2_spill] sm:$0xff] %v2931_v35  ;;  %v2964_v52 = vpack.i.bf16 %v2560_v51, %v2559_v50  ;;  %v2998_v59 = vsel %vm948_vm7, 1.0, %v2799_v28  ;;  %s2818_s13 = smov 35   ;;  %s2819_s14 = smov 49   ;;  %vm977_vm15 = vcmask 7168   ;;  %vm996_vm0 = vcmask 23552  }
  0x1a   : > { %4074 = vst [vmem:[#allocation3_spill] sm:$0xff] %v2960_v49  ;;  %vm949_vm8 = vcmp.ge.s32.totalorder %v947_v58, 0  ;;  %s2820_s16 = smov 64   ;;  %s2829_s29 = smov 94   ;;  %vm1032_vm1 = vcmask 31744   ;;  %vm1089_vm3 = vcmask 154624  }
  0x1b   : > { %378 = vmatpush.bf16.msra.mxu0 %v298_v31  ;;  %v3001_v60 = vsel %vm949_vm8, 1.0, %v2799_v28  ;;  %vm1108_vm4 = vcmask 162816   ;;  %vm804_vm5 = vcmask 777216   ;;  %vm1145_vm6 = vcmask 269312  }
  0x1c   : > { %407 = vmatpush.bf16.msra.mxu1 %v299_v32  ;;  %v3005_v61 = vpack.i.bf16 %v3001_v60, %v2998_v59  ;;  %vm1164_vm7 = vcmask 285696   ;;  %vm1183_vm8 = vcmask 293888  }
  0x1d   : > { %2656 = vrot.lane.b32.xlu1 %v2931_v35, %s2800_s15  ;;  %2651 = vrot.lane.b32.xlu0 %v2960_v49, %s2801_s26 }
  0x1f   : > { %379 = vmatpush.bf16.msra.mxu0 %v296_v38  ;;  %2646 = vrot.lane.b32.xlu2 %v2931_v35, %s2804_s9 }
  0x20   : > { %408 = vmatpush.bf16.msra.mxu1 %v297_v39 }
  0x22   : > { %2535 = vmatmul.msk.bf16.vlgmr.msra.gmra.mxu0 %vm359_vm2, %v2583_v40 }
  0x23   : > { %2539 = vmatmul.msk.bf16.vlgmr.msra.gmra.mxu1 %vm359_vm2, %v2583_v40 }
  0x25   : > { %839 = vperm.xlu1 %2643, %v835_v41   ;;  %2666 = vrot.lane.b32.xlu0 %v2931_v35, %s2803_s8 }
  0x27   : > { %2661 = vrot.lane.b32.xlu2 %v2960_v49, %s2806_s11 }
  0x2d   : > { %2681 = vrot.lane.b32.xlu1 %v2964_v52, %s2802_s27  ;;  %2676 = vrot.lane.b32.xlu0 %v2931_v35, %s2805_s10  ;;  %s2814_s27 = smov 67   ;;  %s2830_s10 = smov 125  }
  0x2f   : > { %844 = vperm.xlu2 %2644, %v836_v56  }
  0x32   : > { %2536 = vmatmul.msk.bf16.gmra.mxu0 %vm359_vm2, %v2584_v54 }
  0x33   : > { %2540 = vmatmul.msk.bf16.gmra.mxu1 %vm359_vm2, %v2584_v54 }
  0x35   : > { %2696 = vrot.lane.b32.xlu1 %v2931_v35, %s2807_s17  ;;  %2691 = vrot.lane.b32.xlu0 %v2960_v49, %s2808_s18  ;;  %s2821_s17 = smov 68  }
  0x37   : > { %2671 = vrot.lane.b32.xlu2 %v2960_v49, %s2816_s25  ;;  %s2831_s25 = smov 124  }
  0x3d   : > { %2711 = vrot.lane.b32.xlu1 %v2960_v49, %s2809_s19  ;;  %2706 = vrot.lane.b32.xlu0 %v3005_v61, %s2806_s11  ;;  %s2822_s19 = smov 127  }
  0x3f   : > { %2686 = vrot.lane.b32.xlu2 %v3005_v61, %s2801_s26 }
  0x42   : > { %2537 = vmatmul.msk.bf16.gmra.mxu0 %vm359_vm2, %v2585_v55 }
  0x43   : > { %2541 = vmatmul.msk.bf16.gmra.mxu1 %vm359_vm2, %v2585_v55 }
  0x45   : > { %2726 = vrot.lane.b32.xlu1 %v3005_v61, %s2810_s20  ;;  %2721 = vrot.lane.b32.xlu0 %v2964_v52, %s2811_s21  ;;  %s2823_s20 = smov 111   ;;  %s2824_s21 = smov 95  }
  0x47   : > { %2701 = vrot.lane.b32.xlu2 %v2964_v52, %s2817_s30  ;;  %s2832_s30 = smov 109  }
  0x4d   : > { %2741 = vrot.lane.b32.xlu1 %v2964_v52, %s2812_s22  ;;  %2736 = vrot.lane.b32.xlu0 %v2931_v35, %s2813_s23  ;;  %s2825_s22 = smov 126   ;;  %s2826_s23 = smov 112  }
  0x4f   : > { %2716 = vrot.lane.b32.xlu2 %v2931_v35, %s2818_s13  ;;  %s2833_s13 = smov 108  }
  0x55   : > { %2756 = vrot.lane.b32.xlu1 %v2931_v35, %s2814_s27  ;;  %2751 = vrot.lane.b32.xlu0 %v2960_v49, %s2815_s28  ;;  %s2827_s27 = smov 110   ;;  %s2828_s28 = smov 96  }
  0x57   : > { %2731 = vrot.lane.b32.xlu2 %v2960_v49, %s2819_s14  ;;  %s2835_s14 = smov 92  }
  0x5f   : > { %2746 = vrot.lane.b32.xlu2 %v3005_v61, %s2820_s16 }
  0x67   : > { %2761 = vrot.lane.b32.xlu2 %v2964_v52, %s2821_s17 }
  0x69   : > { %v459_v32 = vpop.permute.xlu2 %458 }
  0x71   : > { %v464_v54 = vpop.permute.xlu2 %463 }
  0x7f   : > { %v439_v62 = vpop.permute.xlu0 %438  ;;  %v449_v15 = vpop.permute.xlu1 %448 }
  0x87   : > { %v444_v7 = vpop.permute.xlu0 %443  ;;  %v454_v23 = vpop.permute.xlu1 %453 }
  0x9f   : > { %v381_v63 = vpop.f32.mrf.mxu0 }
  0xa0   : > { %v466_v0 = vadd.f32 %v439_v62, %v381_v63  ;;  %v410_v1 = vpop.f32.mrf.mxu1 }
  0xa1   : > { %v467_v2 = vadd.f32 %v439_v62, %v410_v1 }
  0xa2   : > { %v478_v3 = vmul.f32 0.2, %v466_v0 }
  0xa3   : > { %v479_v4 = vmul.f32 0.2, %v467_v2 }
  0xa4   : > { %v490_v5 = vmax.f32 %v466_v0, %v478_v3 }
  0xa5   : > { %v491_v6 = vmax.f32 %v467_v2, %v479_v4 }
  0xa6   : > { %2439 = vst [vmem:[%s3021_s12] sm:$0xff] %v490_v5 }
  0xa7   : > { %2440 = vst [vmem:[%s3021_s12 + $0x8] sm:$0xff] %v491_v6  ;;  %v383_v8 = vpop.f32.mrf.mxu0 }
  0xa8   : > { %v468_v9 = vadd.f32 %v444_v7, %v383_v8  ;;  %v412_v10 = vpop.f32.mrf.mxu1 }
  0xa9   : > { %v469_v11 = vadd.f32 %v444_v7, %v412_v10 }
  0xaa   : > { %v480_v12 = vmul.f32 0.2, %v468_v9 }
  0xab   : > { %v481_v13 = vmul.f32 0.2, %v469_v11 }
  0xac   : > { %v492_v14 = vmax.f32 %v468_v9, %v480_v12  ;;  %v2652_v12 = vpop.permute.xlu0 %2651 }
  0xad   : > { %v493_v16 = vmax.f32 %v469_v11, %v481_v13  ;;  %v3039_v13 = vpop.permute.xlu1 %2656 }
  0xae   : > { %2441 = vst [vmem:[%s3021_s12 + $0x10] sm:$0xff] %v492_v14 }
  0xaf   : > { %2442 = vst [vmem:[%s3021_s12 + $0x18] sm:$0xff] %v493_v16  ;;  %v386_v17 = vpop.f32.mrf.mxu0 }
  0xb0   : > { %v470_v18 = vadd.f32 %v449_v15, %v386_v17  ;;  %v415_v19 = vpop.f32.mrf.mxu1 }
  0xb1   : > { %v471_v20 = vadd.f32 %v449_v15, %v415_v19 }
  0xb2   : > { %v482_v21 = vmul.f32 0.2, %v470_v18 }
  0xb3   : > { %v483_v22 = vmul.f32 0.2, %v471_v20 }
  0xb4   : > { %v494_v25 = vmax.f32 %v470_v18, %v482_v21  ;;  %v3041_v14 = vpop.permute.xlu0 %2666 }
  0xb5   : > { %v495_v26 = vmax.f32 %v471_v20, %v483_v22  ;;  %v3043_v15 = vpop.permute.xlu1 %839 }
  0xb6   : > { %4075 = vst [vmem:[#allocation4_spill] sm:$0xff] %v3043_v15 }
  0xb7   : > { %v388_v24 = vpop.f32.mrf.mxu0  ;;  %v502_v33 = vpack.c.bf16 %v495_v26, %v494_v25  ;;  %v2647_v26 = vpop.permute.xlu2 %2646 }
  0xb8   : > { %v472_v27 = vadd.f32 %v454_v23, %v388_v24  ;;  %v417_v28 = vpop.f32.mrf.mxu1 }
  0xb9   : > { %v473_v29 = vadd.f32 %v454_v23, %v417_v28  ;;  %v507_v41 = vunpack.c.h.b16 %v502_v33  ;;  %v506_v44 = vunpack.c.l.b16 %v502_v33  ;;  %v2648_v33 = vunpack.i.l.bf16 %v2647_v26 }
  0xba   : > { %v484_v30 = vmul.f32 0.2, %v472_v27 }
  0xbb   : > { %v485_v31 = vmul.f32 0.2, %v473_v29 }
  0xbc   : > { %v496_v34 = vmax.f32 %v472_v27, %v484_v30  ;;  %v3047_v17 = vpop.permute.xlu0 %2676 }
  0xbd   : > { %v497_v36 = vmax.f32 %v473_v29, %v485_v31  ;;  %v3045_v16 = vpop.permute.xlu1 %2681 }
  0xbf   : > { %v503_v37 = vpack.c.bf16 %v497_v36, %v496_v34  ;;  %v391_v38 = vpop.f32.mrf.mxu0  ;;  %v2662_v34 = vpop.permute.xlu2 %2661 }
  0xc0   : > { %v474_v39 = vadd.f32 %v459_v32, %v391_v38  ;;  %v420_v40 = vpop.f32.mrf.mxu1 }
  0xc1   : > { %v475_v42 = vadd.f32 %v459_v32, %v420_v40  ;;  %v509_v43 = vunpack.c.h.b16 %v503_v37  ;;  %v508_v45 = vunpack.c.l.b16 %v503_v37  ;;  %v2649_v32 = vunpack.i.h.bf16 %v2647_v26 }
  0xc2   : > { %v486_v46 = vmul.f32 0.2, %v474_v39  ;;  %v2658_v26 = vunpack.i.l.bf16 %v3039_v13 }
  0xc3   : > { %v487_v50 = vmul.f32 0.2, %v475_v42  ;;  %v511_v51 = vpack.c.b16 %v509_v43, %v507_v41  ;;  %v510_v53 = vpack.c.b16 %v508_v45, %v506_v44  ;;  %v576_v40 = vsel %vm4072_vm10, %v2648_v33, %v2649_v32 }
  0xc4   : > { %v498_v55 = vmax.f32 %v474_v39, %v486_v46  ;;  %v3051_v19 = vpop.permute.xlu0 %2691  ;;  %vm1621_vm10 = vcmask 760832  }
  0xc5   : > { %514 = vrot.lane.b32.xlu1 %v511_v51, %s2808_s18  ;;  %512 = vrot.lane.b32.xlu0 %v510_v53, %s2808_s18  ;;  %v499_v56 = vmax.f32 %v475_v42, %v487_v50  ;;  %v3049_v18 = vpop.permute.xlu1 %2696  ;;  %v2654_v53 = vunpack.i.h.bf16 %v2652_v12 }
  0xc7   : > { %v393_v57 = vpop.f32.mrf.mxu0  ;;  %v923_v1 = vpack.c.bf16 %v499_v56, %v498_v55  ;;  %v3097_v55 = vpop.permute.xlu2 %844 }
  0xc8   : > { %v476_v58 = vadd.f32 %v464_v54, %v393_v57  ;;  %v422_v62 = vpop.f32.mrf.mxu1  ;;  %4078 = vst [vmem:[#allocation7_spill] sm:$0xff] %v3097_v55 }
  0xc9   : > { %v477_v63 = vadd.f32 %v464_v54, %v422_v62  ;;  %v928_v6 = vunpack.c.h.b16 %v923_v1  ;;  %v927_v7 = vunpack.c.l.b16 %v923_v1  ;;  %v2653_v54 = vunpack.i.l.bf16 %v2652_v12 }
  0xca   : > { %v488_v0 = vmul.f32 0.2, %v476_v58  ;;  %v2659_v12 = vunpack.i.h.bf16 %v3039_v13 }
  0xcb   : > { %v489_v2 = vmul.f32 0.2, %v477_v63 }
  0xcc   : > { %v500_v3 = vmax.f32 %v476_v58, %v488_v0  ;;  %v3055_v61 = vpop.permute.xlu0 %2706 }
  0xcd   : > { %v501_v4 = vmax.f32 %v477_v63, %v489_v2  ;;  %v3053_v20 = vpop.permute.xlu1 %2711  ;;  %v597_v63 = vsel %vm596_vm11, %v2653_v54, %v2654_v53 }
  0xcf   : > { %v924_v5 = vpack.c.bf16 %v501_v4, %v500_v3 }
  0xd1   : > { %v930_v8 = vunpack.c.h.b16 %v924_v5  ;;  %v929_v9 = vunpack.c.l.b16 %v924_v5 }
  0xd3   : > { %v932_v10 = vpack.c.b16 %v930_v8, %v928_v6  ;;  %v931_v11 = vpack.c.b16 %v929_v9, %v927_v7 }
  0xd4   : > { %v3059_v52 = vpop.permute.xlu0 %2721 }
  0xd5   : > { %935 = vrot.lane.b32.xlu1 %v932_v10, %s2803_s8  ;;  %933 = vrot.lane.b32.xlu0 %v931_v11, %s2803_s8  ;;  %v3057_v21 = vpop.permute.xlu1 %2726 }
  0xdc   : > { %v3063_v23 = vpop.permute.xlu0 %2736 }
  0xdd   : > { %v3061_v22 = vpop.permute.xlu1 %2741 }
  0xe4   : > { %v3067_v25 = vpop.permute.xlu0 %2751 }
  0xe5   : > { %v3065_v24 = vpop.permute.xlu1 %2756  ;;  %4077 = vst [vmem:[#allocation6_spill] sm:$0xff] %v3067_v25  ;;  %v2723_v25 = vunpack.i.l.bf16 %v3059_v52 }
  0xe6   : > { %4076 = vst [vmem:[#allocation5_spill] sm:$0xff] %v3065_v24  ;;  %v2724_v24 = vunpack.i.h.bf16 %v3059_v52 }
 0x137   : > { %v515_v27 = vpop.permute.xlu1 %514  ;;  %v513_v28 = vpop.permute.xlu0 %512 }
 0x138   : > { %v525_v29 = vsel %vm516_vm9, %v515_v27, 0  ;;  %v517_v30 = vsel %vm516_vm9, %v513_v28, %v515_v27  ;;  %v522_v31 = vsel %vm516_vm9, 0, %v513_v28 }
 0x139   : > { %682 = vrot.lane.b32.xlu2 %v517_v30, %s2822_s19  ;;  %680 = vrot.lane.b32.xlu1 %v522_v31, %s2822_s19  ;;  %v3075_v36 = vunpack.c.l.bf16 %v522_v31  ;;  %v3077_v37 = vunpack.c.l.bf16 %v517_v30  ;;  %v3079_v38 = vunpack.c.h.bf16 %v522_v31  ;;  %v3081_v39 = vunpack.c.h.bf16 %v517_v30 }
 0x13a   : > { %684 = vrot.lane.b32.xlu0 %v525_v29, %s2822_s19  ;;  %v3084_v41 = vunpack.c.l.bf16 %v525_v29  ;;  %v3086_v42 = vunpack.c.h.bf16 %v525_v29 }
 0x13b   : > { %v580_v43 = vmul.f32 %v2648_v33, %v3075_v36  ;;  %v581_v44 = vmul.f32 %v576_v40, %v3077_v37  ;;  %v583_v45 = vmul.f32 %v2648_v33, %v3079_v38  ;;  %v584_v46 = vmul.f32 %v576_v40, %v3081_v39 }
 0x13c   : > { %v582_v50 = vmul.f32 %v2649_v32, %v3084_v41  ;;  %v585_v51 = vmul.f32 %v2649_v32, %v3086_v42  ;;  %v601_v0 = vmul.f32 %v2653_v54, %v3075_v36  ;;  %v602_v1 = vmul.f32 %v597_v63, %v3077_v37 }
 0x13d   : > { %v586_v56 = vpack.c.bf16 %v581_v44, %v580_v43  ;;  %v588_v57 = vpack.c.bf16 %v584_v46, %v583_v45  ;;  %v604_v2 = vmul.f32 %v2653_v54, %v3079_v38  ;;  %v605_v3 = vmul.f32 %v597_v63, %v3081_v39 }
 0x13e   : > { %v587_v58 = vpack.c.bf16 %v582_v50, %v582_v50  ;;  %v589_v62 = vpack.c.bf16 %v585_v51, %v585_v51  ;;  %v603_v10 = vmul.f32 %v2654_v53, %v3084_v41  ;;  %v606_v11 = vmul.f32 %v2654_v53, %v3086_v42 }
 0x13f   : > { %v696_v4 = vunpack.c.h.b16 %v586_v56  ;;  %v699_v5 = vunpack.c.h.b16 %v588_v57  ;;  %v695_v6 = vunpack.c.l.b16 %v586_v56  ;;  %v698_v7 = vunpack.c.l.b16 %v588_v57 }
 0x140   : > { %v697_v8 = vunpack.c.l.b16 %v587_v58  ;;  %v700_v9 = vunpack.c.l.b16 %v589_v62  ;;  %v607_v27 = vpack.c.bf16 %v602_v1, %v601_v0  ;;  %v609_v28 = vpack.c.bf16 %v605_v3, %v604_v2 }
 0x141   : > { %741 = vrot.lane.b32.xlu2 %v517_v30, %s2823_s20  ;;  %739 = vrot.lane.b32.xlu1 %v522_v31, %s2823_s20  ;;  %v608_v33 = vpack.c.bf16 %v603_v10, %v603_v10  ;;  %v610_v40 = vpack.c.bf16 %v606_v11, %v606_v11  ;;  %v616_v43 = vsel %vm4071_vm12, %v2658_v26, %v2659_v12  ;;  %v2664_v44 = vunpack.i.h.bf16 %v2662_v34 }
 0x142   : > { %743 = vrot.lane.b32.xlu0 %v525_v29, %s2823_s20  ;;  %v703_v32 = vpack.c.b16 %v700_v9, %v697_v8  ;;  %v2663_v45 = vunpack.i.l.bf16 %v2662_v34  ;;  %v720_v13 = vunpack.c.h.b16 %v607_v27  ;;  %v723_v46 = vunpack.c.h.b16 %v609_v28 }
 0x143   : > { %v719_v50 = vunpack.c.l.b16 %v607_v27  ;;  %v722_v51 = vunpack.c.l.b16 %v609_v28  ;;  %v620_v53 = vmul.f32 %v2658_v26, %v3075_v36  ;;  %v621_v54 = vmul.f32 %v616_v43, %v3077_v37 }
 0x144   : > { %v623_v56 = vmul.f32 %v2658_v26, %v3079_v38  ;;  %v624_v57 = vmul.f32 %v616_v43, %v3081_v39  ;;  %v721_v34 = vunpack.c.l.b16 %v608_v33  ;;  %v724_v58 = vunpack.c.l.b16 %v610_v40 }
 0x145   : > { %v622_v62 = vmul.f32 %v2659_v12, %v3084_v41  ;;  %v625_v63 = vmul.f32 %v2659_v12, %v3086_v42  ;;  %v635_v0 = vsel %vm4070_vm13, %v2663_v45, %v2664_v44  ;;  %v726_v1 = vpack.c.b16 %v723_v46, %v720_v13 }
 0x146   : > { %v725_v2 = vpack.c.b16 %v722_v51, %v719_v50  ;;  %v626_v3 = vpack.c.bf16 %v621_v54, %v620_v53  ;;  %v639_v9 = vmul.f32 %v2663_v45, %v3075_v36  ;;  %v640_v10 = vmul.f32 %v635_v0, %v3077_v37 }
 0x147   : > { %v642_v11 = vmul.f32 %v2663_v45, %v3079_v38  ;;  %v643_v12 = vmul.f32 %v635_v0, %v3081_v39  ;;  %v641_v33 = vmul.f32 %v2664_v44, %v3084_v41  ;;  %v644_v40 = vmul.f32 %v2664_v44, %v3086_v42 }
 0x148   : > { %v755_v26 = vunpack.c.h.b16 %v626_v3  ;;  %v754_v28 = vunpack.c.l.b16 %v626_v3  ;;  %v2669_v43 = vunpack.i.h.bf16 %v3041_v14  ;;  %v2668_v13 = vunpack.i.l.bf16 %v3041_v14 }
 0x149   : > { %800 = vrot.lane.b32.xlu2 %v517_v30, %s2824_s21  ;;  %798 = vrot.lane.b32.xlu1 %v522_v31, %s2824_s21  ;;  %v702_v30 = vpack.c.b16 %v699_v5, %v696_v4  ;;  %v701_v31 = vpack.c.b16 %v698_v7, %v695_v6  ;;  %v628_v4 = vpack.c.bf16 %v624_v57, %v623_v56  ;;  %vm1517_vm12 = vcmask 891904  }
 0x14a   : > { %802 = vrot.lane.b32.xlu0 %v525_v29, %s2824_s21  ;;  %v3111_v29 = vpop.permute.xlu2 %2671  ;;  %v727_v5 = vpack.c.b16 %v724_v58, %v721_v34  ;;  %v627_v6 = vpack.c.bf16 %v622_v62, %v622_v62  ;;  %v629_v7 = vpack.c.bf16 %v625_v63, %v625_v63  ;;  %v645_v46 = vpack.c.bf16 %v640_v10, %v639_v9 }
 0x14b   : > { %v758_v27 = vunpack.c.h.b16 %v628_v4  ;;  %v647_v50 = vpack.c.bf16 %v643_v12, %v642_v11  ;;  %v646_v54 = vpack.c.bf16 %v641_v33, %v641_v33  ;;  %v648_v56 = vpack.c.bf16 %v644_v40, %v644_v40 }
 0x14c   : > { %v654_v57 = vsel %vm4069_vm14, %v2668_v13, %v2669_v43  ;;  %v779_v44 = vunpack.c.h.b16 %v645_v46  ;;  %v778_v14 = vunpack.c.l.b16 %v645_v46  ;;  %v658_v58 = vmul.f32 %v2668_v13, %v3075_v36  ;;  %v936_v46 = vpop.permute.xlu1 %935 }
 0x14d   : > { %v761_v45 = vpack.c.b16 %v758_v27, %v755_v26  ;;  %v782_v34 = vunpack.c.h.b16 %v647_v50  ;;  %v781_v63 = vunpack.c.l.b16 %v647_v50  ;;  %v659_v0 = vmul.f32 %v654_v57, %v3077_v37  ;;  %v934_v50 = vpop.permute.xlu0 %933 }
 0x14e   : > { %v780_v3 = vunpack.c.l.b16 %v646_v54  ;;  %v941_v54 = vsel %vm4069_vm14, 0, %v934_v50 }
 0x14f   : > { %v784_v9 = vpack.c.b16 %v781_v63, %v778_v14  ;;  %v664_v10 = vpack.c.bf16 %v659_v0, %v658_v58  ;;  %v3181_v0 = vunpack.c.l.bf16 %v941_v54 }
 0x151   : > { %706 = vrot.lane.b32.xlu2 %v702_v30, %s2825_s22  ;;  %704 = vrot.lane.b32.xlu1 %v701_v31, %s2825_s22  ;;  %v757_v30 = vunpack.c.l.b16 %v628_v4  ;;  %v756_v31 = vunpack.c.l.b16 %v627_v6  ;;  %v783_v4 = vunpack.c.l.b16 %v648_v56  ;;  %v663_v6 = vmul.f32 %v2669_v43, %v3086_v42 }
 0x152   : > { %708 = vrot.lane.b32.xlu0 %v703_v32, %s2825_s22  ;;  %v3124_v8 = vpop.permute.xlu2 %2686  ;;  %v759_v32 = vunpack.c.l.b16 %v629_v7  ;;  %v785_v7 = vpack.c.b16 %v782_v34, %v779_v44  ;;  %v2674_v44 = vunpack.i.h.bf16 %v3111_v29  ;;  %v2673_v34 = vunpack.i.l.bf16 %v3111_v29 }
 0x153   : > { %v760_v51 = vpack.c.b16 %v757_v30, %v754_v28  ;;  %v786_v12 = vpack.c.b16 %v783_v4, %v780_v3  ;;  %v667_v27 = vpack.c.bf16 %v663_v6, %v663_v6  ;;  %v814_v28 = vunpack.c.h.b16 %v664_v10 }
 0x154   : > { %v762_v53 = vpack.c.b16 %v759_v32, %v756_v31  ;;  %v813_v31 = vunpack.c.l.b16 %v664_v10  ;;  %v978_v14 = vsel %vm977_vm15, %v2673_v34, %v2674_v44  ;;  %v982_v6 = vmul.f32 %v2673_v34, %v3181_v0 }
 0x155   : > { %v818_v42 = vunpack.c.l.b16 %v667_v27  ;;  %vm793_vm15 = vcmask 785408  }
 0x159   : > { %730 = vrot.lane.b32.xlu2 %v726_v1, %s2826_s23  ;;  %728 = vrot.lane.b32.xlu1 %v725_v2, %s2826_s23  ;;  %v661_v1 = vmul.f32 %v2668_v13, %v3079_v38  ;;  %v662_v2 = vmul.f32 %v654_v57, %v3081_v39 }
 0x15a   : > { %732 = vrot.lane.b32.xlu0 %v727_v5, %s2826_s23  ;;  %v3142_v62 = vpop.permute.xlu2 %2701  ;;  %v660_v5 = vmul.f32 %v2669_v43, %v3084_v41 }
 0x15b   : > { %v666_v11 = vpack.c.bf16 %v662_v2, %v661_v1  ;;  %v3185_v2 = vunpack.c.h.bf16 %v941_v54 }
 0x15c   : > { %v665_v26 = vpack.c.bf16 %v660_v5, %v660_v5 }
 0x15d   : > { %v817_v30 = vunpack.c.h.b16 %v666_v11  ;;  %v816_v41 = vunpack.c.l.b16 %v666_v11  ;;  %v2679_v11 = vunpack.i.h.bf16 %v3047_v17  ;;  %v967_v15 = vmul.f32 %v2998_v59, %v3185_v2 }
 0x15e   : > { %v815_v32 = vunpack.c.l.b16 %v665_v26 }
 0x15f   : > { %v820_v40 = vpack.c.b16 %v817_v30, %v814_v28  ;;  %v819_v43 = vpack.c.b16 %v816_v41, %v813_v31 }
 0x160   : > { %v821_v13 = vpack.c.b16 %v818_v42, %v815_v32 }
 0x161   : > { %765 = vrot.lane.b32.xlu2 %v761_v45, %s2827_s27  ;;  %763 = vrot.lane.b32.xlu1 %v760_v51, %s2827_s27  ;;  %v944_v51 = vsel %vm4069_vm14, %v936_v46, 0 }
 0x162   : > { %767 = vrot.lane.b32.xlu0 %v762_v53, %s2827_s27  ;;  %v3152_v33 = vpop.permute.xlu2 %2716  ;;  %v938_v53 = vsel %vm4069_vm14, %v934_v50, %v936_v46  ;;  %v3177_v58 = vunpack.c.l.bf16 %v944_v51  ;;  %v3179_v63 = vunpack.c.h.bf16 %v944_v51  ;;  %vm1669_vm14 = vcmask 654336  }
 0x163   : > { %v3183_v1 = vunpack.c.l.bf16 %v938_v53  ;;  %v3187_v3 = vunpack.c.h.bf16 %v938_v53 }
 0x164   : > { %v984_v29 = vmul.f32 %v2674_v44, %v3177_v58  ;;  %v987_v4 = vmul.f32 %v2674_v44, %v3179_v63  ;;  %v1003_v41 = vmul.f32 %v2679_v11, %v3177_v58  ;;  %v1006_v32 = vmul.f32 %v2679_v11, %v3179_v63 }
 0x165   : > { %v986_v10 = vmul.f32 %v978_v14, %v3187_v3 }
 0x166   : > { %v989_v26 = vpack.c.bf16 %v984_v29, %v984_v29  ;;  %v991_v27 = vpack.c.bf16 %v987_v4, %v987_v4  ;;  %v1008_v29 = vpack.c.bf16 %v1003_v41, %v1003_v41  ;;  %v1010_v4 = vpack.c.bf16 %v1006_v32, %v1006_v32 }
 0x168   : > { %v1365_v46 = vunpack.c.l.b16 %v989_v26  ;;  %v1368_v50 = vunpack.c.l.b16 %v991_v27  ;;  %v1400_v32 = vunpack.c.l.b16 %v1008_v29 }
 0x169   : > { %789 = vrot.lane.b32.xlu2 %v785_v7, %s2828_s28  ;;  %787 = vrot.lane.b32.xlu1 %v784_v9, %s2828_s28  ;;  %v983_v7 = vmul.f32 %v978_v14, %v3183_v1  ;;  %v985_v9 = vmul.f32 %v2673_v34, %v3185_v2  ;;  %v2684_v14 = vunpack.i.h.bf16 %v3045_v16 }
 0x16a   : > { %791 = vrot.lane.b32.xlu0 %v786_v12, %s2828_s28  ;;  %v3157_v45 = vpop.permute.xlu2 %2731  ;;  %v2678_v12 = vunpack.i.l.bf16 %v3047_v17 }
 0x16b   : > { %4079 = vst [vmem:[#allocation8_spill] sm:$0xff] %v3157_v45  ;;  %v988_v28 = vpack.c.bf16 %v983_v7, %v982_v6  ;;  %v990_v30 = vpack.c.bf16 %v986_v10, %v985_v9  ;;  %v1371_v6 = vpack.c.b16 %v1368_v50, %v1365_v46  ;;  %v1039_v26 = vmul.f32 %v2684_v14, %v3177_v58 }
 0x16c   : > { %v997_v31 = vsel %vm996_vm0, %v2678_v12, %v2679_v11  ;;  %v1001_v42 = vmul.f32 %v2678_v12, %v3181_v0  ;;  %v1042_v27 = vmul.f32 %v2684_v14, %v3179_v63  ;;  %v2688_v46 = vunpack.i.l.bf16 %v3124_v8 }
 0x16d   : > { %v1002_v17 = vmul.f32 %v997_v31, %v3183_v1  ;;  %v1363_v44 = vunpack.c.l.b16 %v988_v28  ;;  %v1366_v34 = vunpack.c.l.b16 %v990_v30  ;;  %vm1202_vm0 = vcmask 392192  }
 0x16f   : > { %v1007_v9 = vpack.c.bf16 %v1002_v17, %v1001_v42  ;;  %v1369_v11 = vpack.c.b16 %v1366_v34, %v1363_v44  ;;  %v1403_v42 = vunpack.c.l.b16 %v1010_v4  ;;  %v1046_v44 = vpack.c.bf16 %v1042_v27, %v1042_v27 }
 0x171   : > { %824 = vrot.lane.b32.xlu2 %v820_v40, %s2829_s29  ;;  %822 = vrot.lane.b32.xlu1 %v819_v43, %s2829_s29  ;;  %v1004_v40 = vmul.f32 %v2678_v12, %v3185_v2  ;;  %v1005_v43 = vmul.f32 %v997_v31, %v3187_v3  ;;  %v1399_v17 = vunpack.c.h.b16 %v1007_v9  ;;  %v1398_v50 = vunpack.c.l.b16 %v1007_v9 }
 0x172   : > { %826 = vrot.lane.b32.xlu0 %v821_v13, %s2829_s29  ;;  %v3165_v56 = vpop.permute.xlu2 %2746  ;;  %v1427_v4 = vunpack.c.l.b16 %v1046_v44 }
 0x173   : > { %v1009_v10 = vpack.c.bf16 %v1005_v43, %v1004_v40  ;;  %v2689_v43 = vunpack.i.h.bf16 %v3124_v8 }
 0x175   : > { %v1402_v40 = vunpack.c.h.b16 %v1009_v10 }
 0x179   : > { %1388 = vrot.lane.b32.xlu2 %v944_v51, %s2825_s22  ;;  %1386 = vrot.lane.b32.xlu1 %v938_v53, %s2825_s22 }
 0x17a   : > { %1384 = vrot.lane.b32.xlu0 %v941_v54, %s2825_s22  ;;  %v3173_v57 = vpop.permute.xlu2 %2761 }
 0x17b   : > { %4080 = vst [vmem:[#allocation9_spill] sm:$0xff] %v3173_v57 }
 0x181   : > { %1492 = vrot.lane.b32.xlu2 %v944_v51, %s2827_s27  ;;  %1490 = vrot.lane.b32.xlu1 %v938_v53, %s2827_s27 }
 0x182   : > { %1488 = vrot.lane.b32.xlu0 %v941_v54, %s2827_s27 }
 0x189   : > { %1596 = vrot.lane.b32.xlu2 %v944_v51, %s2829_s29  ;;  %1594 = vrot.lane.b32.xlu1 %v938_v53, %s2829_s29 }
 0x18a   : > { %1592 = vrot.lane.b32.xlu0 %v941_v54, %s2829_s29 }
 0x191   : > { %1691 = vrot.lane.b32.xlu2 %v944_v51, %s2822_s19  ;;  %1689 = vrot.lane.b32.xlu1 %v938_v53, %s2822_s19 }
 0x192   : > { %1687 = vrot.lane.b32.xlu0 %v941_v54, %s2822_s19 }
 0x193   : > { %v3194_v5 = vpop.permute.xlu2 %682 }
 0x199   : > { %1784 = vrot.lane.b32.xlu2 %v944_v51, %s2823_s20  ;;  %1782 = vrot.lane.b32.xlu1 %v938_v53, %s2823_s20  ;;  %v1364_v51 = vunpack.c.h.b16 %v988_v28  ;;  %v1367_v53 = vunpack.c.h.b16 %v990_v30 }
 0x19a   : > { %1780 = vrot.lane.b32.xlu0 %v941_v54, %s2823_s20  ;;  %v2683_v54 = vunpack.i.l.bf16 %v3045_v16 }
 0x19b   : > { %v3211_v13 = vpop.permute.xlu2 %741  ;;  %v1370_v7 = vpack.c.b16 %v1367_v53, %v1364_v51  ;;  %v1401_v51 = vunpack.c.l.b16 %v1009_v10  ;;  %v1044_v53 = vpack.c.bf16 %v1039_v26, %v1039_v26  ;;  %v1059_v10 = vmul.f32 %v2689_v43, %v3177_v58 }
 0x19c   : > { %v1033_v12 = vsel %vm1032_vm1, %v2683_v54, %v2684_v14  ;;  %v1037_v16 = vmul.f32 %v2683_v54, %v3181_v0  ;;  %v1040_v30 = vmul.f32 %v2683_v54, %v3185_v2  ;;  %v1405_v54 = vpack.c.b16 %v1402_v40, %v1399_v17 }
 0x19d   : > { %v1038_v28 = vmul.f32 %v1033_v12, %v3183_v1  ;;  %v1041_v31 = vmul.f32 %v1033_v12, %v3187_v3  ;;  %v1424_v29 = vunpack.c.l.b16 %v1044_v53  ;;  %v1062_v12 = vmul.f32 %v2689_v43, %v3179_v63 }
 0x19e   : > { %v2694_v40 = vunpack.i.h.bf16 %v3051_v19  ;;  %v1064_v53 = vpack.c.bf16 %v1059_v10, %v1059_v10  ;;  %vm769_vm1 = vcmask 900096  }
 0x19f   : > { %v1043_v34 = vpack.c.bf16 %v1038_v28, %v1037_v16  ;;  %v1045_v14 = vpack.c.bf16 %v1041_v31, %v1040_v30  ;;  %v1057_v16 = vmul.f32 %v2688_v46, %v3181_v0  ;;  %v1060_v30 = vmul.f32 %v2688_v46, %v3185_v2 }
 0x1a0   : > { %v1066_v44 = vpack.c.bf16 %v1062_v12, %v1062_v12  ;;  %v1448_v10 = vunpack.c.l.b16 %v1064_v53  ;;  %v965_v53 = vmul.f32 %v2998_v59, %v3181_v0 }
 0x1a1   : > { %1376 = vrot.lane.b32.xlu2 %v1371_v6, %s2822_s19  ;;  %1374 = vrot.lane.b32.xlu1 %v1370_v7, %s2822_s19  ;;  %v1406_v6 = vpack.c.b16 %v1403_v42, %v1400_v32  ;;  %v1053_v7 = vsel %vm596_vm11, %v2688_v46, %v2689_v43  ;;  %v1423_v8 = vunpack.c.h.b16 %v1043_v34  ;;  %v1426_v9 = vunpack.c.h.b16 %v1045_v14 }
 0x1a2   : > { %1372 = vrot.lane.b32.xlu0 %v1369_v11, %s2822_s19  ;;  %v1404_v11 = vpack.c.b16 %v1401_v51, %v1398_v50  ;;  %v1058_v28 = vmul.f32 %v1053_v7, %v3183_v1  ;;  %v1061_v31 = vmul.f32 %v1053_v7, %v3187_v3  ;;  %v1422_v42 = vunpack.c.l.b16 %v1043_v34 }
 0x1a3   : > { %v3224_v41 = vpop.permute.xlu2 %800  ;;  %v1425_v17 = vunpack.c.l.b16 %v1045_v14  ;;  %v2693_v43 = vunpack.i.l.bf16 %v3051_v19  ;;  %v1430_v50 = vpack.c.b16 %v1427_v4, %v1424_v29  ;;  %v1429_v51 = vpack.c.b16 %v1426_v9, %v1423_v8 }
 0x1a4   : > { %v2698_v7 = vunpack.i.l.bf16 %v3049_v18  ;;  %v1077_v34 = vmul.f32 %v2694_v40, %v3177_v58  ;;  %v1080_v19 = vmul.f32 %v2694_v40, %v3179_v63  ;;  %v1451_v12 = vunpack.c.l.b16 %v1066_v44 }
 0x1a5   : > { %v1428_v46 = vpack.c.b16 %v1425_v17, %v1422_v42  ;;  %v1071_v49 = vsel %vm516_vm9, %v2693_v43, %v2694_v40  ;;  %v1075_v14 = vmul.f32 %v2693_v43, %v3181_v0  ;;  %v1078_v4 = vmul.f32 %v2693_v43, %v3185_v2 }
 0x1a6   : > { %v1076_v29 = vmul.f32 %v1071_v49, %v3183_v1  ;;  %v1079_v8 = vmul.f32 %v1071_v49, %v3187_v3  ;;  %v2704_v40 = vunpack.i.h.bf16 %v3142_v62  ;;  %v2703_v43 = vunpack.i.l.bf16 %v3142_v62 }
 0x1a7   : > { %v1082_v49 = vpack.c.bf16 %v1077_v34, %v1077_v34  ;;  %v1454_v44 = vpack.c.b16 %v1451_v12, %v1448_v10  ;;  %v968_v62 = vmul.f32 %v3001_v60, %v3187_v3 }
 0x1a8   : > { %v1081_v35 = vpack.c.bf16 %v1076_v29, %v1075_v14  ;;  %v1083_v55 = vpack.c.bf16 %v1079_v8, %v1078_v4  ;;  %v1097_v29 = vmul.f32 %v2698_v7, %v3185_v2 }
 0x1a9   : > { %1411 = vrot.lane.b32.xlu2 %v1406_v6, %s2830_s10  ;;  %1409 = vrot.lane.b32.xlu1 %v1405_v54, %s2830_s10  ;;  %v1063_v6 = vpack.c.bf16 %v1058_v28, %v1057_v16  ;;  %v1065_v54 = vpack.c.bf16 %v1061_v31, %v1060_v30  ;;  %v1471_v12 = vunpack.c.l.b16 %v1082_v49 }
 0x1aa   : > { %1407 = vrot.lane.b32.xlu0 %v1404_v11, %s2830_s10  ;;  %v2699_v11 = vunpack.i.h.bf16 %v3049_v18 }
 0x1ab   : > { %v3234_v26 = vpop.permute.xlu2 %706  ;;  %v3236_v27 = vpop.permute.xlu1 %680  ;;  %v1447_v16 = vunpack.c.h.b16 %v1063_v6  ;;  %v1450_v28 = vunpack.c.h.b16 %v1065_v54  ;;  %v1446_v31 = vunpack.c.l.b16 %v1063_v6  ;;  %v1449_v42 = vunpack.c.l.b16 %v1065_v54 }
 0x1ac   : > { %v3242_v32 = vpop.permute.xlu0 %684  ;;  %v1090_v17 = vsel %vm1089_vm3, %v2698_v7, %v2699_v11  ;;  %v966_v54 = vmul.f32 %v3001_v60, %v3183_v1  ;;  %v1099_v34 = vmul.f32 %v2699_v11, %v3179_v63  ;;  %v3283_v60 = vpack.c.bf16 %v968_v62, %v967_v15 }
 0x1ad   : > { %v1452_v6 = vpack.c.b16 %v1449_v42, %v1446_v31  ;;  %v1095_v14 = vmul.f32 %v1090_v17, %v3183_v1  ;;  %v1098_v59 = vmul.f32 %v1090_v17, %v3187_v3  ;;  %v1109_v17 = vsel %vm1108_vm4, %v2703_v43, %v2704_v40 }
 0x1ae   : > { %v3281_v4 = vpack.c.bf16 %v966_v54, %v965_v53  ;;  %4082 = vst [vmem:[#allocation11_spill] sm:$0xff] %v3283_v60  ;;  %v1354_v53 = vunpack.c.h.b16 %v3283_v60  ;;  %vm745_vm3 = vcmask 908288   ;;  %vm828_vm4 = vcmask 769024  }
 0x1b0   : > { %4081 = vst [vmem:[#allocation10_spill] sm:$0xff] %v3281_v4  ;;  %v1352_v15 = vunpack.c.h.b16 %v3281_v4  ;;  %v2718_v4 = vunpack.i.l.bf16 %v3152_v33 }
 0x1b1   : > { %1435 = vrot.lane.b32.xlu2 %v1430_v50, %s2831_s25  ;;  %1433 = vrot.lane.b32.xlu1 %v1429_v51, %s2831_s25  ;;  %v1084_v50 = vpack.c.bf16 %v1080_v19, %v1080_v19  ;;  %v1096_v51 = vmul.f32 %v2699_v11, %v3177_v58  ;;  %v1094_v19 = vmul.f32 %v2698_v7, %v3181_v0  ;;  %v1470_v11 = vunpack.c.h.b16 %v1081_v35 }
 0x1b2   : > { %1431 = vrot.lane.b32.xlu0 %v1428_v46, %s2831_s25  ;;  %v1453_v46 = vpack.c.b16 %v1450_v28, %v1447_v16  ;;  %v1473_v28 = vunpack.c.h.b16 %v1083_v55  ;;  %v1472_v7 = vunpack.c.l.b16 %v1083_v55  ;;  %v3294_v45 = vpack.c.b16 %v1354_v53, %v1352_v15  ;;  %s2838_s25 = smov 79  }
 0x1b3   : > { %v3255_v9 = vpop.permute.xlu2 %730  ;;  %v3257_v18 = vpop.permute.xlu1 %739  ;;  %v1474_v16 = vunpack.c.l.b16 %v1084_v50  ;;  %v1100_v49 = vpack.c.bf16 %v1095_v14, %v1094_v19  ;;  %v1102_v50 = vpack.c.bf16 %v1098_v59, %v1097_v29  ;;  %v1116_v14 = vmul.f32 %v2703_v43, %v3185_v2 }
 0x1b4   : > { %v3259_v30 = vpop.permute.xlu0 %743  ;;  %v1476_v62 = vpack.c.b16 %v1473_v28, %v1470_v11  ;;  %4083 = vst [vmem:[#allocation12_spill] sm:$0xff] %v3294_v45  ;;  %v1117_v29 = vmul.f32 %v1109_v17, %v3187_v3  ;;  %v1118_v11 = vmul.f32 %v2704_v40, %v3179_v63 }
 0x1b5   : > { %v1477_v54 = vpack.c.b16 %v1474_v16, %v1471_v12  ;;  %v1506_v19 = vunpack.c.h.b16 %v1102_v50  ;;  %v1115_v16 = vmul.f32 %v2704_v40, %v3177_v58 }
 0x1b7   : > { %v1120_v53 = vpack.c.bf16 %v1115_v16, %v1115_v16 }
 0x1b9   : > { %1459 = vrot.lane.b32.xlu2 %v1454_v44, %s2826_s23  ;;  %1457 = vrot.lane.b32.xlu1 %v1453_v46, %s2826_s23  ;;  %v1469_v44 = vunpack.c.l.b16 %v1081_v35  ;;  %v1101_v46 = vpack.c.bf16 %v1096_v51, %v1096_v51  ;;  %v1114_v35 = vmul.f32 %v1109_v17, %v3183_v1  ;;  %v1122_v17 = vpack.c.bf16 %v1118_v11, %v1118_v11 }
 0x1ba   : > { %1455 = vrot.lane.b32.xlu0 %v1452_v6, %s2826_s23  ;;  %v1103_v6 = vpack.c.bf16 %v1099_v34, %v1099_v34  ;;  %v1503_v34 = vunpack.c.h.b16 %v1100_v49 }
 0x1bb   : > { %v3285_v8 = vpop.permute.xlu2 %765  ;;  %v799_v10 = vpop.permute.xlu1 %798  ;;  %v1475_v57 = vpack.c.b16 %v1472_v7, %v1469_v44  ;;  %v1504_v55 = vunpack.c.l.b16 %v1101_v46  ;;  %v2709_v44 = vunpack.i.h.bf16 %v3055_v61  ;;  %v2708_v7 = vunpack.i.l.bf16 %v3055_v61 }
 0x1bc   : > { %v3287_v31 = vpop.permute.xlu0 %802  ;;  %v805_v42 = vsel %vm804_vm5, %v799_v10, %v3224_v41  ;;  %v1113_v10 = vmul.f32 %v2703_v43, %v3181_v0  ;;  %v1507_v51 = vunpack.c.l.b16 %v1103_v6  ;;  %v1509_v43 = vpack.c.b16 %v1506_v19, %v1503_v34 }
 0x1bd   : > { %859 = vmatpush.bf16.msra.mxu2 %v805_v42  ;;  %v1502_v42 = vunpack.c.l.b16 %v1100_v49  ;;  %v1121_v6 = vpack.c.bf16 %v1117_v29, %v1116_v14  ;;  %v1133_v40 = vmul.f32 %v2709_v44, %v3177_v58  ;;  %v1136_v49 = vmul.f32 %v2709_v44, %v3179_v63 }
 0x1be   : > { %v1510_v15 = vpack.c.b16 %v1507_v51, %v1504_v55  ;;  %v1119_v46 = vpack.c.bf16 %v1114_v35, %v1113_v10  ;;  %v1131_v61 = vmul.f32 %v2708_v7, %v3181_v0  ;;  %v1134_v10 = vmul.f32 %v2708_v7, %v3185_v2 }
 0x1bf   : > { %v1528_v34 = vunpack.c.l.b16 %v1120_v53  ;;  %v1531_v19 = vunpack.c.l.b16 %v1122_v17  ;;  %v1530_v29 = vunpack.c.h.b16 %v1121_v6  ;;  %v2719_v17 = vunpack.i.h.bf16 %v3152_v33 }
 0x1c0   : > { %v1527_v14 = vunpack.c.h.b16 %v1119_v46  ;;  %v1526_v11 = vunpack.c.l.b16 %v1119_v46 }
 0x1c1   : > { %1482 = vrot.lane.b32.xlu2 %v1477_v54, %s2823_s20  ;;  %1480 = vrot.lane.b32.xlu1 %v1476_v62, %s2823_s20  ;;  %v1127_v62 = vsel %vm4070_vm13, %v2708_v7, %v2709_v44  ;;  %v2713_v44 = vunpack.i.l.bf16 %v3053_v20  ;;  %v1138_v7 = vpack.c.bf16 %v1133_v40, %v1133_v40  ;;  %vm1541_vm13 = vcmask 883712  }
 0x1c2   : > { %1478 = vrot.lane.b32.xlu0 %v1475_v57, %s2823_s20  ;;  %v1505_v57 = vunpack.c.l.b16 %v1102_v50  ;;  %v1132_v50 = vmul.f32 %v1127_v62, %v3183_v1  ;;  %v1135_v35 = vmul.f32 %v1127_v62, %v3187_v3  ;;  %v1533_v62 = vpack.c.b16 %v1530_v29, %v1527_v14 }
 0x1c3   : > { %v3303_v59 = vpop.permute.xlu2 %789  ;;  %v3305_v12 = vpop.permute.xlu1 %704  ;;  %v1552_v46 = vunpack.c.l.b16 %v1138_v7 }
 0x1c4   : > { %v3309_v28 = vpop.permute.xlu0 %708  ;;  %v1508_v54 = vpack.c.b16 %v1505_v57, %v1502_v42  ;;  %v1529_v42 = vunpack.c.l.b16 %v1121_v6  ;;  %v2714_v57 = vunpack.i.h.bf16 %v3053_v20  ;;  %v1139_v45 = vpack.c.bf16 %v1135_v35, %v1134_v10 }
 0x1c5   : > { %v1150_v35 = vmul.f32 %v2713_v44, %v3181_v0 }
 0x1c6   : > { %v1532_v60 = vpack.c.b16 %v1529_v42, %v1526_v11  ;;  %v1146_v53 = vsel %vm1145_vm6, %v2713_v44, %v2714_v57  ;;  %v1152_v40 = vmul.f32 %v2714_v57, %v3177_v58  ;;  %v1155_v10 = vmul.f32 %v2714_v57, %v3179_v63 }
 0x1c7   : > { %v1553_v14 = vunpack.c.l.b16 %v1139_v45  ;;  %v1154_v29 = vmul.f32 %v1146_v53, %v3187_v3  ;;  %v1165_v11 = vsel %vm1164_vm7, %v2718_v4, %v2719_v17  ;;  %vm734_vm6 = vcmask 916480  }
 0x1c8   : > { %vm1240_vm7 = vcmask 416768  }
 0x1c9   : > { %1515 = vrot.lane.b32.xlu2 %v1510_v15, %s2832_s30  ;;  %1513 = vrot.lane.b32.xlu1 %v1509_v43, %s2832_s30  ;;  %v1140_v15 = vpack.c.bf16 %v1136_v49, %v1136_v49  ;;  %v1137_v43 = vpack.c.bf16 %v1132_v50, %v1131_v61  ;;  %v1554_v50 = vunpack.c.h.b16 %v1139_v45  ;;  %v1169_v45 = vmul.f32 %v2718_v4, %v3181_v0 }
 0x1ca   : > { %1511 = vrot.lane.b32.xlu0 %v1508_v54, %s2832_s30  ;;  %v1534_v54 = vpack.c.b16 %v1531_v19, %v1528_v34  ;;  %v1151_v34 = vmul.f32 %v1146_v53, %v3183_v1  ;;  %v1173_v53 = vmul.f32 %v1165_v11, %v3187_v3 }
 0x1cb   : > { %v3323_v55 = vpop.permute.xlu2 %824  ;;  %v3325_v51 = vpop.permute.xlu1 %728  ;;  %v1555_v20 = vunpack.c.l.b16 %v1140_v15  ;;  %v1551_v6 = vunpack.c.h.b16 %v1137_v43  ;;  %v1550_v19 = vunpack.c.l.b16 %v1137_v43  ;;  %v1157_v15 = vpack.c.bf16 %v1152_v40, %v1152_v40 }
 0x1cc   : > { %v3327_v16 = vpop.permute.xlu0 %732  ;;  %v1172_v43 = vmul.f32 %v2718_v4, %v3185_v2 }
 0x1cd   : > { %v1558_v42 = vpack.c.b16 %v1555_v20, %v1552_v46  ;;  %v1557_v7 = vpack.c.b16 %v1554_v50, %v1551_v6  ;;  %v1556_v57 = vpack.c.b16 %v1553_v14, %v1550_v19  ;;  %v1171_v46 = vmul.f32 %v2719_v17, %v3177_v58 }
 0x1ce   : > { %v1575_v6 = vunpack.c.l.b16 %v1157_v15 }
 0x1d1   : > { %1539 = vrot.lane.b32.xlu2 %v1534_v54, %s2833_s13  ;;  %1537 = vrot.lane.b32.xlu1 %v1533_v62, %s2833_s13  ;;  %v1159_v54 = vpack.c.bf16 %v1155_v10, %v1155_v10  ;;  %v1156_v62 = vpack.c.bf16 %v1151_v34, %v1150_v35  ;;  %v1174_v10 = vmul.f32 %v2719_v17, %v3179_v63 }
 0x1d2   : > { %1535 = vrot.lane.b32.xlu0 %v1532_v60, %s2833_s13  ;;  %v1153_v60 = vmul.f32 %v2713_v44, %v3185_v2  ;;  %v1170_v44 = vmul.f32 %v1165_v11, %v3183_v1  ;;  %v1184_v11 = vsel %vm1183_vm8, %v2723_v25, %v2724_v24  ;;  %v1176_v17 = vpack.c.bf16 %v1171_v46, %v1171_v46  ;;  %s2834_s13 = smov 93  }
 0x1d3   : > { %v3334_v49 = vpop.permute.xlu2 %1388  ;;  %v764_v61 = vpop.permute.xlu1 %763  ;;  %v1578_v40 = vunpack.c.l.b16 %v1159_v54  ;;  %v1574_v50 = vunpack.c.h.b16 %v1156_v62  ;;  %v1573_v19 = vunpack.c.l.b16 %v1156_v62  ;;  %v1178_v15 = vpack.c.bf16 %v1174_v10, %v1174_v10 }
 0x1d4   : > { %4084 = vst [vmem:[#allocation13_spill] sm:$0xff] %v3334_v49  ;;  %v3339_v33 = vpop.permute.xlu0 %767  ;;  %v1158_v49 = vpack.c.bf16 %v1154_v29, %v1153_v60  ;;  %v3362_v60 = vunpack.i.h.bf16 %v3057_v21  ;;  %v3365_v29 = vunpack.i.l.bf16 %v3057_v21  ;;  %v1175_v54 = vpack.c.bf16 %v1170_v44, %v1169_v45  ;;  %v2587_v45 = vld [vmem:[%s4052_s3 + $0x4] sm:$0xf] }
 0x1d5   : > { %v1188_v21 = vmul.f32 %v2723_v25, %v3181_v0  ;;  %v1189_v46 = vmul.f32 %v1184_v11, %v3183_v1  ;;  %vm710_vm8 = vcmask 1031168  }
 0x1d6   : > { %v1577_v4 = vunpack.c.h.b16 %v1158_v49  ;;  %v1576_v14 = vunpack.c.l.b16 %v1158_v49  ;;  %v770_v49 = vsel %vm769_vm1, %v764_v61, %v3285_v8  ;;  %v2551_v61 = vld [vmem:[%s4052_s3 + $0x8] sm:$0xf0]  ;;  %v1607_v10 = vunpack.c.h.b16 %v1175_v54 }
 0x1d8   : > { %v1580_v62 = vpack.c.b16 %v1577_v4, %v1574_v50  ;;  %v1611_v50 = vunpack.c.l.b16 %v1178_v15 }
 0x1d9   : > { %1563 = vrot.lane.b32.xlu2 %v1558_v42, %s2828_s28  ;;  %1561 = vrot.lane.b32.xlu1 %v1557_v7, %s2828_s28  ;;  %v1190_v42 = vmul.f32 %v2724_v24, %v3177_v58  ;;  %v1581_v7 = vpack.c.b16 %v1578_v40, %v1575_v6 }
 0x1da   : > { %1559 = vrot.lane.b32.xlu0 %v1556_v57, %s2828_s28  ;;  %v1177_v57 = vpack.c.bf16 %v1173_v53, %v1172_v43  ;;  %v1191_v43 = vmul.f32 %v2723_v25, %v3185_v2  ;;  %v1192_v53 = vmul.f32 %v1184_v11, %v3187_v3  ;;  %v3394_v25 = vor.u32 %v2587_v45, %v2551_v61 }
 0x1db   : > { %v3354_v20 = vpop.permute.xlu2 %1492  ;;  %v788_v52 = vpop.permute.xlu1 %787  ;;  %v1195_v44 = vpack.c.bf16 %v1190_v42, %v1190_v42  ;;  %v806_v11 = vsel %vm804_vm5, %v3224_v41, %v3287_v31  ;;  %v1203_v41 = vsel %vm1202_vm0, %v3365_v29, %v3362_v60  ;;  %vm686_vm0 = vcmask 1039360  }
 0x1dc   : > { %v3357_v35 = vpop.permute.xlu0 %791  ;;  %v794_v34 = vsel %vm793_vm15, %v788_v52, %v3303_v59  ;;  %v1579_v52 = vpack.c.b16 %v1576_v14, %v1573_v19  ;;  %v1610_v4 = vunpack.c.h.b16 %v1177_v57  ;;  %v1606_v19 = vunpack.c.l.b16 %v1175_v54 }
 0x1dd   : > { %860 = vmatpush.bf16.msra.mxu2 %v794_v34  ;;  %v1193_v34 = vmul.f32 %v2724_v24, %v3179_v63  ;;  %v1608_v24 = vunpack.c.l.b16 %v1176_v17  ;;  %v1609_v42 = vunpack.c.l.b16 %v1177_v57  ;;  %v1194_v54 = vpack.c.bf16 %v1189_v46, %v1188_v21 }
 0x1de   : > { %v548_v57 = vmul.f32 %v2953_v47, %v3079_v38  ;;  %v1212_v46 = vmul.f32 %v3362_v60, %v3179_v63 }
 0x1df   : > { %v1197_v15 = vpack.c.bf16 %v1193_v34, %v1193_v34  ;;  %v1614_v31 = vpack.c.b16 %v1611_v50, %v1608_v24  ;;  %v1613_v34 = vpack.c.b16 %v1610_v4, %v1607_v10  ;;  %v1612_v21 = vpack.c.b16 %v1609_v42, %v1606_v19 }
 0x1e0   : > { %v1631_v45 = vunpack.c.h.b16 %v1194_v54  ;;  %v1208_v50 = vmul.f32 %v1203_v41, %v3183_v1  ;;  %v1210_v4 = vmul.f32 %v3365_v29, %v3185_v2  ;;  %v1211_v19 = vmul.f32 %v1203_v41, %v3187_v3 }
 0x1e1   : > { %1586 = vrot.lane.b32.xlu2 %v1581_v7, %s2824_s21  ;;  %861 = vmatpush.bf16.msra.mxu2 %v770_v49  ;;  %v746_v7 = vsel %vm745_vm3, %v3257_v18, %v3211_v13  ;;  %v546_v49 = vmul.f32 %v2953_v47, %v3075_v36  ;;  %v547_v18 = vmul.f32 %v2956_v48, %v3077_v37  ;;  %v1632_v37 = vunpack.c.l.b16 %v1195_v44 }
 0x1e2   : > { %1584 = vrot.lane.b32.xlu1 %v1580_v62, %s2824_s21  ;;  %1582 = vrot.lane.b32.xlu0 %v1579_v52, %s2824_s21  ;;  %v549_v62 = vmul.f32 %v2956_v48, %v3081_v39  ;;  %v1196_v52 = vpack.c.bf16 %v1192_v53, %v1191_v43  ;;  %v735_v36 = vsel %vm734_vm6, %v3325_v51, %v3255_v9  ;;  %v1635_v38 = vunpack.c.l.b16 %v1197_v15 }
 0x1e3   : > { %v3385_v6 = vpop.permute.xlu2 %1596  ;;  %v823_v40 = vpop.permute.xlu1 %822  ;;  %v1209_v39 = vmul.f32 %v3362_v60, %v3177_v58  ;;  %v795_v51 = vsel %vm793_vm15, %v3303_v59, %v3357_v35  ;;  %v3422_v61 = vpack.c.bf16 %v547_v18, %v546_v49  ;;  %v1207_v60 = vmul.f32 %v3365_v29, %v3181_v0 }
 0x1e4   : > { %v3387_v14 = vpop.permute.xlu0 %826  ;;  %v829_v17 = vsel %vm828_vm4, %v823_v40, %v3323_v55  ;;  %v3424_v24 = vpack.c.bf16 %v549_v62, %v548_v57  ;;  %v1634_v53 = vunpack.c.h.b16 %v1196_v52  ;;  %v1630_v40 = vunpack.c.l.b16 %v1194_v54 }
 0x1e5   : > { %862 = vmatpush.bf16.msra.mxu2 %v746_v7  ;;  %880 = vmatpush.bf16.msra.mxu3 %v829_v17  ;;  %v711_v59 = vsel %vm710_vm8, %v3305_v12, %v3234_v26  ;;  %v1633_v35 = vunpack.c.l.b16 %v1196_v52  ;;  %v2739_v7 = vunpack.i.h.bf16 %v3063_v23  ;;  %v2738_v17 = vunpack.i.l.bf16 %v3063_v23 }
 0x1e6   : > { %v1214_v42 = vpack.c.bf16 %v1209_v39, %v1209_v39  ;;  %v670_v15 = vunpack.c.l.b16 %v3422_v61  ;;  %v672_v12 = vunpack.c.l.b16 %v3424_v24  ;;  %v1216_v54 = vpack.c.bf16 %v1212_v46, %v1212_v46 }
 0x1e7   : > { %v1638_v29 = vpack.c.b16 %v1635_v38, %v1632_v37  ;;  %v1213_v49 = vpack.c.bf16 %v1208_v50, %v1207_v60  ;;  %v687_v18 = vsel %vm686_vm0, %v3236_v27, %v3194_v5  ;;  %v1637_v23 = vpack.c.b16 %v1634_v53, %v1631_v45 }
 0x1e8   : > { %2555 = vmatmul.msk.bf16.vlgmr.msra.gmra.mxu3 %vm596_vm11, %v3394_v25  ;;  %v1636_v57 = vpack.c.b16 %v1633_v35, %v1630_v40  ;;  %v1215_v62 = vpack.c.bf16 %v1211_v19, %v1210_v4  ;;  %v1241_v41 = vsel %vm1240_vm7, %v2738_v17, %v2739_v7  ;;  %v1247_v52 = vmul.f32 %v2739_v7, %v3177_v58 }
 0x1e9   : > { %887 = vmatpush.bf16.msrb.mxu3 %v806_v11  ;;  %1619 = vrot.lane.b32.xlu2 %v1614_v31, %s2834_s13  ;;  %v771_v11 = vsel %vm769_vm1, %v3285_v8, %v3339_v33  ;;  %v2549_v8 = vld [vmem:[%s4052_s3] sm:$0xf]  ;;  %v2588_v33 = vld [vmem:[%s4052_s3 + $0x4] sm:$0xf0]  ;;  %v1656_v31 = vunpack.c.l.b16 %v1214_v42  ;;  %v1250_v27 = vmul.f32 %v2739_v7, %v3179_v63  ;;  %v1245_v37 = vmul.f32 %v2738_v17, %v3181_v0 }
 0x1ea   : > { %863 = vmatpush.bf16.msra.mxu2 %v735_v36  ;;  %1617 = vrot.lane.b32.xlu1 %v1613_v34, %s2834_s13  ;;  %v747_v36 = vsel %vm745_vm3, %v3211_v13, %v3259_v30  ;;  %v674_v34 = vpack.c.b16 %v672_v12, %v670_v15  ;;  %v1655_v46 = vunpack.c.h.b16 %v1213_v49  ;;  %v1248_v45 = vmul.f32 %v2738_v17, %v3185_v2 }
 0x1eb   : > { %1615 = vrot.lane.b32.xlu0 %v1612_v21, %s2834_s13  ;;  %v3426_v44 = vpop.permute.xlu2 %1691  ;;  %v3428_v43 = vpop.permute.xlu1 %1386  ;;  %v1659_v21 = vunpack.c.l.b16 %v1216_v54  ;;  %v1249_v53 = vmul.f32 %v1241_v41, %v3187_v3  ;;  %v3473_v60 = vor.u32 %v2588_v33, %v2549_v8  ;;  %v1658_v13 = vunpack.c.h.b16 %v1215_v62 }
 0x1ec   : > { %v3433_v10 = vpop.permute.xlu0 %1384  ;;  %v1654_v30 = vunpack.c.l.b16 %v1213_v49  ;;  %v1657_v50 = vunpack.c.l.b16 %v1215_v62  ;;  %v2743_v35 = vunpack.i.l.bf16 %v3061_v22  ;;  %v830_v4 = vsel %vm828_vm4, %v3323_v55, %v3387_v14 }
 0x1ed   : > { %888 = vmatpush.bf16.msrb.mxu3 %v795_v51  ;;  %v1246_v51 = vmul.f32 %v1241_v41, %v3183_v1  ;;  %v1252_v19 = vpack.c.bf16 %v1247_v52, %v1247_v52  ;;  %vm1259_vm7 = vcmask 424960   ;;  %v736_v7 = vsel %vm734_vm6, %v3255_v9, %v3327_v16 }
 0x1ee   : > { %864 = vmatpush.bf16.msra.mxu2 %v711_v59  ;;  %v2744_v59 = vunpack.i.h.bf16 %v3061_v22  ;;  %v1254_v17 = vpack.c.bf16 %v1250_v27, %v1250_v27  ;;  %v1662_v42 = vpack.c.b16 %v1659_v21, %v1656_v31  ;;  %v1253_v15 = vpack.c.bf16 %v1249_v53, %v1248_v45  ;;  %v2586_v27 = vld [vmem:[%s4050_s1 + $0x18] sm:$0xff] }
 0x1ef   : > { %v1661_v22 = vpack.c.b16 %v1658_v13, %v1655_v46  ;;  %v1660_v12 = vpack.c.b16 %v1657_v50, %v1654_v30  ;;  %v2748_v55 = vunpack.i.l.bf16 %v3165_v56  ;;  %v1701_v14 = vunpack.c.l.b16 %v1252_v19  ;;  %2538 = vmatmul.msk.bf16.gmra.mxu0 %vm359_vm2, %v2586_v27  ;;  %2542 = vmatmul.msk.bf16.gmra.mxu1 %vm359_vm2, %v2586_v27 }
 0x1f0   : > { %v1260_v54 = vsel %vm1259_vm7, %v2743_v35, %v2744_v59  ;;  %v712_v9 = vsel %vm710_vm8, %v3234_v26, %v3309_v28  ;;  %v1704_v16 = vunpack.c.l.b16 %v1254_v17  ;;  %v1266_v49 = vmul.f32 %v2744_v59, %v3177_v58 }
 0x1f1   : > { %889 = vmatpush.bf16.msrb.mxu3 %v771_v11  ;;  %1643 = vrot.lane.b32.xlu2 %v1638_v29, %s2835_s14  ;;  %v1251_v11 = vpack.c.bf16 %v1246_v51, %v1245_v37  ;;  %v2749_v29 = vunpack.i.h.bf16 %v3165_v56  ;;  %v1703_v62 = vunpack.c.h.b16 %v1253_v15  ;;  %v1264_v8 = vmul.f32 %v2743_v35, %v3181_v0 }
 0x1f2   : > { %865 = vmatpush.bf16.msra.mxu2 %v687_v18  ;;  %1641 = vrot.lane.b32.xlu1 %v1637_v23, %s2835_s14  ;;  %v1269_v18 = vmul.f32 %v2744_v59, %v3179_v63  ;;  %v1702_v31 = vunpack.c.l.b16 %v1253_v15  ;;  %v1265_v26 = vmul.f32 %v1260_v54, %v3183_v1  ;;  %v1267_v28 = vmul.f32 %v2743_v35, %v3185_v2 }
 0x1f3   : > { %1639 = vrot.lane.b32.xlu0 %v1636_v57, %s2835_s14  ;;  %v3464_v38 = vpop.permute.xlu2 %1784  ;;  %v3466_v39 = vpop.permute.xlu1 %1490  ;;  %s2836_s14 = smov 80   ;;  %v1700_v56 = vunpack.c.h.b16 %v1251_v11  ;;  %v1699_v41 = vunpack.c.l.b16 %v1251_v11  ;;  %v1268_v52 = vmul.f32 %v1260_v54, %v3187_v3  ;;  %v688_v21 = vsel %vm686_vm0, %v3194_v5, %v3242_v32 }
 0x1f4   : > { %v3471_v40 = vpop.permute.xlu0 %1488  ;;  %v1271_v37 = vpack.c.bf16 %v1266_v49, %v1266_v49  ;;  %v1278_v46 = vsel %vm359_vm2, %v2748_v55, %v2749_v29  ;;  %v1707_v51 = vpack.c.b16 %v1704_v16, %v1701_v14  ;;  %v1273_v45 = vpack.c.bf16 %v1269_v18, %v1269_v18  ;;  %v4085_v14 = vld [vmem:[#allocation6_spill] sm:$0xff] }
 0x1f5   : > { %890 = vmatpush.bf16.msrb.mxu3 %v747_v36  ;;  %v671_v36 = vunpack.c.h.b16 %v3422_v61  ;;  %v1706_v53 = vpack.c.b16 %v1703_v62, %v1700_v56  ;;  %v1705_v13 = vpack.c.b16 %v1702_v31, %v1699_v41  ;;  %v1270_v30 = vpack.c.bf16 %v1265_v26, %v1264_v8 }
 0x1f6   : > { %866 = vmatpush.bf16.msra.mxu2 %v674_v34  ;;  %v673_v34 = vunpack.c.h.b16 %v3424_v24  ;;  %v1272_v61 = vpack.c.bf16 %v1268_v52, %v1267_v28  ;;  %v1282_v24 = vmul.f32 %v2748_v55, %v3181_v0  ;;  %v1283_v5 = vmul.f32 %v1278_v46, %v3183_v1 }
 0x1f7   : > { %v1285_v32 = vmul.f32 %v2748_v55, %v3185_v2  ;;  %v1286_v59 = vmul.f32 %v1278_v46, %v3187_v3  ;;  %v1722_v35 = vunpack.c.l.b16 %v1271_v37  ;;  %v1725_v17 = vunpack.c.l.b16 %v1273_v45 }
 0x1f8   : > { %v675_v50 = vpack.c.b16 %v673_v34, %v671_v36  ;;  %v1287_v11 = vmul.f32 %v2749_v29, %v3179_v63  ;;  %v1720_v54 = vunpack.c.l.b16 %v1270_v30  ;;  %v1723_v55 = vunpack.c.l.b16 %v1272_v61 }
 0x1f9   : > { %891 = vmatpush.bf16.msrb.mxu3 %v736_v7  ;;  %867 = vmatmul.bf16.vlgmr.msra.gmra.mxu2 %v3473_v60  ;;  %vm1296_vm2 = vcmask 531456   ;;  %v1728_v16 = vpack.c.b16 %v1725_v17, %v1722_v35  ;;  %v1288_v62 = vpack.c.bf16 %v1283_v5, %v1282_v24  ;;  %v1290_v41 = vpack.c.bf16 %v1286_v59, %v1285_v32 }
 0x1fa   : > { %908 = vmatpush.bf16.msrb.mxu2 %v830_v4  ;;  %1667 = vrot.lane.b32.xlu2 %v1662_v42, %s2836_s14  ;;  %v1494_v4 = vsel %vm769_vm1, %v3471_v40, %v3466_v39  ;;  %v1284_v42 = vmul.f32 %v2749_v29, %v3177_v58  ;;  %v2753_v40 = vunpack.i.l.bf16 %v4085_v14  ;;  %v1291_v18 = vpack.c.bf16 %v1287_v11, %v1287_v11 }
 0x1fb   : > { %1665 = vrot.lane.b32.xlu1 %v1661_v22, %s2836_s14  ;;  %1663 = vrot.lane.b32.xlu0 %v1660_v12, %s2836_s14  ;;  %v3491_v23 = vpop.permute.xlu2 %1376  ;;  %v3493_v57 = vpop.permute.xlu1 %1594  ;;  %v1721_v22 = vunpack.c.h.b16 %v1270_v30  ;;  %v1724_v12 = vunpack.c.h.b16 %v1272_v61  ;;  %v1726_v56 = vpack.c.b16 %v1723_v55, %v1720_v54  ;;  %v1742_v46 = vunpack.c.h.b16 %v1288_v62 }
 0x1fc   : > { %v3496_v33 = vpop.permute.xlu0 %1592  ;;  %v1289_v49 = vpack.c.bf16 %v1284_v42, %v1284_v42  ;;  %v1301_v26 = vmul.f32 %v2753_v40, %v3181_v0  ;;  %v1746_v36 = vunpack.c.l.b16 %v1291_v18  ;;  %v1304_v34 = vmul.f32 %v2753_v40, %v3185_v2  ;;  %v4087_v42 = vld [vmem:[#allocation9_spill] sm:$0xff] }
 0x1fd   : > { %892 = vmatpush.bf16.msrb.mxu3 %v712_v9  ;;  %v2754_v9 = vunpack.i.h.bf16 %v4085_v14  ;;  %v1727_v29 = vpack.c.b16 %v1724_v12, %v1721_v22  ;;  %v1741_v45 = vunpack.c.l.b16 %v1288_v62  ;;  %vm1315_vm7 = vcmask 547840  }
 0x1fe   : > { %v1743_v27 = vunpack.c.l.b16 %v1289_v49  ;;  %v2764_v11 = vunpack.i.h.bf16 %v4087_v42  ;;  %v2763_v22 = vunpack.i.l.bf16 %v4087_v42 }
 0x1ff   : > { %v1297_v8 = vsel %vm1296_vm2, %v2753_v40, %v2754_v9  ;;  %v1303_v31 = vmul.f32 %v2754_v9, %v3177_v58  ;;  %vm1334_vm2 = vcmask 556032  }
 0x200   : > { %v1302_v28 = vmul.f32 %v1297_v8, %v3183_v1  ;;  %v1749_v5 = vpack.c.b16 %v1746_v36, %v1743_v27 }
 0x201   : > { %893 = vmatpush.bf16.msrb.mxu3 %v688_v21  ;;  %v1305_v21 = vmul.f32 %v1297_v8, %v3187_v3  ;;  %v1308_v24 = vpack.c.bf16 %v1303_v31, %v1303_v31 }
 0x202   : > { %1712 = vrot.lane.b32.xlu2 %v1707_v51, %s2825_s22  ;;  %v1745_v51 = vunpack.c.h.b16 %v1290_v41  ;;  %v1307_v32 = vpack.c.bf16 %v1302_v28, %v1301_v26 }
 0x203   : > { %1710 = vrot.lane.b32.xlu1 %v1706_v53, %s2825_s22  ;;  %1708 = vrot.lane.b32.xlu0 %v1705_v13, %s2825_s22  ;;  %v3522_v19 = vpop.permute.xlu2 %1411  ;;  %v3524_v7 = vpop.permute.xlu1 %1689  ;;  %v1744_v53 = vunpack.c.l.b16 %v1290_v41  ;;  %v4086_v13 = vld [vmem:[#allocation5_spill] sm:$0xff]  ;;  %v1309_v59 = vpack.c.bf16 %v1305_v21, %v1304_v34  ;;  %v1765_v12 = vunpack.c.l.b16 %v1308_v24 }
 0x204   : > { %v3528_v15 = vpop.permute.xlu0 %1687  ;;  %v2759_v30 = vunpack.i.h.bf16 %v4086_v13  ;;  %v2758_v61 = vunpack.i.l.bf16 %v4086_v13  ;;  %v1748_v35 = vpack.c.b16 %v1745_v51, %v1742_v46  ;;  %v1763_v18 = vunpack.c.l.b16 %v1307_v32  ;;  %v4088_v51 = vld [vmem:[#allocation8_spill] sm:$0xff] }
 0x205   : > { %894 = vmatpush.bf16.msrb.mxu3 %v675_v50  ;;  %v1767_v49 = vunpack.c.h.b16 %v1309_v59  ;;  %v1766_v62 = vunpack.c.l.b16 %v1309_v59  ;;  %v2733_v13 = vunpack.i.l.bf16 %v4088_v51 }
 0x206   : > { %v1316_v17 = vsel %vm1315_vm7, %v2758_v61, %v2759_v30  ;;  %v1322_v55 = vmul.f32 %v2759_v30, %v3177_v58  ;;  %v1325_v14 = vmul.f32 %v2759_v30, %v3179_v63  ;;  %v1323_v8 = vmul.f32 %v2758_v61, %v3185_v2 }
 0x207   : > { %v1321_v41 = vmul.f32 %v1316_v17, %v3183_v1  ;;  %v1324_v31 = vmul.f32 %v1316_v17, %v3187_v3  ;;  %v1769_v34 = vpack.c.b16 %v1766_v62, %v1763_v18  ;;  %vm1221_vm7 = vcmask 400384  }
 0x208   : > { %895 = vmatmul.bf16.vlgmr.msrb.gmra.mxu3 %v3473_v60  ;;  %v1306_v60 = vmul.f32 %v2754_v9, %v3179_v63  ;;  %v1327_v28 = vpack.c.bf16 %v1322_v55, %v1322_v55  ;;  %v1329_v27 = vpack.c.bf16 %v1325_v14, %v1325_v14 }
 0x209   : > { %1959 = vmatpush.bf16.msra.mxu3 %v1494_v4  ;;  %2556 = vmatmul.msk.bf16.vlgmr.msrb.gmra.mxu2 %vm596_vm11, %v3394_v25  ;;  %v1747_v4 = vpack.c.b16 %v1744_v53, %v1741_v45  ;;  %v1328_v46 = vpack.c.bf16 %v1324_v31, %v1323_v8  ;;  %v2734_v45 = vunpack.i.h.bf16 %v4088_v51  ;;  %v1339_v53 = vmul.f32 %v2763_v22, %v3181_v0 }
 0x20a   : > { %1733 = vrot.lane.b32.xlu2 %v1728_v16, %s2830_s10  ;;  %v1310_v50 = vpack.c.bf16 %v1306_v60, %v1306_v60  ;;  %v1764_v16 = vunpack.c.h.b16 %v1307_v32  ;;  %v1335_v60 = vsel %vm1334_vm2, %v2763_v22, %v2764_v11  ;;  %v1794_v32 = vunpack.c.l.b16 %v1327_v28 }
 0x20b   : > { %1731 = vrot.lane.b32.xlu1 %v1727_v29, %s2830_s10  ;;  %1729 = vrot.lane.b32.xlu0 %v1726_v56, %s2830_s10  ;;  %v3542_v25 = vpop.permute.xlu2 %1435  ;;  %v3544_v52 = vpop.permute.xlu1 %1782  ;;  %s2837_s10 = smov 113   ;;  %v1320_v29 = vmul.f32 %v2758_v61, %v3181_v0  ;;  %v1340_v30 = vmul.f32 %v1335_v60, %v3183_v1  ;;  %v1342_v61 = vmul.f32 %v2763_v22, %v3185_v2  ;;  %v1797_v59 = vunpack.c.l.b16 %v1329_v27 }
 0x20c   : > { %v3548_v37 = vpop.permute.xlu0 %1780  ;;  %v1768_v54 = vunpack.c.l.b16 %v1310_v50  ;;  %v1770_v36 = vpack.c.b16 %v1767_v49, %v1764_v16  ;;  %v1343_v24 = vmul.f32 %v1335_v60, %v3187_v3  ;;  %v1796_v22 = vunpack.c.h.b16 %v1328_v46 }
 0x20d   : > { %v1326_v21 = vpack.c.bf16 %v1321_v41, %v1320_v29  ;;  %v1222_v55 = vsel %vm1221_vm7, %v2733_v13, %v2734_v45  ;;  %v1800_v14 = vpack.c.b16 %v1797_v59, %v1794_v32  ;;  %v1345_v62 = vpack.c.bf16 %v1340_v30, %v1339_v53 }
 0x20e   : > { %v1771_v26 = vpack.c.b16 %v1768_v54, %v1765_v12  ;;  %v1795_v54 = vunpack.c.l.b16 %v1328_v46  ;;  %v1347_v41 = vpack.c.bf16 %v1343_v24, %v1342_v61  ;;  %v1226_v8 = vmul.f32 %v2733_v13, %v3181_v0 }
 0x20f   : > { %v1793_v42 = vunpack.c.h.b16 %v1326_v21  ;;  %v1792_v12 = vunpack.c.l.b16 %v1326_v21  ;;  %v1229_v31 = vmul.f32 %v2733_v13, %v3185_v2  ;;  %v1230_v60 = vmul.f32 %v1222_v55, %v3187_v3 }
 0x210   : > { %v1228_v0 = vmul.f32 %v2734_v45, %v3177_v58  ;;  %v1817_v46 = vunpack.c.h.b16 %v1347_v41  ;;  %v1813_v2 = vunpack.c.l.b16 %v1345_v62  ;;  %v1816_v51 = vunpack.c.l.b16 %v1347_v41 }
 0x211   : > { %v1799_v18 = vpack.c.b16 %v1796_v22, %v1793_v42  ;;  %v1798_v29 = vpack.c.b16 %v1795_v54, %v1792_v12  ;;  %v1234_v32 = vpack.c.bf16 %v1230_v60, %v1229_v31  ;;  %v1693_v41 = vsel %vm686_vm0, %v3528_v15, %v3524_v7 }
 0x212   : > { %1754 = vrot.lane.b32.xlu2 %v1749_v5, %s2837_s10  ;;  %v1233_v53 = vpack.c.bf16 %v1228_v0, %v1228_v0  ;;  %v1819_v61 = vpack.c.b16 %v1816_v51, %v1813_v2  ;;  %vm1437_vm2 = vcmask 1014784   ;;  %vm1413_vm7 = vcmask 1022976  }
 0x213   : > { %1752 = vrot.lane.b32.xlu1 %v1748_v35, %s2837_s10  ;;  %1750 = vrot.lane.b32.xlu0 %v1747_v4, %s2837_s10  ;;  %v3556_v9 = vpop.permute.xlu2 %1459  ;;  %v3558_v40 = vpop.permute.xlu1 %1374  ;;  %v1341_v35 = vmul.f32 %v2764_v11, %v3177_v58  ;;  %v1344_v4 = vmul.f32 %v2764_v11, %v3179_v63  ;;  %v1227_v11 = vmul.f32 %v1222_v55, %v3183_v1  ;;  %v1814_v1 = vunpack.c.h.b16 %v1345_v62 }
 0x214   : > { %v3561_v56 = vpop.permute.xlu0 %1372  ;;  %v1682_v42 = vunpack.c.h.b16 %v1234_v32  ;;  %v1681_v12 = vunpack.c.l.b16 %v1234_v32  ;;  %v1694_v62 = vsel %vm686_vm0, %v3524_v7, %v3426_v44  ;;  %v1787_v7 = vsel %vm745_vm3, %v3544_v52, %v3464_v38 }
 0x215   : > { %v1346_v16 = vpack.c.bf16 %v1341_v35, %v1341_v35  ;;  %v1348_v49 = vpack.c.bf16 %v1344_v4, %v1344_v4  ;;  %v1820_v30 = vpack.c.b16 %v1817_v46, %v1814_v1  ;;  %v1232_v24 = vpack.c.bf16 %v1227_v11, %v1226_v8 }
 0x216   : > { %v1786_v15 = vsel %vm745_vm3, %v3548_v37, %v3544_v52  ;;  %v4090_v52 = vld [vmem:[#allocation11_spill] sm:$0xff]  ;;  %v1378_v46 = vsel %vm686_vm0, %v3561_v56, %v3558_v40 }
 0x217   : > { %v1815_v27 = vunpack.c.l.b16 %v1346_v16  ;;  %v1679_v4 = vunpack.c.h.b16 %v1232_v24  ;;  %v1678_v22 = vunpack.c.l.b16 %v1232_v24  ;;  %v1353_v37 = vunpack.c.l.b16 %v4090_v52 }
 0x219   : > { %v1685_v55 = vpack.c.b16 %v1682_v42, %v1679_v4 }
 0x21a   : > { %1776 = vrot.lane.b32.xlu2 %v1771_v26, %s2826_s23 }
 0x21b   : > { %1774 = vrot.lane.b32.xlu1 %v1770_v36, %s2826_s23  ;;  %1772 = vrot.lane.b32.xlu0 %v1769_v34, %s2826_s23  ;;  %v3576_v50 = vpop.permute.xlu2 %1482  ;;  %v3578_v5 = vpop.permute.xlu1 %1409  ;;  %v1818_v36 = vunpack.c.l.b16 %v1348_v49  ;;  %v1231_v34 = vmul.f32 %v2734_v45, %v3179_v63  ;;  %v1680_v45 = vunpack.c.l.b16 %v1233_v53 }
 0x21c   : > { %v3582_v17 = vpop.permute.xlu0 %1407 }
 0x21d   : > { %v1821_v3 = vpack.c.b16 %v1818_v36, %v1815_v27  ;;  %v1235_v13 = vpack.c.bf16 %v1231_v34, %v1231_v34  ;;  %v1414_v27 = vsel %vm1413_vm7, %v3582_v17, %v3578_v5 }
 0x21f   : > { %v1683_v59 = vunpack.c.l.b16 %v1235_v13 }
 0x221   : > { %v1686_v54 = vpack.c.b16 %v1683_v59, %v1680_v45 }
 0x222   : > { %1805 = vrot.lane.b32.xlu2 %v1800_v14, %s2827_s27  ;;  %v1684_v14 = vpack.c.b16 %v1681_v12, %v1678_v22 }
 0x223   : > { %1803 = vrot.lane.b32.xlu1 %v1799_v18, %s2827_s27  ;;  %1801 = vrot.lane.b32.xlu0 %v1798_v29, %s2827_s27  ;;  %v3592_v26 = vpop.permute.xlu2 %1515  ;;  %v3594_v28 = vpop.permute.xlu1 %1433 }
 0x224   : > { %v1432_v21 = vpop.permute.xlu0 %1431  ;;  %v3663_v56 = vsel %vm1437_vm2, %v3594_v28, %v3542_v25 }
 0x22a   : > { %1826 = vrot.lane.b32.xlu2 %v1821_v3, %s2832_s30 }
 0x22b   : > { %1824 = vrot.lane.b32.xlu1 %v1820_v30, %s2832_s30  ;;  %1822 = vrot.lane.b32.xlu0 %v1819_v61, %s2832_s30  ;;  %v3601_v58 = vpop.permute.xlu2 %1539  ;;  %v3603_v63 = vpop.permute.xlu1 %1457 }
 0x22c   : > { %v1456_v35 = vpop.permute.xlu0 %1455 }
 0x22d   : > { %v1461_v8 = vsel %vm734_vm6, %v1456_v35, %v3603_v63 }
 0x232   : > { %1834 = vrot.lane.b32.xlu2 %v1686_v54, %s2838_s25 }
 0x233   : > { %1832 = vrot.lane.b32.xlu1 %v1685_v55, %s2838_s25  ;;  %1830 = vrot.lane.b32.xlu0 %v1684_v14, %s2838_s25  ;;  %v3608_v16 = vpop.permute.xlu2 %1563  ;;  %v3610_v49 = vpop.permute.xlu1 %1480 }
 0x234   : > { %v1479_v18 = vpop.permute.xlu0 %1478 }
 0x235   : > { %v1484_v29 = vsel %vm745_vm3, %v1479_v18, %v3610_v49  ;;  %v2563_v18 = vld [vmem:[%s4054_s5] sm:$0xf] }
 0x236   : > { %1960 = vmatpush.bf16.msra.mxu3 %v1484_v29 }
 0x23a   : > { %1840 = vrot.lane.b32.xlu2 %v3426_v44, %s2838_s25  ;;  %1961 = vmatpush.bf16.msra.mxu3 %v1461_v8  ;;  %v1438_v44 = vsel %vm1437_vm2, %v1432_v21, %v3594_v28  ;;  %v4089_v21 = vld [vmem:[#allocation10_spill] sm:$0xff]  ;;  %vm1645_vm2 = vcmask 752640  }
 0x23b   : > { %1838 = vrot.lane.b32.xlu1 %v1694_v62, %s2838_s25  ;;  %1836 = vrot.lane.b32.xlu0 %v1693_v41, %s2838_s25  ;;  %v3626_v11 = vpop.permute.xlu2 %1586  ;;  %v3628_v31 = vpop.permute.xlu1 %1513  ;;  %v1351_v1 = vunpack.c.l.b16 %v4089_v21 }
 0x23c   : > { %v1512_v60 = vpop.permute.xlu0 %1511 }
 0x23d   : > { %v1355_v3 = vpack.c.b16 %v1353_v37, %v1351_v1  ;;  %v3677_v28 = vsel %vm1517_vm12, %v1512_v60, %v3628_v31  ;;  %v4091_v1 = vld [vmem:[#allocation4_spill] sm:$0xff] }
 0x23e   : > { %1962 = vmatpush.bf16.msra.mxu3 %v1438_v44 }
 0x242   : > { %1870 = vrot.lane.b32.xlu2 %v3464_v38, %s2838_s25  ;;  %1963 = vmatpush.bf16.msra.mxu3 %v1414_v27  ;;  %v1390_v38 = vsel %vm710_vm8, %v3433_v10, %v3428_v43 }
 0x243   : > { %1868 = vrot.lane.b32.xlu1 %v1787_v7, %s2838_s25  ;;  %1866 = vrot.lane.b32.xlu0 %v1786_v15, %s2838_s25  ;;  %v1620_v36 = vpop.permute.xlu2 %1619  ;;  %v1538_v0 = vpop.permute.xlu1 %1537 }
 0x244   : > { %v1536_v34 = vpop.permute.xlu0 %1535  ;;  %v3673_v25 = vsel %vm1541_vm13, %v1538_v0, %v3601_v58  ;;  %v2591_v58 = vld [vmem:[%s4054_s5 + $0xc] sm:$0xf0] }
 0x245   : > { %v3670_v54 = vsel %vm1541_vm13, %v1536_v34, %v1538_v0  ;;  %v3687_v62 = vor.u32 %v2591_v58, %v2563_v18  ;;  %v1598_v0 = vsel %vm828_vm4, %v3496_v33, %v3493_v57  ;;  %v1599_v34 = vsel %vm828_vm4, %v3493_v57, %v3385_v6 }
 0x246   : > { %1964 = vmatpush.bf16.msra.mxu3 %v1390_v38  ;;  %v1519_v58 = vsel %vm1517_vm12, %v3628_v31, %v3592_v26  ;;  %vm4096_vm13 = vcmask 15360  }
 0x24a   : > { %1965 = vmatpush.bf16.msra.mxu3 %v1378_v46 }
 0x24b   : > { %v1644_v2 = vpop.permute.xlu2 %1643  ;;  %v3653_v17 = vpop.permute.xlu1 %1561 }
 0x24c   : > { %v3655_v51 = vpop.permute.xlu0 %1559 }
 0x24e   : > { %1966 = vmatpush.bf16.msra.mxu3 %v1355_v3 }
 0x251   : > { %1967 = vmatmul.bf16.vlgmr.msra.gmra.mxu3 %v3687_v62 }
 0x254   : > { %v1668_v53 = vpop.permute.xlu2 %1667  ;;  %v3657_v13 = vpop.permute.xlu1 %1584 }
 0x255   : > { %v1583_v10 = vpop.permute.xlu0 %1582  ;;  %v1589_v6 = vsel %vm804_vm5, %v3657_v13, %v3626_v11  ;;  %v4092_v11 = vld [vmem:[#allocation7_spill] sm:$0xff] }
 0x256   : > { %v1588_v33 = vsel %vm804_vm5, %v1583_v10, %v3657_v13  ;;  %v1565_v10 = vsel %vm793_vm15, %v3655_v51, %v3653_v17 }
 0x25c   : > { %v1713_v30 = vpop.permute.xlu2 %1712  ;;  %v1618_v61 = vpop.permute.xlu1 %1617 }
 0x25d   : > { %v1616_v24 = vpop.permute.xlu0 %1615  ;;  %1846 = vrot.lane.b32.xlu2 %v1713_v30, %s2838_s25  ;;  %v1623_v27 = vsel %vm1621_vm10, %v1618_v61, %v1620_v36 }
 0x25e   : > { %v1622_v44 = vsel %vm1621_vm10, %v1616_v24, %v1618_v61  ;;  %v1566_v61 = vsel %vm793_vm15, %v3653_v17, %v3608_v16  ;;  %vm1756_vm10 = vcmask 924672   ;;  %v2589_v16 = vld [vmem:[%s4054_s5 + $0x4] sm:$0xf]  ;;  %v2565_v17 = vld [vmem:[%s4054_s5 + $0x10] sm:$0xf0] }
 0x264   : > { %v1734_v32 = vpop.permute.xlu2 %1733  ;;  %v1642_v45 = vpop.permute.xlu1 %1641 }
 0x265   : > { %v1640_v59 = vpop.permute.xlu0 %1639  ;;  %1852 = vrot.lane.b32.xlu2 %v1734_v32, %s2838_s25  ;;  %v1647_v14 = vsel %vm1645_vm2, %v1642_v45, %v1644_v2 }
 0x266   : > { %v1646_v55 = vsel %vm1645_vm2, %v1640_v59, %v1642_v45 }
 0x26b   : > { %v882_v15 = vpop.f32.mrf.mxu3 }
 0x26c   : > { %v3666_v35 = vpop.permute.xlu2 %1754 }
 0x26d   : > { %v1666_v4 = vpop.permute.xlu1 %1665  ;;  %v1664_v42 = vpop.permute.xlu0 %1663  ;;  %1858 = vrot.lane.b32.xlu2 %v3666_v35, %s2838_s25 }
 0x26e   : > { %v1671_v22 = vsel %vm1669_vm14, %v1666_v4, %v1668_v53  ;;  %v1670_v12 = vsel %vm1669_vm14, %v1664_v42, %v1666_v4  ;;  %vm4100_vm14 = vcmask 277504  }
 0x26f   : > { %1973 = vmatpush.bf16.msrb.mxu0 %v1670_v12  ;;  %2029 = vmatpush.bf16.msrb.mxu3 %v1671_v22 }
 0x273   : > { %1974 = vmatpush.bf16.msrb.mxu0 %v1646_v55  ;;  %2030 = vmatpush.bf16.msrb.mxu3 %v1647_v14  ;;  %v884_v57 = vpop.f32.mrf.mxu3  ;;  %v2568_v55 = vor.u32 %v2589_v16, %v2565_v17  ;;  %v396_v14 = vpop.f32.mrf.mxu0 }
 0x274   : > { %v3685_v29 = vpop.permute.xlu2 %1776 }
 0x275   : > { %v1711_v41 = vpop.permute.xlu1 %1710  ;;  %v1709_v8 = vpop.permute.xlu0 %1708  ;;  %1864 = vrot.lane.b32.xlu2 %v3685_v29, %s2838_s25 }
 0x276   : > { %v1715_v60 = vsel %vm710_vm8, %v1711_v41, %v1713_v30  ;;  %v1714_v7 = vsel %vm710_vm8, %v1709_v8, %v1711_v41 }
 0x277   : > { %1844 = vrot.lane.b32.xlu1 %v1715_v60, %s2838_s25  ;;  %1975 = vmatpush.bf16.msrb.mxu0 %v1622_v44 }
 0x278   : > { %2031 = vmatpush.bf16.msrb.mxu3 %v1623_v27  ;;  %1842 = vrot.lane.b32.xlu0 %v1714_v7, %s2838_s25 }
 0x27b   : > { %1976 = vmatpush.bf16.msrb.mxu0 %v1598_v0 }
 0x27c   : > { %2032 = vmatpush.bf16.msrb.mxu3 %v1599_v34  ;;  %v3702_v38 = vpop.permute.xlu2 %1805  ;;  %v868_v21 = vpop.f32.mrf.mxu2 }
 0x27d   : > { %v869_v52 = vadd.f32 %v868_v21, %v4091_v1  ;;  %v1732_v37 = vpop.permute.xlu1 %1731  ;;  %v1730_v36 = vpop.permute.xlu0 %1729  ;;  %1876 = vrot.lane.b32.xlu2 %v3702_v38, %s2838_s25 }
 0x27e   : > { %v1736_v46 = vsel %vm1413_vm7, %v1732_v37, %v1734_v32  ;;  %v1735_v2 = vsel %vm1413_vm7, %v1730_v36, %v1732_v37 }
 0x27f   : > { %v883_v3 = vadd.f32 %v882_v15, %v869_v52  ;;  %1850 = vrot.lane.b32.xlu1 %v1736_v46, %s2838_s25  ;;  %1977 = vmatpush.bf16.msrb.mxu0 %v1588_v33 }
 0x280   : > { %2033 = vmatpush.bf16.msrb.mxu3 %v1589_v6  ;;  %1848 = vrot.lane.b32.xlu0 %v1735_v2, %s2838_s25 }
 0x281   : > { %v915_v53 = vmul.f32 0.2, %v883_v3 }
 0x283   : > { %v919_v30 = vmax.f32 %v883_v3, %v915_v53  ;;  %1978 = vmatpush.bf16.msrb.mxu0 %v1565_v10  ;;  %v4093_v3 = vld [vmem:[#allocation2_spill] sm:$0xff] }
 0x284   : > { %2034 = vmatpush.bf16.msrb.mxu3 %v1566_v61  ;;  %v1827_v24 = vpop.permute.xlu2 %1826  ;;  %v870_v32 = vpop.f32.mrf.mxu2  ;;  %v1925_v10 = vld [vmem:[%s4055_s6] sm:$0xff] }
 0x285   : > { %2443 = vst [vmem:[%s3021_s12 + $0x20] sm:$0xff] %v919_v30  ;;  %v871_v13 = vadd.f32 %v870_v32, %v4092_v11  ;;  %v1753_v45 = vpop.permute.xlu1 %1752  ;;  %v1751_v59 = vpop.permute.xlu0 %1750  ;;  %1882 = vrot.lane.b32.xlu2 %v1827_v24, %s2838_s25 }
 0x286   : > { %v1758_v4 = vsel %vm1756_vm10, %v1753_v45, %v3666_v35  ;;  %v1757_v51 = vsel %vm1756_vm10, %v1751_v59, %v1753_v45  ;;  %v425_v35 = vpop.f32.mrf.mxu1  ;;  %v398_v30 = vpop.f32.mrf.mxu0 }
 0x287   : > { %v885_v42 = vadd.f32 %v884_v57, %v871_v13  ;;  %1856 = vrot.lane.b32.xlu1 %v1758_v4, %s2838_s25  ;;  %1979 = vmatpush.bf16.msrb.mxu0 %v3670_v54  ;;  %v1926_v57 = vld [vmem:[%s4055_s6 + $0x8] sm:$0xff] }
 0x288   : > { %2035 = vmatpush.bf16.msrb.mxu3 %v3673_v25  ;;  %1854 = vrot.lane.b32.xlu0 %v1757_v51, %s2838_s25 }
 0x289   : > { %v917_v22 = vmul.f32 0.2, %v885_v42 }
 0x28b   : > { %v896_v12 = vpop.f32.mrf.mxu3  ;;  %v921_v18 = vmax.f32 %v885_v42, %v917_v22  ;;  %1980 = vmatpush.bf16.msrb.mxu0 %v3677_v28 }
 0x28c   : > { %v897_v54 = vadd.f32 %v896_v12, %v4091_v1  ;;  %2036 = vmatpush.bf16.msrb.mxu3 %v1519_v58  ;;  %v910_v41 = vpop.f32.mrf.mxu2  ;;  %v3756_v46 = vpop.permute.xlu2 %1834 }
 0x28d   : > { %2445 = vst [vmem:[%s3021_s12 + $0x30] sm:$0xff] %v921_v18  ;;  %v1775_v25 = vpop.permute.xlu1 %1774  ;;  %v1773_v60 = vpop.permute.xlu0 %1772  ;;  %2083 = vrot.lane.b32.xlu2 %v396_v14, %s2808_s18 }
 0x28e   : > { %v911_v8 = vadd.f32 %v910_v41, %v897_v54  ;;  %v1779_v44 = vsel %vm734_vm6, %v1775_v25, %v3685_v29  ;;  %v1778_v7 = vsel %vm734_vm6, %v1773_v60, %v1775_v25  ;;  %1981 = vmatmul.bf16.vlgmr.msrb.gmra.mxu0 %v2568_v55  ;;  %v427_v15 = vpop.f32.mrf.mxu1 }
 0x28f   : > { %1862 = vrot.lane.b32.xlu1 %v1779_v44, %s2838_s25  ;;  %2037 = vmatmul.bf16.vlgmr.msrb.gmra.mxu3 %v2568_v55 }
 0x290   : > { %v916_v28 = vmul.f32 0.2, %v911_v8  ;;  %1860 = vrot.lane.b32.xlu0 %v1778_v7, %s2838_s25 }
 0x292   : > { %v920_v26 = vmax.f32 %v911_v8, %v916_v28 }
 0x293   : > { %v898_v31 = vpop.f32.mrf.mxu3 }
 0x294   : > { %2444 = vst [vmem:[%s3021_s12 + $0x28] sm:$0xff] %v920_v26  ;;  %v899_v27 = vadd.f32 %v898_v31, %v4092_v11  ;;  %v912_v0 = vpop.f32.mrf.mxu2  ;;  %v3768_v53 = vpop.permute.xlu2 %1840 }
 0x295   : > { %v1804_v34 = vpop.permute.xlu1 %1803  ;;  %v1802_v29 = vpop.permute.xlu0 %1801  ;;  %2089 = vrot.lane.b32.xlu2 %v427_v15, %s2808_s18 }
 0x296   : > { %v913_v21 = vadd.f32 %v912_v0, %v899_v27  ;;  %v1808_v1 = vsel %vm769_vm1, %v1804_v34, %v3702_v38  ;;  %v1807_v52 = vsel %vm769_vm1, %v1802_v29, %v1804_v34  ;;  %v2590_v34 = vld [vmem:[%s4054_s5 + $0xc] sm:$0xf] }
 0x297   : > { %1874 = vrot.lane.b32.xlu1 %v1808_v1, %s2838_s25 }
 0x298   : > { %v918_v37 = vmul.f32 0.2, %v913_v21  ;;  %1872 = vrot.lane.b32.xlu0 %v1807_v52, %s2838_s25 }
 0x29a   : > { %v922_v36 = vmax.f32 %v913_v21, %v918_v37  ;;  %v2573_v21 = vld [vmem:[%s4054_s5 + $0x18] sm:$0xf0] }
 0x29c   : > { %2446 = vst [vmem:[%s3021_s12 + $0x38] sm:$0xff] %v922_v36  ;;  %v1871_v61 = vpop.permute.xlu2 %1870 }
 0x29d   : > { %v1825_v33 = vpop.permute.xlu1 %1824  ;;  %v1823_v2 = vpop.permute.xlu0 %1822  ;;  %2776 = vrot.lane.b32.xlu2 %v4093_v3, %s2800_s15 }
 0x29e   : > { %v1829_v6 = vsel %vm1517_vm12, %v1825_v33, %v1827_v24  ;;  %v1828_v38 = vsel %vm1517_vm12, %v1823_v2, %v1825_v33  ;;  %v4094_v24 = vld [vmem:[#allocation3_spill] sm:$0xff]  ;;  %vm1884_vm12 = vcmask 646144   ;;  %v3815_v33 = vor.u32 %v2590_v34, %v2573_v21 }
 0x29f   : > { %1880 = vrot.lane.b32.xlu1 %v1829_v6, %s2838_s25  ;;  %v1495_v2 = vsel %vm769_vm1, %v3466_v39, %v3354_v20 }
 0x2a0   : > { %1878 = vrot.lane.b32.xlu0 %v1828_v38, %s2838_s25  ;;  %v1485_v38 = vsel %vm745_vm3, %v3610_v49, %v3576_v50 }
 0x2a5   : > { %v3785_v45 = vpop.permute.xlu1 %1832  ;;  %v1831_v59 = vpop.permute.xlu0 %1830 }
 0x2a6   : > { %v3793_v12 = vsel %vm1884_vm12, %v1831_v59, %v3785_v45  ;;  %v1886_v59 = vsel %vm1884_vm12, %v3785_v45, %v3756_v46 }
 0x2a7   : > { %1934 = vperm.xlu1 %2643, %v1926_v57  }
 0x2a8   : > { %1929 = vperm.xlu0 %2642, %v1925_v10  }
 0x2ad   : > { %v3787_v51 = vpop.permute.xlu1 %1838  ;;  %v1837_v16 = vpop.permute.xlu0 %1836 }
 0x2ae   : > { %v1887_v58 = vsel %vm1884_vm12, %v1837_v16, %v3787_v51 }
 0x2af   : > { %2087 = vrot.lane.b32.xlu1 %v398_v30, %s2808_s18  ;;  %v1462_v30 = vsel %vm734_vm6, %v3603_v63, %v3556_v9 }
 0x2b0   : > { %2085 = vrot.lane.b32.xlu0 %v425_v35, %s2808_s18 }
 0x2b5   : > { %v1869_v35 = vpop.permute.xlu1 %1868  ;;  %v1867_v22 = vpop.permute.xlu0 %1866 }
 0x2b6   : > { %v1898_v27 = vsel %vm1884_vm12, %v1869_v35, %v1871_v61  ;;  %v1897_v0 = vsel %vm1884_vm12, %v1867_v22, %v1869_v35 }
 0x2b7   : > { %2771 = vrot.lane.b32.xlu1 %v4094_v24, %s2801_s26  ;;  %v3777_v32 = vpop.permute.xlu2 %1846 }
 0x2b8   : > { %2766 = vrot.lane.b32.xlu0 %v4093_v3, %s2804_s9 }
 0x2bf   : > { %2786 = vrot.lane.b32.xlu1 %v4093_v3, %s2803_s8  ;;  %v1853_v11 = vpop.permute.xlu2 %1852 }
 0x2c0   : > { %2781 = vrot.lane.b32.xlu0 %v4094_v24, %s2806_s11 }
 0x2c7   : > { %v1859_v13 = vpop.permute.xlu2 %1858 }
 0x2cf   : > { %v1865_v4 = vpop.permute.xlu2 %1864 }
 0x2d7   : > { %v1877_v42 = vpop.permute.xlu2 %1876 }
 0x2df   : > { %v3789_v17 = vpop.permute.xlu2 %1882 }
 0x2e7   : > { %v2084_v55 = vpop.permute.xlu2 %2083 }
 0x2e8   : > { %v3796_v14 = vsel %vm516_vm9, 0.0, %v2084_v55 }
 0x2e9   : > { %v1845_v18 = vpop.permute.xlu1 %1844  ;;  %2185 = vrot.lane.b32.xlu2 %v3796_v14, %s2822_s19 }
 0x2ea   : > { %v1843_v54 = vpop.permute.xlu0 %1842  ;;  %v1890_v61 = vsel %vm1884_vm12, %v1845_v18, %v3777_v32  ;;  %v2592_v32 = vld [vmem:[%s4054_s5 + $0x14] sm:$0xf0] }
 0x2eb   : > { %v1889_v50 = vsel %vm1884_vm12, %v1843_v54, %v1845_v18  ;;  %v4097_v18 = vld [vmem:[#allocation12_spill] sm:$0xff] }
 0x2f1   : > { %v1851_v41 = vpop.permute.xlu1 %1850 }
 0x2f2   : > { %v1849_v25 = vpop.permute.xlu0 %1848  ;;  %v1892_v20 = vsel %vm1884_vm12, %v1851_v41, %v1853_v11 }
 0x2f3   : > { %v1891_v39 = vsel %vm1884_vm12, %v1849_v25, %v1851_v41 }
 0x2f9   : > { %v1857_v8 = vpop.permute.xlu1 %1856 }
 0x2fa   : > { %v1855_v60 = vpop.permute.xlu0 %1854  ;;  %v1894_v3 = vsel %vm1884_vm12, %v1857_v8, %v1859_v13  ;;  %v1888_v13 = vsel %vm1884_vm12, %v3787_v51, %v3768_v53  ;;  %v2571_v53 = vld [vmem:[%s4054_s5 + $0x8] sm:$0xf] }
 0x2fb   : > { %v1893_v6 = vsel %vm1884_vm12, %v1855_v60, %v1857_v8 }
 0x301   : > { %v1863_v44 = vpop.permute.xlu1 %1862 }
 0x302   : > { %v1861_v7 = vpop.permute.xlu0 %1860  ;;  %v1896_v52 = vsel %vm1884_vm12, %v1863_v44, %v1865_v4  ;;  %v2572_v4 = vor.u32 %v2592_v32, %v2571_v53 }
 0x303   : > { %v1895_v36 = vsel %vm1884_vm12, %v1861_v7, %v1863_v44 }
 0x309   : > { %v1875_v28 = vpop.permute.xlu1 %1874 }
 0x30a   : > { %v1900_v26 = vsel %vm1884_vm12, %v1875_v28, %v1877_v42  ;;  %v1873_v31 = vpop.permute.xlu0 %1872  ;;  %v2090_v42 = vpop.permute.xlu2 %2089 }
 0x30b   : > { %v1899_v15 = vsel %vm1884_vm12, %v1873_v31, %v1875_v28  ;;  %2043 = vmatpush.bf16.msra.mxu0 %v1900_v26  ;;  %v3880_v22 = vsel %vm516_vm9, %v2090_v42, 0.0 }
 0x30c   : > { %1987 = vmatpush.bf16.msrb.mxu1 %v1899_v15 }
 0x30f   : > { %2044 = vmatpush.bf16.msra.mxu0 %v1898_v27 }
 0x310   : > { %1988 = vmatpush.bf16.msrb.mxu1 %v1897_v0 }
 0x311   : > { %v1881_v29 = vpop.permute.xlu1 %1880 }
 0x312   : > { %v1879_v1 = vpop.permute.xlu0 %1878  ;;  %v2777_v15 = vpop.permute.xlu2 %2776 }
 0x313   : > { %v1901_v37 = vsel %vm1884_vm12, %v1879_v1, %v1881_v29  ;;  %2045 = vmatpush.bf16.msra.mxu0 %v1896_v52  ;;  %v2778_v27 = vunpack.i.l.bf16 %v2777_v15  ;;  %v2779_v0 = vunpack.i.h.bf16 %v2777_v15 }
 0x314   : > { %1989 = vmatpush.bf16.msrb.mxu1 %v1895_v36  ;;  %2008 = vmatpush.bf16.msra.mxu2 %v1901_v37 }
 0x315   : > { %v2147_v34 = vmul.f32 %v2778_v27, %v3796_v14 }
 0x317   : > { %2046 = vmatpush.bf16.msra.mxu0 %v1894_v3  ;;  %2577 = vmatmul.msk.bf16.vlgmr.msra.gmra.mxu2 %vm596_vm11, %v3815_v33  ;;  %v2152_v3 = vmul.f32 %v2779_v0, %v3880_v22 }
 0x318   : > { %2015 = vmatpush.bf16.msrb.mxu2 %v1495_v2  ;;  %1990 = vmatpush.bf16.msrb.mxu1 %v1893_v6 }
 0x319   : > { %v3827_v57 = vpop.permute.xlu1 %1934 }
 0x31a   : > { %v3829_v10 = vpop.permute.xlu0 %1929 }
 0x31b   : > { %2047 = vmatpush.bf16.msra.mxu0 %v1892_v20 }
 0x31c   : > { %2016 = vmatpush.bf16.msrb.mxu2 %v1485_v38  ;;  %1991 = vmatpush.bf16.msrb.mxu1 %v1891_v39 }
 0x31f   : > { %2048 = vmatpush.bf16.msra.mxu0 %v1890_v61 }
 0x320   : > { %2017 = vmatpush.bf16.msrb.mxu2 %v1462_v30  ;;  %1992 = vmatpush.bf16.msrb.mxu1 %v1889_v50 }
 0x321   : > { %v2088_v49 = vpop.permute.xlu1 %2087 }
 0x322   : > { %v2086_v24 = vpop.permute.xlu0 %2085  ;;  %v3841_v11 = vsel %vm516_vm9, 0.0, %v2088_v49  ;;  %v3877_v35 = vsel %vm516_vm9, %v2088_v49, %v2090_v42 }
 0x323   : > { %v3847_v9 = vsel %vm516_vm9, %v2084_v55, %v2086_v24  ;;  %v3850_v63 = vsel %vm516_vm9, %v2086_v24, 0.0  ;;  %2049 = vmatpush.bf16.msra.mxu0 %v1888_v13  ;;  %2191 = vrot.lane.b32.xlu2 %v3841_v11, %s2822_s19  ;;  %vm4098_vm9 = vcmask 146432   ;;  %v2150_v52 = vmul.f32 %v2778_v27, %v3841_v11 }
 0x324   : > { %2018 = vmatpush.bf16.msrb.mxu2 %v3663_v56  ;;  %1993 = vmatpush.bf16.msrb.mxu1 %v1887_v58  ;;  %v1415_v56 = vsel %vm1413_vm7, %v3578_v5, %v3522_v19  ;;  %v1902_v19 = vsel %vm1884_vm12, %v1881_v29, %v3789_v17  ;;  %v4095_v5 = vld [vmem:[#allocation13_spill] sm:$0xff]  ;;  %v2143_v21 = vsel %vm4098_vm9, %v2778_v27, %v2779_v0 }
 0x325   : > { %2187 = vrot.lane.b32.xlu0 %v3847_v9, %s2822_s19  ;;  %2189 = vrot.lane.b32.xlu1 %v3850_v63, %s2822_s19  ;;  %v1391_v51 = vsel %vm710_vm8, %v3428_v43, %v4095_v5  ;;  %v1379_v43 = vsel %vm686_vm0, %v3558_v40, %v3491_v23  ;;  %v2148_v29 = vmul.f32 %v2143_v21, %v3847_v9 }
 0x326   : > { %v2149_v1 = vmul.f32 %v2779_v0, %v3850_v63 }
 0x327   : > { %2050 = vmatpush.bf16.msra.mxu0 %v1886_v59 }
 0x328   : > { %2019 = vmatpush.bf16.msrb.mxu2 %v1415_v56  ;;  %1994 = vmatpush.bf16.msrb.mxu1 %v3793_v12 }
 0x329   : > { %v2772_v41 = vpop.permute.xlu1 %2771 }
 0x32a   : > { %v2767_v16 = vpop.permute.xlu0 %2766  ;;  %2051 = vmatmul.bf16.vlgmr.msra.gmra.mxu0 %v2572_v4  ;;  %v2773_v23 = vunpack.i.l.bf16 %v2772_v41  ;;  %v2774_v25 = vunpack.i.h.bf16 %v2772_v41 }
 0x32b   : > { %v2769_v46 = vunpack.i.h.bf16 %v2767_v16  ;;  %v2768_v45 = vunpack.i.l.bf16 %v2767_v16  ;;  %1995 = vmatmul.bf16.vlgmr.msrb.gmra.mxu1 %v2572_v4 }
 0x32c   : > { %2020 = vmatpush.bf16.msrb.mxu2 %v1391_v51  ;;  %2064 = vmatpush.bf16.msra.mxu1 %v1902_v19  ;;  %v2133_v60 = vmul.f32 %v2773_v23, %v3796_v14  ;;  %v2135_v7 = vmul.f32 %v2774_v25, %v3850_v63  ;;  %v2136_v28 = vmul.f32 %v2773_v23, %v3841_v11 }
 0x32d   : > { %2193 = vrot.lane.b32.xlu0 %v3877_v35, %s2822_s19  ;;  %v2117_v17 = vmul.f32 %v2768_v45, %v3796_v14  ;;  %2195 = vrot.lane.b32.xlu1 %v3880_v22, %s2822_s19  ;;  %v2113_v12 = vsel %vm4096_vm13, %v2768_v45, %v2769_v46  ;;  %v2119_v54 = vmul.f32 %v2769_v46, %v3850_v63 }
 0x32e   : > { %v2118_v55 = vmul.f32 %v2113_v12, %v3847_v9  ;;  %v2120_v58 = vmul.f32 %v2768_v45, %v3841_v11  ;;  %v2121_v40 = vmul.f32 %v2113_v12, %v3877_v35  ;;  %v2122_v8 = vmul.f32 %v2769_v46, %v3880_v22 }
 0x32f   : > { %2216 = vrot.lane.b32.xlu2 %v2117_v17, %s2825_s22  ;;  %v2138_v31 = vmul.f32 %v2774_v25, %v3880_v22 }
 0x330   : > { %2021 = vmatpush.bf16.msrb.mxu2 %v1379_v43 }
 0x331   : > { %v2787_v13 = vpop.permute.xlu1 %2786 }
 0x332   : > { %v2782_v37 = vpop.permute.xlu0 %2781  ;;  %v2788_v56 = vunpack.i.l.bf16 %v2787_v13  ;;  %v2789_v32 = vunpack.i.h.bf16 %v2787_v13 }
 0x333   : > { %v2783_v36 = vunpack.i.l.bf16 %v2782_v37  ;;  %v2784_v2 = vunpack.i.h.bf16 %v2782_v37 }
 0x334   : > { %2022 = vmatpush.bf16.msrb.mxu2 %v4097_v18  ;;  %v2175_v59 = vmul.f32 %v2788_v56, %v3796_v14  ;;  %v2171_v4 = vsel %vm4100_vm14, %v2788_v56, %v2789_v32  ;;  %v2177_v51 = vmul.f32 %v2789_v32, %v3850_v63  ;;  %v2178_v42 = vmul.f32 %v2788_v56, %v3841_v11  ;;  %v1968_v18 = vpop.f32.mrf.mxu3 }
 0x335   : > { %2218 = vrot.lane.b32.xlu0 %v2118_v55, %s2825_s22  ;;  %2220 = vrot.lane.b32.xlu1 %v2119_v54, %s2825_s22  ;;  %v2161_v6 = vmul.f32 %v2783_v36, %v3796_v14  ;;  %v2163_v39 = vmul.f32 %v2784_v2, %v3850_v63  ;;  %v2164_v30 = vmul.f32 %v2783_v36, %v3841_v11 }
 0x336   : > { %v2166_v49 = vmul.f32 %v2784_v2, %v3880_v22  ;;  %v2176_v5 = vmul.f32 %v2171_v4, %v3847_v9  ;;  %v2179_v12 = vmul.f32 %v2171_v4, %v3877_v35  ;;  %v2180_v55 = vmul.f32 %v2789_v32, %v3880_v22 }
 0x337   : > { %2023 = vmatmul.bf16.vlgmr.msrb.gmra.mxu2 %v3687_v62  ;;  %2222 = vrot.lane.b32.xlu2 %v2120_v58, %s2825_s22  ;;  %v2129_v62 = vsel %vm596_vm11, %v2773_v23, %v2774_v25  ;;  %v1982_v25 = vpop.f32.mrf.mxu0 }
 0x338   : > { %v2134_v44 = vmul.f32 %v2129_v62, %v3847_v9  ;;  %v2137_v26 = vmul.f32 %v2129_v62, %v3877_v35 }
 0x33b   : > { %2578 = vmatmul.msk.bf16.vlgmr.msra.gmra.mxu1 %vm596_vm11, %v3815_v33  ;;  %v2151_v33 = vmul.f32 %v2143_v21, %v3877_v35  ;;  %vm4099_vm11 = vcmask 261120  }
 0x33c   : > { %v2157_v38 = vsel %vm4099_vm11, %v2783_v36, %v2784_v2 }
 0x33d   : > { %2224 = vrot.lane.b32.xlu0 %v2121_v40, %s2825_s22  ;;  %2226 = vrot.lane.b32.xlu1 %v2122_v8, %s2825_s22  ;;  %v2162_v20 = vmul.f32 %v2157_v38, %v3847_v9  ;;  %v2165_v50 = vmul.f32 %v2157_v38, %v3877_v35  ;;  %v1969_v8 = vadd.f32 %v1968_v18, %v3829_v10 }
 0x33f   : > { %2247 = vrot.lane.b32.xlu2 %v2133_v60, %s2826_s23  ;;  %v2103_v60 = vmul.f32 %v2953_v47, %v3796_v14  ;;  %v1983_v15 = vadd.f32 %v1982_v25, %v1969_v8 }
 0x343   : > { %v2186_v61 = vpop.permute.xlu2 %2185 }
 0x345   : > { %2249 = vrot.lane.b32.xlu0 %v2134_v44, %s2826_s23  ;;  %2251 = vrot.lane.b32.xlu1 %v2135_v7, %s2826_s23  ;;  %v2104_v7 = vmul.f32 %v2956_v48, %v3847_v9 }
 0x347   : > { %2253 = vrot.lane.b32.xlu2 %v2136_v28, %s2826_s23 }
 0x34d   : > { %2255 = vrot.lane.b32.xlu0 %v2137_v26, %s2826_s23  ;;  %2257 = vrot.lane.b32.xlu1 %v2138_v31, %s2826_s23  ;;  %v1970_v26 = vpop.f32.mrf.mxu3 }
 0x34e   : > { %v1971_v37 = vadd.f32 %v1970_v26, %v3827_v57 }
 0x34f   : > { %2272 = vrot.lane.b32.xlu2 %v3796_v14, %s2823_s20 }
 0x355   : > { %2274 = vrot.lane.b32.xlu0 %v3847_v9, %s2823_s20  ;;  %2276 = vrot.lane.b32.xlu1 %v3850_v63, %s2823_s20 }
 0x357   : > { %2278 = vrot.lane.b32.xlu2 %v3841_v11, %s2823_s20 }
 0x35d   : > { %2280 = vrot.lane.b32.xlu0 %v3877_v35, %s2823_s20  ;;  %2282 = vrot.lane.b32.xlu1 %v3880_v22, %s2823_s20 }
 0x35f   : > { %2303 = vrot.lane.b32.xlu2 %v2147_v34, %s2827_s27 }
 0x365   : > { %2305 = vrot.lane.b32.xlu0 %v2148_v29, %s2827_s27  ;;  %2307 = vrot.lane.b32.xlu1 %v2149_v1, %s2827_s27 }
 0x367   : > { %2309 = vrot.lane.b32.xlu2 %v2150_v52, %s2827_s27 }
 0x36d   : > { %2311 = vrot.lane.b32.xlu0 %v2151_v33, %s2827_s27  ;;  %2313 = vrot.lane.b32.xlu1 %v2152_v3, %s2827_s27  ;;  %v1984_v33 = vpop.f32.mrf.mxu0 }
 0x36f   : > { %2334 = vrot.lane.b32.xlu2 %v2161_v6, %s2828_s28  ;;  %v2106_v6 = vmul.f32 %v2956_v48, %v3877_v35  ;;  %v2038_v48 = vpop.f32.mrf.mxu3 }
 0x375   : > { %2336 = vrot.lane.b32.xlu0 %v2162_v20, %s2828_s28  ;;  %2338 = vrot.lane.b32.xlu1 %v2163_v39, %s2828_s28  ;;  %v1985_v39 = vadd.f32 %v1984_v33, %v1971_v37 }
 0x377   : > { %2340 = vrot.lane.b32.xlu2 %v2164_v30, %s2828_s28 }
 0x37d   : > { %2342 = vrot.lane.b32.xlu0 %v2165_v50, %s2828_s28  ;;  %2344 = vrot.lane.b32.xlu1 %v2166_v49, %s2828_s28  ;;  %v2192_v24 = vpop.permute.xlu2 %2191 }
 0x37f   : > { %2359 = vrot.lane.b32.xlu2 %v3796_v14, %s2824_s21 }
 0x385   : > { %2361 = vrot.lane.b32.xlu0 %v3847_v9, %s2824_s21  ;;  %2363 = vrot.lane.b32.xlu1 %v3850_v63, %s2824_s21  ;;  %v2415_v63 = vld [vmem:[%s4051_s2 + $0x30] sm:$0xff]  ;;  %v2105_v9 = vmul.f32 %v2953_v47, %v3841_v11 }
 0x387   : > { %2365 = vrot.lane.b32.xlu2 %v3841_v11, %s2824_s21 }
 0x389   : > { %v2217_v53 = vpop.permute.xlu2 %2216 }
 0x38d   : > { %2367 = vrot.lane.b32.xlu0 %v3877_v35, %s2824_s21  ;;  %2369 = vrot.lane.b32.xlu1 %v3880_v22, %s2824_s21  ;;  %v2416_v22 = vld [vmem:[%s4051_s2 + $0x38] sm:$0xff] }
 0x38f   : > { %2390 = vrot.lane.b32.xlu2 %v2175_v59, %s2829_s29 }
 0x391   : > { %v2223_v19 = vpop.permute.xlu2 %2222 }
 0x395   : > { %2392 = vrot.lane.b32.xlu0 %v2176_v5, %s2829_s29  ;;  %2394 = vrot.lane.b32.xlu1 %v2177_v51, %s2829_s29 }
 0x397   : > { %v2188_v16 = vpop.permute.xlu0 %2187  ;;  %v2190_v45 = vpop.permute.xlu1 %2189  ;;  %2396 = vrot.lane.b32.xlu2 %v2178_v42, %s2829_s29 }
 0x398   : > { %v2198_v46 = vsel %vm686_vm0, %v2186_v61, %v2188_v16  ;;  %v2199_v17 = vsel %vm686_vm0, %v2188_v16, %v2190_v45 }
 0x399   : > { %v2248_v43 = vpop.permute.xlu2 %2247  ;;  %v2206_v44 = vadd.f32 %v2198_v46, %v2103_v60  ;;  %v2207_v27 = vadd.f32 %v2199_v17, %v2104_v7 }
 0x39a   : > { %v2010_v62 = vpop.f32.mrf.mxu2 }
 0x39d   : > { %2398 = vrot.lane.b32.xlu0 %v2179_v12, %s2829_s29  ;;  %2400 = vrot.lane.b32.xlu1 %v2180_v55, %s2829_s29 }
 0x39f   : > { %v2194_v54 = vpop.permute.xlu0 %2193  ;;  %v2196_v41 = vpop.permute.xlu1 %2195  ;;  %2419 = vperm.xlu2 %2644, %v2415_v63  }
 0x3a0   : > { %v2200_v58 = vsel %vm686_vm0, %v2192_v24, %v2194_v54  ;;  %v2201_v23 = vsel %vm686_vm0, %v2194_v54, %v2196_v41  ;;  %v2040_v41 = vpop.f32.mrf.mxu3 }
 0x3a1   : > { %v3989_v40 = vpop.permute.xlu2 %2253  ;;  %v2208_v3 = vadd.f32 %v2200_v58, %v2105_v9  ;;  %v2209_v50 = vadd.f32 %v2201_v23, %v2106_v6 }
 0x3a2   : > { %v2012_v20 = vpop.f32.mrf.mxu2 }
 0x3a5   : > { %2424 = vperm.xlu0 %2642, %v2416_v22  }
 0x3a7   : > { %v2219_v28 = vpop.permute.xlu0 %2218  ;;  %v2221_v34 = vpop.permute.xlu1 %2220 }
 0x3a8   : > { %v2229_v31 = vsel %vm710_vm8, %v2217_v53, %v2219_v28  ;;  %v1996_v21 = vpop.f32.mrf.mxu1  ;;  %v2230_v29 = vsel %vm710_vm8, %v2219_v28, %v2221_v34  ;;  %v2052_v51 = vpop.f32.mrf.mxu0 }
 0x3a9   : > { %v2237_v0 = vadd.f32 %v2229_v31, %v2206_v44  ;;  %v1997_v1 = vadd.f32 %v1996_v21, %v1983_v15  ;;  %v2273_v52 = vpop.permute.xlu2 %2272  ;;  %v2238_v14 = vadd.f32 %v2230_v29, %v2207_v27 }
 0x3ab   : > { %v2011_v36 = vadd.f32 %v2010_v62, %v1997_v1 }
 0x3ad   : > { %v2071_v2 = vmul.f32 0.2, %v2011_v36 }
 0x3af   : > { %v2225_v38 = vpop.permute.xlu0 %2224  ;;  %v2075_v30 = vmax.f32 %v2011_v36, %v2071_v2  ;;  %v2227_v24 = vpop.permute.xlu1 %2226 }
 0x3b0   : > { %v2231_v61 = vsel %vm710_vm8, %v2223_v19, %v2225_v38  ;;  %v1998_v13 = vpop.f32.mrf.mxu1  ;;  %v2232_v56 = vsel %vm710_vm8, %v2225_v38, %v2227_v24  ;;  %v2054_v44 = vpop.f32.mrf.mxu0 }
 0x3b1   : > { %v2239_v49 = vadd.f32 %v2231_v61, %v2208_v3  ;;  %2447 = vst [vmem:[%s3021_s12 + $0x40] sm:$0xff] %v2075_v30  ;;  %v1999_v47 = vadd.f32 %v1998_v13, %v1985_v39  ;;  %v2279_v11 = vpop.permute.xlu2 %2278  ;;  %v2240_v53 = vadd.f32 %v2232_v56, %v2209_v50 }
 0x3b3   : > { %v2013_v32 = vadd.f32 %v2012_v20, %v1999_v47 }
 0x3b5   : > { %v2073_v59 = vmul.f32 0.2, %v2013_v32 }
 0x3b7   : > { %v2250_v35 = vpop.permute.xlu0 %2249  ;;  %v2077_v4 = vmax.f32 %v2013_v32, %v2073_v59  ;;  %v2252_v19 = vpop.permute.xlu1 %2251 }
 0x3b8   : > { %v2260_v5 = vsel %vm734_vm6, %v2248_v43, %v2250_v35  ;;  %v2261_v46 = vsel %vm734_vm6, %v2250_v35, %v2252_v19  ;;  %v2066_v55 = vpop.f32.mrf.mxu1 }
 0x3b9   : > { %v2268_v42 = vadd.f32 %v2260_v5, %v2237_v0  ;;  %2449 = vst [vmem:[%s3021_s12 + $0x50] sm:$0xff] %v2077_v4  ;;  %v2304_v17 = vpop.permute.xlu2 %2303  ;;  %v2269_v12 = vadd.f32 %v2261_v46, %v2238_v14 }
 0x3ba   : > { %v2024_v16 = vpop.f32.mrf.mxu2 }
 0x3bb   : > { %v2025_v45 = vadd.f32 %v2024_v16, %v3829_v10 }
 0x3bd   : > { %v2039_v63 = vadd.f32 %v2038_v48, %v2025_v45 }
 0x3bf   : > { %v2053_v18 = vadd.f32 %v2052_v51, %v2039_v63  ;;  %v2256_v54 = vpop.permute.xlu0 %2255  ;;  %v2258_v23 = vpop.permute.xlu1 %2257 }
 0x3c0   : > { %v2262_v43 = vsel %vm734_vm6, %v3989_v40, %v2256_v54  ;;  %v2263_v60 = vsel %vm734_vm6, %v2256_v54, %v2258_v23  ;;  %v2068_v31 = vpop.f32.mrf.mxu1 }
 0x3c1   : > { %v2067_v58 = vadd.f32 %v2066_v55, %v2053_v18  ;;  %v2270_v22 = vadd.f32 %v2262_v43, %v2239_v49  ;;  %v4017_v62 = vadd.f32 %v2263_v60, %v2240_v53  ;;  %v2310_v26 = vpop.permute.xlu2 %2309 }
 0x3c2   : > { %v2026_v25 = vpop.f32.mrf.mxu2 }
 0x3c3   : > { %v2072_v8 = vmul.f32 0.2, %v2067_v58  ;;  %v2027_v10 = vadd.f32 %v2026_v25, %v3827_v57 }
 0x3c5   : > { %v2076_v7 = vmax.f32 %v2067_v58, %v2072_v8  ;;  %v2041_v28 = vadd.f32 %v2040_v41, %v2027_v10 }
 0x3c7   : > { %2448 = vst [vmem:[%s3021_s12 + $0x48] sm:$0xff] %v2076_v7  ;;  %v2055_v15 = vadd.f32 %v2054_v44, %v2041_v28  ;;  %v2275_v40 = vpop.permute.xlu0 %2274  ;;  %v2277_v34 = vpop.permute.xlu1 %2276 }
 0x3c8   : > { %v2285_v0 = vsel %vm745_vm3, %v2273_v52, %v2275_v40  ;;  %v2286_v47 = vsel %vm745_vm3, %v2275_v40, %v2277_v34 }
 0x3c9   : > { %v2069_v27 = vadd.f32 %v2068_v31, %v2055_v15  ;;  %v2293_v21 = vadd.f32 %v2285_v0, %v2268_v42  ;;  %v2335_v57 = vpop.permute.xlu2 %2334  ;;  %v2294_v35 = vadd.f32 %v2286_v47, %v2269_v12 }
 0x3cb   : > { %v2074_v29 = vmul.f32 0.2, %v2069_v27 }
 0x3cd   : > { %v2078_v1 = vmax.f32 %v2069_v27, %v2074_v29 }
 0x3cf   : > { %2450 = vst [vmem:[%s3021_s12 + $0x58] sm:$0xff] %v2078_v1  ;;  %v2281_v14 = vpop.permute.xlu0 %2280  ;;  %v2283_v36 = vpop.permute.xlu1 %2282 }
 0x3d0   : > { %v2287_v37 = vsel %vm745_vm3, %v2279_v11, %v2281_v14  ;;  %v2288_v43 = vsel %vm745_vm3, %v2281_v14, %v2283_v36 }
 0x3d1   : > { %v2295_v33 = vadd.f32 %v2287_v37, %v2270_v22  ;;  %v2341_v2 = vpop.permute.xlu2 %2340  ;;  %v2296_v10 = vadd.f32 %v2288_v43, %v4017_v62 }
 0x3d7   : > { %v2306_v9 = vpop.permute.xlu0 %2305  ;;  %v2308_v3 = vpop.permute.xlu1 %2307 }
 0x3d8   : > { %v2316_v11 = vsel %vm769_vm1, %v2304_v17, %v2306_v9  ;;  %v2317_v59 = vsel %vm769_vm1, %v2306_v9, %v2308_v3 }
 0x3d9   : > { %v2360_v20 = vpop.permute.xlu2 %2359  ;;  %v2324_v4 = vadd.f32 %v2316_v11, %v2293_v21  ;;  %v2325_v19 = vadd.f32 %v2317_v59, %v2294_v35 }
 0x3df   : > { %v2312_v6 = vpop.permute.xlu0 %2311  ;;  %v2314_v38 = vpop.permute.xlu1 %2313 }
 0x3e0   : > { %v2318_v22 = vsel %vm769_vm1, %v2310_v26, %v2312_v6  ;;  %v2319_v25 = vsel %vm769_vm1, %v2312_v6, %v2314_v38 }
 0x3e1   : > { %v2366_v52 = vpop.permute.xlu2 %2365  ;;  %v2326_v40 = vadd.f32 %v2318_v22, %v2295_v33  ;;  %v2327_v27 = vadd.f32 %v2319_v25, %v2296_v10 }
 0x3e7   : > { %v2337_v39 = vpop.permute.xlu0 %2336  ;;  %v2339_v30 = vpop.permute.xlu1 %2338 }
 0x3e8   : > { %v2347_v48 = vsel %vm793_vm15, %v2335_v57, %v2337_v39  ;;  %v2348_v5 = vsel %vm793_vm15, %v2337_v39, %v2339_v30 }
 0x3e9   : > { %v2391_v49 = vpop.permute.xlu2 %2390  ;;  %v2355_v42 = vadd.f32 %v2347_v48, %v2324_v4  ;;  %v2356_v46 = vadd.f32 %v2348_v5, %v2325_v19 }
 0x3ef   : > { %v2343_v61 = vpop.permute.xlu0 %2342  ;;  %v2345_v50 = vpop.permute.xlu1 %2344 }
 0x3f0   : > { %v2349_v44 = vsel %vm793_vm15, %v2341_v2, %v2343_v61  ;;  %v2350_v7 = vsel %vm793_vm15, %v2343_v61, %v2345_v50 }
 0x3f1   : > { %v2397_v53 = vpop.permute.xlu2 %2396  ;;  %v2357_v29 = vadd.f32 %v2349_v44, %v2326_v40  ;;  %v2358_v1 = vadd.f32 %v2350_v7, %v2327_v27 }
 0x3f7   : > { %v2362_v24 = vpop.permute.xlu0 %2361  ;;  %v2364_v13 = vpop.permute.xlu1 %2363 }
 0x3f8   : > { %v2372_v51 = vsel %vm804_vm5, %v2360_v20, %v2362_v24  ;;  %v2373_v16 = vsel %vm804_vm5, %v2362_v24, %v2364_v13 }
 0x3f9   : > { %v2380_v45 = vadd.f32 %v2372_v51, %v2355_v42  ;;  %v2381_v63 = vadd.f32 %v2373_v16, %v2356_v46  ;;  %v2420_v58 = vpop.permute.xlu2 %2419 }
 0x3ff   : > { %v2368_v56 = vpop.permute.xlu0 %2367  ;;  %v2370_v32 = vpop.permute.xlu1 %2369 }
 0x400   : > { %v2374_v0 = vsel %vm804_vm5, %v2366_v52, %v2368_v56  ;;  %v2375_v26 = vsel %vm804_vm5, %v2368_v56, %v2370_v32 }
 0x401   : > { %v2382_v14 = vadd.f32 %v2374_v0, %v2357_v29  ;;  %v2383_v37 = vadd.f32 %v2375_v26, %v2358_v1 }
 0x407   : > { %v2393_v55 = vpop.permute.xlu0 %2392  ;;  %v2395_v18 = vpop.permute.xlu1 %2394 }
 0x408   : > { %v2403_v17 = vsel %vm828_vm4, %v2391_v49, %v2393_v55  ;;  %v2404_v12 = vsel %vm828_vm4, %v2393_v55, %v2395_v18 }
 0x409   : > { %v2411_v54 = vadd.f32 %v2403_v17, %v2380_v45  ;;  %v2412_v41 = vadd.f32 %v2404_v12, %v2381_v63 }
 0x40b   : > { %v2427_v23 = vadd.f32 %v2420_v58, %v2411_v54  ;;  %v2428_v8 = vadd.f32 %v2420_v58, %v2412_v41 }
 0x40d   : > { %v2431_v60 = vmul.f32 0.2, %v2427_v23  ;;  %v2432_v28 = vmul.f32 0.2, %v2428_v8 }
 0x40f   : > { %v2435_v31 = vmax.f32 %v2427_v23, %v2431_v60  ;;  %v2399_v15 = vpop.permute.xlu0 %2398  ;;  %v2436_v34 = vmax.f32 %v2428_v8, %v2432_v28  ;;  %v2401_v21 = vpop.permute.xlu1 %2400 }
 0x410   : > { %v2405_v62 = vsel %vm828_vm4, %v2397_v53, %v2399_v15  ;;  %v2406_v57 = vsel %vm828_vm4, %v2399_v15, %v2401_v21 }
 0x411   : > { %2451 = vst [vmem:[%s3021_s12 + $0x60] sm:$0xff] %v2435_v31  ;;  %v2413_v36 = vadd.f32 %v2405_v62, %v2382_v14  ;;  %v2414_v33 = vadd.f32 %v2406_v57, %v2383_v37 }
 0x412   : > { %2452 = vst [vmem:[%s3021_s12 + $0x68] sm:$0xff] %v2436_v34 }
 0x417   : > { %v2425_v9 = vpop.permute.xlu0 %2424 }
 0x418   : > { %v2429_v2 = vadd.f32 %v2425_v9, %v2413_v36  ;;  %v2430_v3 = vadd.f32 %v2425_v9, %v2414_v33 }
 0x41a   : > { %v2433_v6 = vmul.f32 0.2, %v2429_v2  ;;  %v2434_v38 = vmul.f32 0.2, %v2430_v3 }
 0x41c   : > { %v2437_v20 = vmax.f32 %v2429_v2, %v2433_v6  ;;  %v2438_v39 = vmax.f32 %v2430_v3, %v2434_v38 }
 0x41e   : > { %2453 = vst [vmem:[%s3021_s12 + $0x70] sm:$0xff] %v2437_v20 }
 0x41f   : > { %2454 = vst [vmem:[%s3021_s12 + $0x78] sm:$0xff] %v2438_v39 }
 0x420 PF: > { %s17_s24 = sadd.s32 1, %s2796_s24  }
 0x421   : > { %p14_p4 = scmp.ge.s32.totalorder %s17_s24, 4  }
 0x423   :  { %16 = sbr.rel (!%p14_p4) target bundleno = 1 (0x1), region = 78 }

</bundles_post_ra>
